<compile_context>
chip_gen: v5e
topology: v5e:2x2
jax: 0.10.0
libtpu: 0.0.40
codegen_flags: <defaults>
</compile_context>

<pallas_src>
import jax
import jax.numpy as jnp
from jax.experimental import pallas as pl
from jax.experimental.pallas import tpu as pltpu


# --------------------------------------------------------------------------- #
# Kernel
# --------------------------------------------------------------------------- #
def _feb3_kernel(x_ref, wdw1_ref, s1_ref, b1_ref, wdw2_ref,
                 w1a_ref, w1b_ref, b2_ref, wsp_ref, weca_ref, o_ref):
    """One batch-block (B, H, W, C) -> (B, H, W, C)."""
    B, H, W, C = x_ref.shape
    f32 = jnp.float32
    mm_dt = w1a_ref.dtype                           # MXU operand dtype (bf16)

    x = x_ref[...].astype(f32)                      # (B, H, W, C)

    # ---- 3x3 depthwise conv, fully in registers ----------------------------
    # Column (W = sublane axis) shifts: XLU roll + edge mask.  Row (H) shifts:
    # aligned leading-dim slices of the per-kernel-row partial sums + concat.
    # No pad scratch, no halo zeroing, no sublane-unaligned loads.
    w_iota = jax.lax.broadcasted_iota(jnp.int32, (1, 1, W, 1), 2)

    def shift_w(v, dx):                             # out[..., w, :] = v[..., w+dx, :]
        r = pltpu.roll(v, shift=(-dx) % W, axis=2)
        if dx > 0:
            return jnp.where(w_iota >= W - dx, jnp.zeros_like(r), r)
        return jnp.where(w_iota < -dx, jnp.zeros_like(r), r)

    def dw_conv3x3(v, w9):                          # v: (B, H, W, C); w9: (9, C)
        cols = (shift_w(v, -1), v, shift_w(v, 1))
        rowsum = []
        for dy in range(3):
            acc = cols[0] * w9[3 * dy + 0].reshape(1, 1, 1, C)
            acc = acc + cols[1] * w9[3 * dy + 1].reshape(1, 1, 1, C)
            acc = acc + cols[2] * w9[3 * dy + 2].reshape(1, 1, 1, C)
            rowsum.append(acc)
        zrow = jnp.zeros((B, 1, W, C), v.dtype)
        top = jnp.concatenate([zrow, rowsum[0][:, :H - 1]], axis=1)   # from row h-1
        bot = jnp.concatenate([rowsum[2][:, 1:], zrow], axis=1)       # from row h+1
        return top + rowsum[1] + bot

    x1 = dw_conv3x3(x, wdw1_ref[...])                                 # dw_conv_1
    # Issue the x1 half of conv_1x1 now so the MXU overlaps dw_conv_2 (VPU):
    #   y = x1 @ W1x1[:C] + x2 @ W1x1[C:]   (bn_2 scale pre-folded into both).
    y = jnp.dot(x1.reshape(B * H * W, C).astype(mm_dt), w1a_ref[...],
                preferred_element_type=f32)

    t1 = x1 * s1_ref[...].reshape(1, 1, 1, C) + b1_ref[...].reshape(1, 1, 1, C)  # bn_1
    x2 = dw_conv3x3(t1, wdw2_ref[...])                                # dw_conv_2
    y = y + jnp.dot(x2.reshape(B * H * W, C).astype(mm_dt), w1b_ref[...],
                    preferred_element_type=f32)
    y = y + b2_ref[...]                             # bn_2 bias (scale already folded)

    z = jnp.maximum(x.reshape(B * H * W, C) + y, 0.0)                 # residual + ReLU
    zb = z.reshape(B, H * W, C)

    def sigmoid(v):
        return pl.reciprocal(1.0 + jnp.exp(-v), approx=True)

    # SCA spatial gate: 1x1 conv C->1 as a lane reduction (XLU) + sigmoid.
    sp = sigmoid(jnp.sum(zb * wsp_ref[...].reshape(1, 1, C), axis=-1, keepdims=True))

    # SCA channel (ECA) gate: global avg pool + k-tap 1-D channel conv done
    # directly with lane rolls (no (C, C) band matrix, no M=1 matmul).
    m = jnp.mean(zb, axis=1)                        # (B, C)
    k = weca_ref.shape[0]
    pad = (k - 1) // 2
    c_iota = jax.lax.broadcasted_iota(jnp.int32, (1, C), 1)
    g_logit = jnp.zeros_like(m)
    for t in range(k):
        off = t - pad                               # tap t reads m[:, c + off]
        if off == 0:
            shifted = m
        else:
            shifted = pltpu.roll(m, shift=(-off) % C, axis=1)
            if off > 0:
                shifted = jnp.where(c_iota >= C - off, 0.0, shifted)
            else:
                shifted = jnp.where(c_iota < -off, 0.0, shifted)
        g_logit = g_logit + weca_ref[t] * shifted   # weca row t = w_eca[t] broadcast
    g = sigmoid(g_logit)                            # (B, C)

    out = zb * (sp + g[:, None, :])                 # z*spatial + z*channel
    o_ref[...] = out.reshape(B, H, W, C).astype(o_ref.dtype)


# --------------------------------------------------------------------------- #
# Host-side wrappers
# --------------------------------------------------------------------------- #
def feb3_forward_nhwc(x_nhwc, params, *, mxu_dtype=jnp.bfloat16, images_per_step=4):
    """x_nhwc: (N, H, W, C).  Native NHWC production path (no transposes)."""
    N, H, W, C = x_nhwc.shape
    f32 = jnp.float32

    # Fold bn_2's per-channel scale into the 1x1 weights (in f32, before the
    # bf16 cast) and split them so the kernel can do y = x1 @ w1a + x2 @ w1b
    # with no lane-axis concat.
    s2 = params["s2"].astype(f32).reshape(1, C)
    w1 = params["w_1x1"].astype(f32)
    w1a = (w1[:C, :] * s2).astype(mxu_dtype)
    w1b = (w1[C:, :] * s2).astype(mxu_dtype)
    b2 = params["b2"].astype(f32).reshape(1, C)

    wdw1 = params["w_dw1"].reshape(9, C).astype(f32)
    wdw2 = params["w_dw2"].reshape(9, C).astype(f32)
    s1 = params["s1"].astype(f32).reshape(1, C)
    b1 = params["b1"].astype(f32).reshape(1, C)
    wsp = params["w_sp"].astype(f32).reshape(1, C)

    # ECA taps lane-broadcast so the kernel never has to extract scalars.
    w_eca = params["w_eca"].astype(f32)
    k = int(w_eca.shape[0])
    weca = jnp.broadcast_to(w_eca[:, None], (k, C))

    # Several images per grid step amortize per-step overhead and feed the MXU
    # more rows; keep grid length >= 2 so both v7x TensorCores get work.
    bn = max(1, min(images_per_step, N))
    while bn > 1 and (N % bn != 0 or N // bn < 2):
        bn -= 1

    const2 = lambda n: (0, 0)
    return pl.pallas_call(
        _feb3_kernel,
        out_shape=jax.ShapeDtypeStruct((N, H, W, C), x_nhwc.dtype),
        grid=(N // bn,),
        in_specs=[
            pl.BlockSpec((bn, H, W, C), lambda n: (n, 0, 0, 0)),  # x
            pl.BlockSpec((9, C), const2),      # dw_conv_1 weights
            pl.BlockSpec((1, C), const2),      # bn_1 scale
            pl.BlockSpec((1, C), const2),      # bn_1 bias
            pl.BlockSpec((9, C), const2),      # dw_conv_2 weights
            pl.BlockSpec((C, C), const2),      # conv_1x1 weights, x1 half (bn_2 folded)
            pl.BlockSpec((C, C), const2),      # conv_1x1 weights, x2 half (bn_2 folded)
            pl.BlockSpec((1, C), const2),      # bn_2 bias
            pl.BlockSpec((1, C), const2),      # SCA spatial 1x1 weights
            pl.BlockSpec((k, C), const2),      # ECA taps (lane-broadcast)
        ],
        out_specs=pl.BlockSpec((bn, H, W, C), lambda n: (n, 0, 0, 0)),
        compiler_params=pltpu.CompilerParams(dimension_semantics=("parallel",)),
    )(x_nhwc, wdw1, s1, b1, wdw2, w1a, w1b, b2, wsp, weca)


def feb3_forward(x_nchw, params, *, mxu_dtype=jnp.bfloat16, images_per_step=4):
    """PyTorch-layout wrapper: (N, C, H, W) in / out.  Prefer the NHWC entry
    point in production to avoid the two extra HBM transpose passes."""
    x = jnp.transpose(x_nchw, (0, 2, 3, 1))              # NCHW -> NHWC
    out = feb3_forward_nhwc(x, params, mxu_dtype=mxu_dtype,
                            images_per_step=images_per_step)
    return jnp.transpose(out, (0, 3, 1, 2))              # NHWC -> NCHW


# --------------------------------------------------------------------------- #
# Synthetic parameters + pure-JAX reference
# --------------------------------------------------------------------------- #
def make_params(key, in_channels, k_size=3):
    """Deterministic synthetic parameters (BN folded to eval-mode scale/bias)."""
    C = in_channels
    ks = jax.random.split(key, 8)

    def bn_fold(k, c):
        kg, kb, km, kv = jax.random.split(k, 4)
        gamma = 1.0 + 0.1 * jax.random.normal(kg, (c,), jnp.float32)
        beta = 0.1 * jax.random.normal(kb, (c,), jnp.float32)
        mean = 0.05 * jax.random.normal(km, (c,), jnp.float32)
        var = jnp.abs(1.0 + 0.1 * jax.random.normal(kv, (c,), jnp.float32))
        scale = gamma / jnp.sqrt(var + 1e-5)
        bias = beta - mean * scale
        return scale.reshape(1, c), bias.reshape(1, c)

    w_dw1 = 0.1 * jax.random.normal(ks[0], (3, 3, C), jnp.float32)    # per-channel 3x3
    w_dw2 = 0.1 * jax.random.normal(ks[1], (3, 3, C), jnp.float32)
    w_1x1 = 0.1 * jax.random.normal(ks[2], (2 * C, C), jnp.float32)   # (in=2C, out=C)
    w_sp = 0.1 * jax.random.normal(ks[3], (1, C), jnp.float32)        # spatial 1x1: C->1
    w_eca = 0.5 * jax.random.normal(ks[4], (k_size,), jnp.float32)    # ECA 1-D conv
    s1, b1 = bn_fold(ks[5], C)
    s2, b2 = bn_fold(ks[6], C)
    return dict(w_dw1=w_dw1, w_dw2=w_dw2, w_1x1=w_1x1, w_sp=w_sp, w_eca=w_eca,
                s1=s1, b1=b1, s2=s2, b2=b2)


def reference(x_nchw, p):
    """Pure-JAX FEB_3 forward (eval-mode BN), used for correctness checks."""
    x = jnp.transpose(x_nchw, (0, 2, 3, 1))
    N, H, W, C = x.shape

    def dw(v, w):
        return jax.lax.conv_general_dilated(
            v, w.reshape(3, 3, 1, C), window_strides=(1, 1),
            padding=((1, 1), (1, 1)),
            dimension_numbers=("NHWC", "HWIO", "NHWC"),
            feature_group_count=C)

    x1 = dw(x, p["w_dw1"])
    t1 = x1 * p["s1"] + p["b1"]
    x2 = dw(t1, p["w_dw2"])
    cat = jnp.concatenate([x1, x2], axis=-1)
    y = jnp.einsum("nhwc,cd->nhwd", cat, p["w_1x1"])
    y = y * p["s2"] + p["b2"]
    z = jnp.maximum(x + y, 0.0)

    sp = jax.nn.sigmoid(jnp.einsum("nhwc,c->nhw", z, p["w_sp"][0]))[..., None]
    m = jnp.mean(z, axis=(1, 2))                                   # (N, C)
    k = p["w_eca"].shape[0]
    pad = (k - 1) // 2
    mp = jnp.pad(m, ((0, 0), (pad, pad)))
    g_logit = sum(p["w_eca"][t] * mp[:, t:t + C] for t in range(k))
    g = jax.nn.sigmoid(g_logit)                                    # (N, C)
    out = z * sp + z * g[:, None, None, :]
    return jnp.transpose(out, (0, 3, 1, 2))


# --------------------------------------------------------------------------- #
# Self-test
# --------------------------------------------------------------------------- #
if __name__ == "__main__":
    # C = 128 keeps the channel (lane) axis fully dense; still a small test.
    N, C, H, W = 2, 128, 16, 16

    key = jax.random.PRNGKey(0)
    kx, kp = jax.random.split(key)
    x = jax.random.normal(kx, (N, C, H, W), jnp.float32)   # NCHW, like PyTorch
    params = make_params(kp, C)

    fwd = jax.jit(feb3_forward)
    out = jax.block_until_ready(fwd(x, params))

    ref = reference(x, params)
    assert out.shape == (N, C, H, W)
    max_err = float(jnp.max(jnp.abs(out - ref)))
    # Tolerance accounts for bf16 operands on the 1x1-conv MXU path.
    assert jnp.allclose(out, ref, rtol=2e-2, atol=2e-2), max_err

    print("KERNEL_OK")
</pallas_src>

<mosaic_0001>
module attributes {stable_mosaic.version = 11 : i64} {
  func.func @_feb3_kernel(%arg0: i32, %arg1: memref<1x16x16x128xf32, #tpu.memory_space<vmem>>, %arg2: memref<9x128xf32, #tpu.memory_space<vmem>>, %arg3: memref<1x128xf32, #tpu.memory_space<vmem>>, %arg4: memref<1x128xf32, #tpu.memory_space<vmem>>, %arg5: memref<9x128xf32, #tpu.memory_space<vmem>>, %arg6: memref<128x128xbf16, #tpu.memory_space<vmem>>, %arg7: memref<128x128xbf16, #tpu.memory_space<vmem>>, %arg8: memref<1x128xf32, #tpu.memory_space<vmem>>, %arg9: memref<1x128xf32, #tpu.memory_space<vmem>>, %arg10: memref<3x128xf32, #tpu.memory_space<vmem>>, %arg11: memref<1x16x16x128xf32, #tpu.memory_space<vmem>>) attributes {dimension_semantics = [#tpu.dimension_semantics<parallel>], iteration_bounds = array<i64: 2>, scalar_prefetch = 0 : i64, scratch_operands = 0 : i64, tpu.core_type = #tpu.core_type<tc>, window_params = [{transform_indices = @transform_0, window_bounds = array<i64: 1, 16, 16, 128>}, {pipeline_mode = #tpu.pipeline_mode<synchronous>, transform_indices = @transform_1, window_bounds = array<i64: 9, 128>}, {pipeline_mode = #tpu.pipeline_mode<synchronous>, transform_indices = @transform_2, window_bounds = array<i64: 1, 128>}, {pipeline_mode = #tpu.pipeline_mode<synchronous>, transform_indices = @transform_3, window_bounds = array<i64: 1, 128>}, {pipeline_mode = #tpu.pipeline_mode<synchronous>, transform_indices = @transform_4, window_bounds = array<i64: 9, 128>}, {pipeline_mode = #tpu.pipeline_mode<synchronous>, transform_indices = @transform_5, window_bounds = array<i64: 128, 128>}, {pipeline_mode = #tpu.pipeline_mode<synchronous>, transform_indices = @transform_6, window_bounds = array<i64: 128, 128>}, {pipeline_mode = #tpu.pipeline_mode<synchronous>, transform_indices = @transform_7, window_bounds = array<i64: 1, 128>}, {pipeline_mode = #tpu.pipeline_mode<synchronous>, transform_indices = @transform_8, window_bounds = array<i64: 1, 128>}, {pipeline_mode = #tpu.pipeline_mode<synchronous>, transform_indices = @transform_9, window_bounds = array<i64: 3, 128>}, {transform_indices = @transform_10, window_bounds = array<i64: 1, 16, 16, 128>}]} {
    %c0 = arith.constant 0 : index
    %c0_0 = arith.constant 0 : index
    %c0_1 = arith.constant 0 : index
    %c0_2 = arith.constant 0 : index
    %0 = vector.load %arg1[%c0, %c0_0, %c0_1, %c0_2] : memref<1x16x16x128xf32, #tpu.memory_space<vmem>>, vector<1x16x16x128xf32>
    %1 = tpu.iota {dimensions = array<i32: 2>} : vector<1x1x16x1xi32>
    %c0_3 = arith.constant 0 : index
    %c0_4 = arith.constant 0 : index
    %2 = vector.load %arg2[%c0_3, %c0_4] : memref<9x128xf32, #tpu.memory_space<vmem>>, vector<9x128xf32>
    %c1_i32 = arith.constant 1 : i32
    %3 = tpu.dynamic_rotate %0 by %c1_i32 dim 2 : vector<1x16x16x128xf32>, i32 -> vector<1x16x16x128xf32>
    %c1_i32_5 = arith.constant 1 : i32
    %4 = vector.broadcast %c1_i32_5 : i32 to vector<1x1x16x1xi32>
    %5 = arith.cmpi slt, %1, %4 : vector<1x1x16x1xi32>
    %cst = arith.constant 0.000000e+00 : f32
    %6 = vector.broadcast %cst : f32 to vector<1x16x16x128xf32>
    %7 = vector.shape_cast %5 : vector<1x1x16x1xi1> to vector<1x1x16x1xi1>
    %8 = vector.broadcast %7 : vector<1x1x16x1xi1> to vector<1x16x16x128xi1>
    %9 = arith.select %8, %6, %3 : vector<1x16x16x128xi1>, vector<1x16x16x128xf32>
    %c15_i32 = arith.constant 15 : i32
    %10 = tpu.dynamic_rotate %0 by %c15_i32 dim 2 : vector<1x16x16x128xf32>, i32 -> vector<1x16x16x128xf32>
    %c15_i32_6 = arith.constant 15 : i32
    %11 = vector.broadcast %c15_i32_6 : i32 to vector<1x1x16x1xi32>
    %12 = arith.cmpi sge, %1, %11 : vector<1x1x16x1xi32>
    %cst_7 = arith.constant 0.000000e+00 : f32
    %13 = vector.broadcast %cst_7 : f32 to vector<1x16x16x128xf32>
    %14 = vector.shape_cast %12 : vector<1x1x16x1xi1> to vector<1x1x16x1xi1>
    %15 = vector.broadcast %14 : vector<1x1x16x1xi1> to vector<1x16x16x128xi1>
    %16 = arith.select %15, %13, %10 : vector<1x16x16x128xi1>, vector<1x16x16x128xf32>
    %17 = vector.extract_strided_slice %2 {offsets = [0, 0], sizes = [1, 128], strides = [1, 1]} : vector<9x128xf32> to vector<1x128xf32>
    %18 = vector.shape_cast %17 : vector<1x128xf32> to vector<128xf32>
    %19 = vector.shape_cast %18 : vector<128xf32> to vector<1x1x1x128xf32>
    %20 = vector.broadcast %19 : vector<1x1x1x128xf32> to vector<1x16x16x128xf32>
    %21 = arith.mulf %9, %20 : vector<1x16x16x128xf32>
    %22 = vector.extract_strided_slice %2 {offsets = [1, 0], sizes = [1, 128], strides = [1, 1]} : vector<9x128xf32> to vector<1x128xf32>
    %23 = vector.shape_cast %22 : vector<1x128xf32> to vector<128xf32>
    %24 = vector.shape_cast %23 : vector<128xf32> to vector<1x1x1x128xf32>
    %25 = vector.broadcast %24 : vector<1x1x1x128xf32> to vector<1x16x16x128xf32>
    %26 = arith.mulf %0, %25 : vector<1x16x16x128xf32>
    %27 = arith.addf %21, %26 : vector<1x16x16x128xf32>
    %28 = vector.extract_strided_slice %2 {offsets = [2, 0], sizes = [1, 128], strides = [1, 1]} : vector<9x128xf32> to vector<1x128xf32>
    %29 = vector.shape_cast %28 : vector<1x128xf32> to vector<128xf32>
    %30 = vector.shape_cast %29 : vector<128xf32> to vector<1x1x1x128xf32>
    %31 = vector.broadcast %30 : vector<1x1x1x128xf32> to vector<1x16x16x128xf32>
    %32 = arith.mulf %16, %31 : vector<1x16x16x128xf32>
    %33 = arith.addf %27, %32 : vector<1x16x16x128xf32>
    %34 = vector.extract_strided_slice %2 {offsets = [3, 0], sizes = [1, 128], strides = [1, 1]} : vector<9x128xf32> to vector<1x128xf32>
    %35 = vector.shape_cast %34 : vector<1x128xf32> to vector<128xf32>
    %36 = vector.shape_cast %35 : vector<128xf32> to vector<1x1x1x128xf32>
    %37 = vector.broadcast %36 : vector<1x1x1x128xf32> to vector<1x16x16x128xf32>
    %38 = arith.mulf %9, %37 : vector<1x16x16x128xf32>
    %39 = vector.extract_strided_slice %2 {offsets = [4, 0], sizes = [1, 128], strides = [1, 1]} : vector<9x128xf32> to vector<1x128xf32>
    %40 = vector.shape_cast %39 : vector<1x128xf32> to vector<128xf32>
    %41 = vector.shape_cast %40 : vector<128xf32> to vector<1x1x1x128xf32>
    %42 = vector.broadcast %41 : vector<1x1x1x128xf32> to vector<1x16x16x128xf32>
    %43 = arith.mulf %0, %42 : vector<1x16x16x128xf32>
    %44 = arith.addf %38, %43 : vector<1x16x16x128xf32>
    %45 = vector.extract_strided_slice %2 {offsets = [5, 0], sizes = [1, 128], strides = [1, 1]} : vector<9x128xf32> to vector<1x128xf32>
    %46 = vector.shape_cast %45 : vector<1x128xf32> to vector<128xf32>
    %47 = vector.shape_cast %46 : vector<128xf32> to vector<1x1x1x128xf32>
    %48 = vector.broadcast %47 : vector<1x1x1x128xf32> to vector<1x16x16x128xf32>
    %49 = arith.mulf %16, %48 : vector<1x16x16x128xf32>
    %50 = arith.addf %44, %49 : vector<1x16x16x128xf32>
    %51 = vector.extract_strided_slice %2 {offsets = [6, 0], sizes = [1, 128], strides = [1, 1]} : vector<9x128xf32> to vector<1x128xf32>
    %52 = vector.shape_cast %51 : vector<1x128xf32> to vector<128xf32>
    %53 = vector.shape_cast %52 : vector<128xf32> to vector<1x1x1x128xf32>
    %54 = vector.broadcast %53 : vector<1x1x1x128xf32> to vector<1x16x16x128xf32>
    %55 = arith.mulf %9, %54 : vector<1x16x16x128xf32>
    %56 = vector.extract_strided_slice %2 {offsets = [7, 0], sizes = [1, 128], strides = [1, 1]} : vector<9x128xf32> to vector<1x128xf32>
    %57 = vector.shape_cast %56 : vector<1x128xf32> to vector<128xf32>
    %58 = vector.shape_cast %57 : vector<128xf32> to vector<1x1x1x128xf32>
    %59 = vector.broadcast %58 : vector<1x1x1x128xf32> to vector<1x16x16x128xf32>
    %60 = arith.mulf %0, %59 : vector<1x16x16x128xf32>
    %61 = arith.addf %55, %60 : vector<1x16x16x128xf32>
    %62 = vector.extract_strided_slice %2 {offsets = [8, 0], sizes = [1, 128], strides = [1, 1]} : vector<9x128xf32> to vector<1x128xf32>
    %63 = vector.shape_cast %62 : vector<1x128xf32> to vector<128xf32>
    %64 = vector.shape_cast %63 : vector<128xf32> to vector<1x1x1x128xf32>
    %65 = vector.broadcast %64 : vector<1x1x1x128xf32> to vector<1x16x16x128xf32>
    %66 = arith.mulf %16, %65 : vector<1x16x16x128xf32>
    %67 = arith.addf %61, %66 : vector<1x16x16x128xf32>
    %cst_8 = arith.constant 0.000000e+00 : f32
    %68 = vector.broadcast %cst_8 : f32 to vector<1x1x16x128xf32>
    %69 = vector.extract_strided_slice %33 {offsets = [0, 0, 0, 0], sizes = [1, 15, 16, 128], strides = [1, 1, 1, 1]} : vector<1x16x16x128xf32> to vector<1x15x16x128xf32>
    %70 = tpu.concatenate %68, %69 in 1 : vector<1x1x16x128xf32>, vector<1x15x16x128xf32> -> vector<1x16x16x128xf32>
    %71 = vector.extract_strided_slice %67 {offsets = [0, 1, 0, 0], sizes = [1, 15, 16, 128], strides = [1, 1, 1, 1]} : vector<1x16x16x128xf32> to vector<1x15x16x128xf32>
    %72 = tpu.concatenate %71, %68 in 1 : vector<1x15x16x128xf32>, vector<1x1x16x128xf32> -> vector<1x16x16x128xf32>
    %73 = arith.addf %70, %50 : vector<1x16x16x128xf32>
    %74 = arith.addf %73, %72 : vector<1x16x16x128xf32>
    %75 = vector.shape_cast %74 : vector<1x16x16x128xf32> to vector<256x128xf32>
    %76 = arith.truncf %75 : vector<256x128xf32> to vector<256x128xbf16>
    %c0_9 = arith.constant 0 : index
    %c0_10 = arith.constant 0 : index
    %77 = vector.load %arg6[%c0_9, %c0_10] : memref<128x128xbf16, #tpu.memory_space<vmem>>, vector<128x128xbf16>
    %cst_11 = arith.constant dense<0.000000e+00> : vector<256x128xf32>
    %78 = tpu.matmul %76, %77, %cst_11 {dimension_numbers = #tpu.dot_dimension_numbers<[1], [0], [0], [1], [0, 0, 1, 1], [], []>} : vector<256x128xbf16>, vector<128x128xbf16>, vector<256x128xf32> -> vector<256x128xf32>
    %c0_12 = arith.constant 0 : index
    %c0_13 = arith.constant 0 : index
    %79 = vector.load %arg3[%c0_12, %c0_13] : memref<1x128xf32, #tpu.memory_space<vmem>>, vector<1x128xf32>
    %80 = vector.shape_cast %79 : vector<1x128xf32> to vector<1x1x1x128xf32>
    %81 = vector.broadcast %80 : vector<1x1x1x128xf32> to vector<1x16x16x128xf32>
    %82 = arith.mulf %74, %81 : vector<1x16x16x128xf32>
    %c0_14 = arith.constant 0 : index
    %c0_15 = arith.constant 0 : index
    %83 = vector.load %arg4[%c0_14, %c0_15] : memref<1x128xf32, #tpu.memory_space<vmem>>, vector<1x128xf32>
    %84 = vector.shape_cast %83 : vector<1x128xf32> to vector<1x1x1x128xf32>
    %85 = vector.broadcast %84 : vector<1x1x1x128xf32> to vector<1x16x16x128xf32>
    %86 = arith.addf %82, %85 : vector<1x16x16x128xf32>
    %c0_16 = arith.constant 0 : index
    %c0_17 = arith.constant 0 : index
    %87 = vector.load %arg5[%c0_16, %c0_17] : memref<9x128xf32, #tpu.memory_space<vmem>>, vector<9x128xf32>
    %c1_i32_18 = arith.constant 1 : i32
    %88 = tpu.dynamic_rotate %86 by %c1_i32_18 dim 2 : vector<1x16x16x128xf32>, i32 -> vector<1x16x16x128xf32>
    %c1_i32_19 = arith.constant 1 : i32
    %89 = vector.broadcast %c1_i32_19 : i32 to vector<1x1x16x1xi32>
    %90 = arith.cmpi slt, %1, %89 : vector<1x1x16x1xi32>
    %cst_20 = arith.constant 0.000000e+00 : f32
    %91 = vector.broadcast %cst_20 : f32 to vector<1x16x16x128xf32>
    %92 = vector.shape_cast %90 : vector<1x1x16x1xi1> to vector<1x1x16x1xi1>
    %93 = vector.broadcast %92 : vector<1x1x16x1xi1> to vector<1x16x16x128xi1>
    %94 = arith.select %93, %91, %88 : vector<1x16x16x128xi1>, vector<1x16x16x128xf32>
    %c15_i32_21 = arith.constant 15 : i32
    %95 = tpu.dynamic_rotate %86 by %c15_i32_21 dim 2 : vector<1x16x16x128xf32>, i32 -> vector<1x16x16x128xf32>
    %c15_i32_22 = arith.constant 15 : i32
    %96 = vector.broadcast %c15_i32_22 : i32 to vector<1x1x16x1xi32>
    %97 = arith.cmpi sge, %1, %96 : vector<1x1x16x1xi32>
    %cst_23 = arith.constant 0.000000e+00 : f32
    %98 = vector.broadcast %cst_23 : f32 to vector<1x16x16x128xf32>
    %99 = vector.shape_cast %97 : vector<1x1x16x1xi1> to vector<1x1x16x1xi1>
    %100 = vector.broadcast %99 : vector<1x1x16x1xi1> to vector<1x16x16x128xi1>
    %101 = arith.select %100, %98, %95 : vector<1x16x16x128xi1>, vector<1x16x16x128xf32>
    %102 = vector.extract_strided_slice %87 {offsets = [0, 0], sizes = [1, 128], strides = [1, 1]} : vector<9x128xf32> to vector<1x128xf32>
    %103 = vector.shape_cast %102 : vector<1x128xf32> to vector<128xf32>
    %104 = vector.shape_cast %103 : vector<128xf32> to vector<1x1x1x128xf32>
    %105 = vector.broadcast %104 : vector<1x1x1x128xf32> to vector<1x16x16x128xf32>
    %106 = arith.mulf %94, %105 : vector<1x16x16x128xf32>
    %107 = vector.extract_strided_slice %87 {offsets = [1, 0], sizes = [1, 128], strides = [1, 1]} : vector<9x128xf32> to vector<1x128xf32>
    %108 = vector.shape_cast %107 : vector<1x128xf32> to vector<128xf32>
    %109 = vector.shape_cast %108 : vector<128xf32> to vector<1x1x1x128xf32>
    %110 = vector.broadcast %109 : vector<1x1x1x128xf32> to vector<1x16x16x128xf32>
    %111 = arith.mulf %86, %110 : vector<1x16x16x128xf32>
    %112 = arith.addf %106, %111 : vector<1x16x16x128xf32>
    %113 = vector.extract_strided_slice %87 {offsets = [2, 0], sizes = [1, 128], strides = [1, 1]} : vector<9x128xf32> to vector<1x128xf32>
    %114 = vector.shape_cast %113 : vector<1x128xf32> to vector<128xf32>
    %115 = vector.shape_cast %114 : vector<128xf32> to vector<1x1x1x128xf32>
    %116 = vector.broadcast %115 : vector<1x1x1x128xf32> to vector<1x16x16x128xf32>
    %117 = arith.mulf %101, %116 : vector<1x16x16x128xf32>
    %118 = arith.addf %112, %117 : vector<1x16x16x128xf32>
    %119 = vector.extract_strided_slice %87 {offsets = [3, 0], sizes = [1, 128], strides = [1, 1]} : vector<9x128xf32> to vector<1x128xf32>
    %120 = vector.shape_cast %119 : vector<1x128xf32> to vector<128xf32>
    %121 = vector.shape_cast %120 : vector<128xf32> to vector<1x1x1x128xf32>
    %122 = vector.broadcast %121 : vector<1x1x1x128xf32> to vector<1x16x16x128xf32>
    %123 = arith.mulf %94, %122 : vector<1x16x16x128xf32>
    %124 = vector.extract_strided_slice %87 {offsets = [4, 0], sizes = [1, 128], strides = [1, 1]} : vector<9x128xf32> to vector<1x128xf32>
    %125 = vector.shape_cast %124 : vector<1x128xf32> to vector<128xf32>
    %126 = vector.shape_cast %125 : vector<128xf32> to vector<1x1x1x128xf32>
    %127 = vector.broadcast %126 : vector<1x1x1x128xf32> to vector<1x16x16x128xf32>
    %128 = arith.mulf %86, %127 : vector<1x16x16x128xf32>
    %129 = arith.addf %123, %128 : vector<1x16x16x128xf32>
    %130 = vector.extract_strided_slice %87 {offsets = [5, 0], sizes = [1, 128], strides = [1, 1]} : vector<9x128xf32> to vector<1x128xf32>
    %131 = vector.shape_cast %130 : vector<1x128xf32> to vector<128xf32>
    %132 = vector.shape_cast %131 : vector<128xf32> to vector<1x1x1x128xf32>
    %133 = vector.broadcast %132 : vector<1x1x1x128xf32> to vector<1x16x16x128xf32>
    %134 = arith.mulf %101, %133 : vector<1x16x16x128xf32>
    %135 = arith.addf %129, %134 : vector<1x16x16x128xf32>
    %136 = vector.extract_strided_slice %87 {offsets = [6, 0], sizes = [1, 128], strides = [1, 1]} : vector<9x128xf32> to vector<1x128xf32>
    %137 = vector.shape_cast %136 : vector<1x128xf32> to vector<128xf32>
    %138 = vector.shape_cast %137 : vector<128xf32> to vector<1x1x1x128xf32>
    %139 = vector.broadcast %138 : vector<1x1x1x128xf32> to vector<1x16x16x128xf32>
    %140 = arith.mulf %94, %139 : vector<1x16x16x128xf32>
    %141 = vector.extract_strided_slice %87 {offsets = [7, 0], sizes = [1, 128], strides = [1, 1]} : vector<9x128xf32> to vector<1x128xf32>
    %142 = vector.shape_cast %141 : vector<1x128xf32> to vector<128xf32>
    %143 = vector.shape_cast %142 : vector<128xf32> to vector<1x1x1x128xf32>
    %144 = vector.broadcast %143 : vector<1x1x1x128xf32> to vector<1x16x16x128xf32>
    %145 = arith.mulf %86, %144 : vector<1x16x16x128xf32>
    %146 = arith.addf %140, %145 : vector<1x16x16x128xf32>
    %147 = vector.extract_strided_slice %87 {offsets = [8, 0], sizes = [1, 128], strides = [1, 1]} : vector<9x128xf32> to vector<1x128xf32>
    %148 = vector.shape_cast %147 : vector<1x128xf32> to vector<128xf32>
    %149 = vector.shape_cast %148 : vector<128xf32> to vector<1x1x1x128xf32>
    %150 = vector.broadcast %149 : vector<1x1x1x128xf32> to vector<1x16x16x128xf32>
    %151 = arith.mulf %101, %150 : vector<1x16x16x128xf32>
    %152 = arith.addf %146, %151 : vector<1x16x16x128xf32>
    %cst_24 = arith.constant 0.000000e+00 : f32
    %153 = vector.broadcast %cst_24 : f32 to vector<1x1x16x128xf32>
    %154 = vector.extract_strided_slice %118 {offsets = [0, 0, 0, 0], sizes = [1, 15, 16, 128], strides = [1, 1, 1, 1]} : vector<1x16x16x128xf32> to vector<1x15x16x128xf32>
    %155 = tpu.concatenate %153, %154 in 1 : vector<1x1x16x128xf32>, vector<1x15x16x128xf32> -> vector<1x16x16x128xf32>
    %156 = vector.extract_strided_slice %152 {offsets = [0, 1, 0, 0], sizes = [1, 15, 16, 128], strides = [1, 1, 1, 1]} : vector<1x16x16x128xf32> to vector<1x15x16x128xf32>
    %157 = tpu.concatenate %156, %153 in 1 : vector<1x15x16x128xf32>, vector<1x1x16x128xf32> -> vector<1x16x16x128xf32>
    %158 = arith.addf %155, %135 : vector<1x16x16x128xf32>
    %159 = arith.addf %158, %157 : vector<1x16x16x128xf32>
    %160 = vector.shape_cast %159 : vector<1x16x16x128xf32> to vector<256x128xf32>
    %161 = arith.truncf %160 : vector<256x128xf32> to vector<256x128xbf16>
    %c0_25 = arith.constant 0 : index
    %c0_26 = arith.constant 0 : index
    %162 = vector.load %arg7[%c0_25, %c0_26] : memref<128x128xbf16, #tpu.memory_space<vmem>>, vector<128x128xbf16>
    %cst_27 = arith.constant dense<0.000000e+00> : vector<256x128xf32>
    %163 = tpu.matmul %161, %162, %cst_27 {dimension_numbers = #tpu.dot_dimension_numbers<[1], [0], [0], [1], [0, 0, 1, 1], [], []>} : vector<256x128xbf16>, vector<128x128xbf16>, vector<256x128xf32> -> vector<256x128xf32>
    %164 = arith.addf %78, %163 : vector<256x128xf32>
    %c0_28 = arith.constant 0 : index
    %c0_29 = arith.constant 0 : index
    %165 = vector.load %arg8[%c0_28, %c0_29] : memref<1x128xf32, #tpu.memory_space<vmem>>, vector<1x128xf32>
    %166 = vector.broadcast %165 : vector<1x128xf32> to vector<256x128xf32>
    %167 = arith.addf %164, %166 : vector<256x128xf32>
    %168 = vector.shape_cast %0 : vector<1x16x16x128xf32> to vector<256x128xf32>
    %169 = arith.addf %168, %167 : vector<256x128xf32>
    %cst_30 = arith.constant 0.000000e+00 : f32
    %170 = vector.broadcast %cst_30 : f32 to vector<256x128xf32>
    %171 = arith.maximumf %169, %170 : vector<256x128xf32>
    %172 = vector.shape_cast %171 : vector<256x128xf32> to vector<1x256x128xf32>
    %c0_31 = arith.constant 0 : index
    %c0_32 = arith.constant 0 : index
    %173 = vector.load %arg9[%c0_31, %c0_32] : memref<1x128xf32, #tpu.memory_space<vmem>>, vector<1x128xf32>
    %174 = vector.shape_cast %173 : vector<1x128xf32> to vector<1x1x128xf32>
    %175 = vector.broadcast %174 : vector<1x1x128xf32> to vector<1x256x128xf32>
    %176 = arith.mulf %172, %175 : vector<1x256x128xf32>
    %cst_33 = arith.constant dense<0.000000e+00> : vector<1x256xf32>
    %177 = vector.multi_reduction <add>, %176, %cst_33 [2] : vector<1x256x128xf32> to vector<1x256xf32>
    %178 = vector.shape_cast %177 : vector<1x256xf32> to vector<1x256x1xf32>
    %cst_34 = arith.constant 0.000000e+00 : f32
    %179 = vector.broadcast %cst_34 : f32 to vector<1x256x1xf32>
    %180 = arith.subf %179, %178 : vector<1x256x1xf32>
    %181 = math.exp %180 : vector<1x256x1xf32>
    %cst_35 = arith.constant 1.000000e+00 : f32
    %182 = vector.broadcast %cst_35 : f32 to vector<1x256x1xf32>
    %183 = arith.addf %182, %181 : vector<1x256x1xf32>
    %184 = tpu.reciprocal %183 {approx = true} : vector<1x256x1xf32> -> vector<1x256x1xf32>
    %cst_36 = arith.constant dense<0.000000e+00> : vector<1x128xf32>
    %185 = vector.multi_reduction <add>, %172, %cst_36 [1] : vector<1x256x128xf32> to vector<1x128xf32>
    %cst_37 = arith.constant 2.560000e+02 : f32
    %186 = vector.broadcast %cst_37 : f32 to vector<1x128xf32>
    %187 = arith.divf %185, %186 : vector<1x128xf32>
    %188 = tpu.iota {dimensions = array<i32: 1>} : vector<1x128xi32>
    %cst_38 = arith.constant 0.000000e+00 : f32
    %189 = vector.broadcast %cst_38 : f32 to vector<1x128xf32>
    %c1_i32_39 = arith.constant 1 : i32
    %190 = tpu.dynamic_rotate %187 by %c1_i32_39 dim 1 : vector<1x128xf32>, i32 -> vector<1x128xf32>
    %c1_i32_40 = arith.constant 1 : i32
    %191 = vector.broadcast %c1_i32_40 : i32 to vector<1x128xi32>
    %192 = arith.cmpi slt, %188, %191 : vector<1x128xi32>
    %cst_41 = arith.constant 0.000000e+00 : f32
    %193 = vector.broadcast %cst_41 : f32 to vector<1x128xf32>
    %194 = arith.select %192, %193, %190 : vector<1x128xi1>, vector<1x128xf32>
    %c0_42 = arith.constant 0 : index
    %c0_43 = arith.constant 0 : index
    %195 = vector.load %arg10[%c0_42, %c0_43] : memref<3x128xf32, #tpu.memory_space<vmem>>, vector<1x128xf32>
    %196 = vector.shape_cast %195 : vector<1x128xf32> to vector<128xf32>
    %197 = vector.shape_cast %196 : vector<128xf32> to vector<1x128xf32>
    %198 = arith.mulf %197, %194 : vector<1x128xf32>
    %199 = arith.addf %189, %198 : vector<1x128xf32>
    %c1 = arith.constant 1 : index
    %c0_44 = arith.constant 0 : index
    %200 = vector.load %arg10[%c1, %c0_44] : memref<3x128xf32, #tpu.memory_space<vmem>>, vector<1x128xf32>
    %201 = vector.shape_cast %200 : vector<1x128xf32> to vector<128xf32>
    %202 = vector.shape_cast %201 : vector<128xf32> to vector<1x128xf32>
    %203 = arith.mulf %202, %187 : vector<1x128xf32>
    %204 = arith.addf %199, %203 : vector<1x128xf32>
    %c127_i32 = arith.constant 127 : i32
    %205 = tpu.dynamic_rotate %187 by %c127_i32 dim 1 : vector<1x128xf32>, i32 -> vector<1x128xf32>
    %c127_i32_45 = arith.constant 127 : i32
    %206 = vector.broadcast %c127_i32_45 : i32 to vector<1x128xi32>
    %207 = arith.cmpi sge, %188, %206 : vector<1x128xi32>
    %cst_46 = arith.constant 0.000000e+00 : f32
    %208 = vector.broadcast %cst_46 : f32 to vector<1x128xf32>
    %209 = arith.select %207, %208, %205 : vector<1x128xi1>, vector<1x128xf32>
    %c2 = arith.constant 2 : index
    %c0_47 = arith.constant 0 : index
    %210 = vector.load %arg10[%c2, %c0_47] : memref<3x128xf32, #tpu.memory_space<vmem>>, vector<1x128xf32>
    %211 = vector.shape_cast %210 : vector<1x128xf32> to vector<128xf32>
    %212 = vector.shape_cast %211 : vector<128xf32> to vector<1x128xf32>
    %213 = arith.mulf %212, %209 : vector<1x128xf32>
    %214 = arith.addf %204, %213 : vector<1x128xf32>
    %cst_48 = arith.constant 0.000000e+00 : f32
    %215 = vector.broadcast %cst_48 : f32 to vector<1x128xf32>
    %216 = arith.subf %215, %214 : vector<1x128xf32>
    %217 = math.exp %216 : vector<1x128xf32>
    %cst_49 = arith.constant 1.000000e+00 : f32
    %218 = vector.broadcast %cst_49 : f32 to vector<1x128xf32>
    %219 = arith.addf %218, %217 : vector<1x128xf32>
    %220 = tpu.reciprocal %219 {approx = true} : vector<1x128xf32> -> vector<1x128xf32>
    %221 = vector.shape_cast %220 : vector<1x128xf32> to vector<1x1x128xf32>
    %222 = vector.broadcast %184 : vector<1x256x1xf32> to vector<1x256x128xf32>
    %223 = vector.broadcast %221 : vector<1x1x128xf32> to vector<1x256x128xf32>
    %224 = arith.addf %222, %223 : vector<1x256x128xf32>
    %225 = arith.mulf %172, %224 : vector<1x256x128xf32>
    %226 = vector.shape_cast %225 : vector<1x256x128xf32> to vector<1x16x16x128xf32>
    %c0_50 = arith.constant 0 : index
    %c0_51 = arith.constant 0 : index
    %c0_52 = arith.constant 0 : index
    %c0_53 = arith.constant 0 : index
    %227 = vector.load %arg11[%c0_50, %c0_51, %c0_52, %c0_53] : memref<1x16x16x128xf32, #tpu.memory_space<vmem>>, vector<1x16x16x128xf32>
    tpu.vector_store %arg11[%c0_50, %c0_51, %c0_52, %c0_53], %226 {strides = array<i32>} : memref<1x16x16x128xf32, #tpu.memory_space<vmem>>, vector<1x16x16x128xf32>,
    return
  }
  func.func @transform_0(%arg0: i32) -> (i32, i32, i32, i32) {
    %c0_i32 = arith.constant 0 : i32
    %c0_i32_0 = arith.constant 0 : i32
    %c0_i32_1 = arith.constant 0 : i32
    %c0_i32_2 = arith.constant 0 : i32
    return %arg0, %c0_i32, %c0_i32_0, %c0_i32_1 : i32, i32, i32, i32
  }
  func.func @transform_1(%arg0: i32) -> (i32, i32) {
    %c0_i32 = arith.constant 0 : i32
    %c0_i32_0 = arith.constant 0 : i32
    %c0_i32_1 = arith.constant 0 : i32
    return %c0_i32, %c0_i32_0 : i32, i32
  }
  func.func @transform_2(%arg0: i32) -> (i32, i32) {
    %c0_i32 = arith.constant 0 : i32
    %c0_i32_0 = arith.constant 0 : i32
    %c0_i32_1 = arith.constant 0 : i32
    return %c0_i32, %c0_i32_0 : i32, i32
  }
  func.func @transform_3(%arg0: i32) -> (i32, i32) {
    %c0_i32 = arith.constant 0 : i32
    %c0_i32_0 = arith.constant 0 : i32
    %c0_i32_1 = arith.constant 0 : i32
    return %c0_i32, %c0_i32_0 : i32, i32
  }
  func.func @transform_4(%arg0: i32) -> (i32, i32) {
    %c0_i32 = arith.constant 0 : i32
    %c0_i32_0 = arith.constant 0 : i32
    %c0_i32_1 = arith.constant 0 : i32
    return %c0_i32, %c0_i32_0 : i32, i32
  }
  func.func @transform_5(%arg0: i32) -> (i32, i32) {
    %c0_i32 = arith.constant 0 : i32
    %c0_i32_0 = arith.constant 0 : i32
    %c0_i32_1 = arith.constant 0 : i32
    return %c0_i32, %c0_i32_0 : i32, i32
  }
  func.func @transform_6(%arg0: i32) -> (i32, i32) {
    %c0_i32 = arith.constant 0 : i32
    %c0_i32_0 = arith.constant 0 : i32
    %c0_i32_1 = arith.constant 0 : i32
    return %c0_i32, %c0_i32_0 : i32, i32
  }
  func.func @transform_7(%arg0: i32) -> (i32, i32) {
    %c0_i32 = arith.constant 0 : i32
    %c0_i32_0 = arith.constant 0 : i32
    %c0_i32_1 = arith.constant 0 : i32
    return %c0_i32, %c0_i32_0 : i32, i32
  }
  func.func @transform_8(%arg0: i32) -> (i32, i32) {
    %c0_i32 = arith.constant 0 : i32
    %c0_i32_0 = arith.constant 0 : i32
    %c0_i32_1 = arith.constant 0 : i32
    return %c0_i32, %c0_i32_0 : i32, i32
  }
  func.func @transform_9(%arg0: i32) -> (i32, i32) {
    %c0_i32 = arith.constant 0 : i32
    %c0_i32_0 = arith.constant 0 : i32
    %c0_i32_1 = arith.constant 0 : i32
    return %c0_i32, %c0_i32_0 : i32, i32
  }
  func.func @transform_10(%arg0: i32) -> (i32, i32, i32, i32) {
    %c0_i32 = arith.constant 0 : i32
    %c0_i32_0 = arith.constant 0 : i32
    %c0_i32_1 = arith.constant 0 : i32
    %c0_i32_2 = arith.constant 0 : i32
    return %arg0, %c0_i32, %c0_i32_0, %c0_i32_1 : i32, i32, i32, i32
  }
}

</mosaic_0001>

<bundles_post_ra>
// kernel: feb3_forward.1
= control target key start
LH: loop header
LB: loop body
LE: loop exit
PB: predicated region body
PF: predicated region fallthrough
CT: control target
= control target key end

     0   :  { %15 = vsyncpa [#allocation3], 0  ;;  %s6480_s0 = inlined_call_operand.hbm [shape: f32[2,16,16,128], index: 0, kind: input, shape index: {}]   ;;  %s6481_s1 = inlined_call_operand.vmem [shape: f32[9,128], index: 1, kind: input, shape index: {}]   ;;  %s6482_s2 = inlined_call_operand.vmem [shape: f32[1,128], index: 2, kind: input, shape index: {}]   ;;  %s6483_s3 = inlined_call_operand.vmem [shape: f32[1,128], index: 3, kind: input, shape index: {}]   ;;  %s6484_s4 = inlined_call_operand.vmem [shape: f32[9,128], index: 4, kind: input, shape index: {}]   ;;  %s6485_s5 = inlined_call_operand.vmem [shape: bf16[128,128], index: 5, kind: input, shape index: {}]   ;;  %s6486_s6 = inlined_call_operand.vmem [shape: bf16[128,128], index: 6, kind: input, shape index: {}]   ;;  %s6487_s7 = inlined_call_operand.vmem [shape: f32[1,128], index: 7, kind: input, shape index: {}]   ;;  %s6488_s8 = inlined_call_operand.vmem [shape: f32[1,128], index: 8, kind: input, shape index: {}]   ;;  %s6489_s9 = inlined_call_operand.vmem [shape: f32[3,128], index: 9, kind: input, shape index: {}]   ;;  %s6490_s10 = inlined_call_operand.hbm [shape: f32[2,16,16,128], index: 10, kind: output, shape index: {}]  }
   0x1   :  { %17 = vsyncpa [#allocation3 + $0x1], 0 }
   0x2   :  { %18 = vsyncpa [#allocation4], 0 }
   0x3   :  { %20 = vsyncpa [#allocation4 + $0x1], 0  ;;  %s3420_s13 = smov 0   ;;  %s3422_s14 = smov 0  }
   0x4   :  { %s3424_s15 = smov 0   ;;  %s3426_s16 = smov 0  }
   0x5 LB: > { %6793 = sst [smem:[#allocation8_spill]] %s3352_s15  ;;  %s3441_s17 = sadd.s32 4294967295, %s3356_s16   ;;  %s3356_s16 = sphi %s3426_s16, %s7240_s16   ;;  %s3352_s15 = sphi %s3424_s15, %s7242_s15   ;;  %s3348_s14 = sphi %s3422_s14, %s7244_s14   ;;  %s3344_s13 = sphi %s3420_s13, %s7243_s13  }
   0x6   : > { %s2907_s18 = sadd.s32 4294967294, %s3356_s16   ;;  %s3445_s19 = sadd.s32 1, %s3356_s16  }
   0x7   : > { %6794 = sst [smem:[#allocation9_spill]] %s3445_s19  ;;  %s33_s20 = sadd.s32 1, %s3352_s15 }
   0x8   : > { %s30_s21 = ssub.s32 %s3356_s16, %s3445_s19  ;;  %p40_p0 = scmp.ne.s32.totalorder %s3352_s15, %s3348_s14 }
   0x9   : > { %p31_p1 = scmp.eq.s32.totalorder %s30_s21, 0  ;;  %p41_p2 = scmp.eq.s32.totalorder %s3356_s16, 0 }
   0xa   : > { %p46_p3 = scmp.ne.s32.totalorder %s3348_s14, %s3344_s13  ;;  %p47_p4 = scmp.eq.s32.totalorder %s3441_s17, 0 }
   0xb   : > { %s3457_s22 = scalar_select %p31_p1, %s3352_s15, %s33_s20  }
   0xc   : > { %p3459_p5 = por %p41_p2, %p40_p0  ;;  %p3463_p6 = por %p47_p4, %p46_p3 }
   0xd   : > { %6795 = sst [smem:[#allocation10_spill]] %s3457_s22  ;;  %p259_p7 = scmp.eq.s32.totalorder %s3441_s17, 1 }
   0xe   : > { %p265_p8 = scmp.eq.s32.totalorder %s2907_s18, 1  ;;  %p3031_p10 = scmp.lt.s32.totalorder %s3356_s16, 2 }
   0xf   : > { %p3470_p11 = por %p259_p7, %p40_p0  ;;  %s312_s27 = sand.u32 1, %s3352_s15  }
  0x10   : > { %p3474_p12 = por %p265_p8, %p46_p3  ;;  %s2985_s28 = sshll.u32 %s3356_s16, 8 }
  0x11   : > { %s2910_s29 = sshll.u32 %s312_s27, 8  ;;  %s321_s12 = scalar_lea.hbm %s6480_s0, %s2985_s28 }
  0x12   : > { %s6799_s26 = scalar_select %p3474_p12, 1, 0 }
  0x13   : > { %s322_s20 = sshll.u32 %s321_s12, 4  ;;  %s316_s18 = scalar_lea.vmem [#allocation2], %s2910_s29  ;;  %s323_s20 = int_to_ptr.hbm [resolvable:$true] %s322_s20 }
  0x14   : > { %6800 = sst [smem:[#allocation11_spill]] %s6799_s26  ;;  %s324_s21 = sshll.u32 %s316_s18, 4  ;;  %s325_s21 = int_to_ptr.vmem [resolvable:$true] %s324_s21 }
  0x15   : > { %p3485_p13 = pnand %p3031_p10, %p3459_p5  ;;  %p2913_p0 = scmp.ge.s32.totalorder %s3356_s16, 1 }
  0x16   : > { %p332_p1 = scmp.lt.s32.totalorder %s3356_s16, 3  ;;  %s313_s15 = scalar_lea.sflag [#allocation3], %s312_s27 }
  0x17   : > { %s3260_s19 = sshra.s32 %s323_s20, 4  ;;  %p3264_p3 = pneg %p3485_p13  ;;  %s3261_s19 = int_to_ptr.hbm [resolvable:$true] %s3260_s19 }
  0x18   : > { %s3262_s26 = scalar_lea.hbm %s3261_s19, 256  ;;  %s3267_s23 = scalar_lea.hbm %s6480_s0, 512 }
  0x19   : > { %p3263_p2 = scmp.ne.s32.totalorder %s3261_s19, %s3262_s26  ;;  %p3268_p5 = scmp.lt.s32.totalorder %s3261_s19, %s6480_s0 }
  0x1a   : > { %p3269_p8 = scmp.lt.s32.totalorder %s3267_s23, %s3262_s26 }
  0x1b   : > { %p3265_p4 = pnand %p3264_p3, %p3263_p2 }
  0x1c   : > { %p3270_p10 = por %p3269_p8, %p3268_p5 }
  0x1d   : > { %p3266_p7 = pneg %p3265_p4 }
  0x1f   : > { %p3271_p9 = pnand %p3270_p10, %p3266_p7 }
  0x21   : > { %3274 = shalt.err (!%p3271_p9)
}
  0x22   : > { %s3358_s27 = smov 128   ;;  %s3359_s12 = smov 8  }
  0x23   : > { %3026 = dma.hbm_to_vmem [thread:$0]  (!%p3485_p13), %s323_s20, 4096, %s325_s21, %s313_s15, %s3358_s27, %s3358_s27, %s3359_s12  }
  0x24   : > { %p333_p2 = pnand %p2913_p0, %p332_p1 }
  0x26   : > { %336 = sbr.rel (%p333_p2) target bundleno = 799 (0x31f), region = 60 }
  0x2b   : > { %s3506_s18 = sand.u32 1, %s3348_s14  }
  0x2c   : > { %s2914_s19 = sshll.u32 %s3506_s18, 8  ;;  %s339_s26 = scalar_lea.sflag [#allocation3], %s3506_s18 }
  0x2d   : > { %s3512_s28 = scalar_lea.vmem [#allocation2], %s2914_s19 }
  0x2e   : > { %3335 = dma.done.wait (%p3463_p6), %s339_s26, 4096  }
  0x2f   : > { %3337 = vsyncadd (%p3463_p6), %s339_s26, 4294963200  ;;  %v6495_v0 = vlaneseq  ;;  %v3001_v2 = vld [vmem:[%s6486_s6 + $0x38] sm:$0xff]  ;;  %v3000_v4 = vld [vmem:[%s6486_s6 + $0x30] sm:$0xff]  ;;  %s3362_s24 = smov 1   ;;  %s6360_s26 = scalar_lea.vmem [#allocation5], %s2914_s19 }
  0x30   : > { %v2993_v3 = vld [vmem:[%s6485_s5 + $0x38] sm:$0xff]  ;;  %2066 = vmatpush.bf16.msra.mxu0 %v3001_v2  ;;  %v2992_v5 = vld [vmem:[%s6485_s5 + $0x30] sm:$0xff]  ;;  %3003 = vmatpush.bf16.msra.mxu2 %v3001_v2  ;;  %v2999_v7 = vld [vmem:[%s6486_s6 + $0x28] sm:$0xff]  ;;  %s3002_s19 = sshll.u32 %s3441_s17, 8  ;;  %s2831_s20 = sshll.u32 %s6360_s26, 4  ;;  %s2832_s20 = int_to_ptr.vmem [resolvable:$true] %s2831_s20 }
  0x31   : > { %v3519_v1 = vshrl.u32 %v6495_v0, 7  ;;  %2203 = vmatpush.bf16.msra.mxu1 %v2993_v3  ;;  %3011 = vmatpush.bf16.msra.mxu3 %v2993_v3  ;;  %v2991_v8 = vld [vmem:[%s6485_s5 + $0x28] sm:$0xff]  ;;  %v3543_v9 = vld [vmem:[%s3512_s28] sm:$0xff]  ;;  %v3551_v11 = vld [vmem:[%s3512_s28 + $0x10] sm:$0xff]  ;;  %s2830_s22 = scalar_lea.hbm %s6490_s10, %s3002_s19  ;;  %s3310_s11 = scalar_lea.hbm %s6490_s10, 512 }
  0x32   : > { %v3546_v10 = vld [vmem:[%s3512_s28 + $0x8] sm:$0xff]  ;;  %6804 = vst [vmem:[#allocation14_spill] sm:$0xff] %v3551_v11  ;;  %v3554_v12 = vld [vmem:[%s3512_s28 + $0x18] sm:$0xff]  ;;  %v3557_v13 = vld [vmem:[%s3512_s28 + $0x20] sm:$0xff]  ;;  %v417_v14 = vrot.slane %v3543_v9, 7  ;;  %v418_v17 = vrot.slane %v3551_v11, 7 }
  0x33   : > { %6802 = vst [vmem:[#allocation12_spill] sm:$0xff] %v3519_v1  ;;  %v3534_v6 = vadd.s32 8, %v3519_v1  ;;  %vm449_vm0 = vcmp.lt.s32.totalorder %v3519_v1, 1  ;;  %vm551_vm1 = vcmp.lt.s32.totalorder %v3519_v1, 7  ;;  %v433_v15 = vrot.slane %v3546_v10, 7  ;;  %v3563_v16 = vld [vmem:[%s3512_s28 + $0x28] sm:$0xff] }
  0x34   : > { %2067 = vmatpush.bf16.msra.mxu0 %v3000_v4  ;;  %6805 = vst [vmem:[#allocation15_spill] sm:$0xff] %v3554_v12  ;;  %3004 = vmatpush.bf16.msra.mxu2 %v3000_v4  ;;  %v419_v18 = vrot.slane %v3557_v13, 7  ;;  %v519_v19 = vrot.slane %v3543_v9, 1  ;;  %v434_v20 = vrot.slane %v3554_v12, 7  ;;  %v435_v21 = vrot.slane %v3563_v16, 7  ;;  %v2998_v28 = vld [vmem:[%s6486_s6 + $0x20] sm:$0xff] }
  0x35   : > { %6803 = vst [vmem:[#allocation13_spill] sm:$0xff] %v3534_v6  ;;  %2204 = vmatpush.bf16.msra.mxu1 %v2992_v5  ;;  %vm585_vm2 = vcmp.ge.s32.totalorder %v3534_v6, 15  ;;  %3012 = vmatpush.bf16.msra.mxu3 %v2992_v5  ;;  %v3572_v22 = vsel %vm449_vm0, %v417_v14, %v433_v15  ;;  %v466_v23 = vsel %vm449_vm0, %v433_v15, %v417_v14  ;;  %v520_v25 = vrot.slane %v3551_v11, 1  ;;  %v2990_v29 = vld [vmem:[%s6485_s5 + $0x20] sm:$0xff]  ;;  %v2997_v47 = vld [vmem:[%s6486_s6 + $0x18] sm:$0xff]  ;;  %v2996_v4 = vld [vmem:[%s6486_s6 + $0x10] sm:$0xff] }
  0x36   : > { %6806 = vst [vmem:[#allocation16_spill] sm:$0xff] %v3557_v13  ;;  %v487_v24 = vsel %vm449_vm0, 0.0, %v466_v23  ;;  %v521_v26 = vrot.slane %v3557_v13, 1  ;;  %v535_v27 = vrot.slane %v3546_v10, 1  ;;  %v3589_v30 = vsel %vm449_vm0, %v418_v17, %v434_v20  ;;  %v415_v34 = vld [vmem:[%s6481_s1] sm:$0xff]  ;;  %v2989_v48 = vld [vmem:[%s6485_s5 + $0x18] sm:$0xff] }
  0x37   : > { %6807 = vst [vmem:[#allocation17_spill] sm:$0xff] %v3563_v16  ;;  %v3593_v31 = vsel %vm449_vm0, %v419_v18, %v435_v21  ;;  %v467_v32 = vsel %vm449_vm0, %v434_v20, %v418_v17  ;;  %v536_v33 = vrot.slane %v3554_v12, 1  ;;  %v468_v35 = vsel %vm449_vm0, %v435_v21, %v419_v18  ;;  %v3672_v61 = vld [vmem:[%s6484_s4] sm:$0xff]  ;;  %v2988_v5 = vld [vmem:[%s6485_s5 + $0x10] sm:$0xff]  ;;  %s2833_s21 = sshll.u32 %s2830_s22, 4  ;;  %s2834_s21 = int_to_ptr.hbm [resolvable:$true] %s2833_s21 }
  0x38   : > { %2068 = vmatpush.bf16.msra.mxu0 %v2999_v7  ;;  %6808 = vst [vmem:[#allocation18_spill] sm:$0xff] %v3593_v31  ;;  %3005 = vmatpush.bf16.msra.mxu2 %v2999_v7  ;;  %v3605_v36 = vsel %vm449_vm0, 0.0, %v467_v32  ;;  %v537_v37 = vrot.slane %v3563_v16, 1  ;;  %v552_v38 = vsel %vm551_vm1, %v519_v19, %v535_v27  ;;  %v3612_v39 = vsel %vm449_vm0, 0.0, %v468_v35 }
  0x39   : > { %2205 = vmatpush.bf16.msra.mxu1 %v2991_v8  ;;  %3013 = vmatpush.bf16.msra.mxu3 %v2991_v8  ;;  %6809 = vst [vmem:[#allocation19_spill] sm:$0xff] %v3612_v39  ;;  %v3616_v40 = vsel %vm551_vm1, %v520_v25, %v536_v33  ;;  %v568_v41 = vsel %vm551_vm1, %v535_v27, %v519_v19  ;;  %v3644_v50 = vperm.slane %v415_v34, 0  ;;  %v3646_v51 = vperm.slane %v415_v34, 1 }
  0x3a   : > { %v569_v42 = vsel %vm551_vm1, %v536_v33, %v520_v25  ;;  %v3624_v43 = vsel %vm551_vm1, %v521_v26, %v537_v37  ;;  %v570_v44 = vsel %vm551_vm1, %v537_v37, %v521_v26  ;;  %v591_v45 = vsel %vm585_vm2, 0.0, %v568_v41 }
  0x3b   : > { %6810 = vst [vmem:[#allocation20_spill] sm:$0xff] %v3624_v43  ;;  %v3632_v46 = vsel %vm585_vm2, 0.0, %v569_v42  ;;  %v3642_v49 = vsel %vm585_vm2, 0.0, %v570_v44  ;;  %v3648_v52 = vperm.slane %v415_v34, 2  ;;  %v3650_v53 = vperm.slane %v415_v34, 3 }
  0x3c   : > { %2069 = vmatpush.bf16.msra.mxu0 %v2998_v28  ;;  %6811 = vst [vmem:[#allocation21_spill] sm:$0xff] %v3642_v49  ;;  %3006 = vmatpush.bf16.msra.mxu2 %v2998_v28  ;;  %v3652_v54 = vperm.slane %v415_v34, 4  ;;  %v3654_v55 = vperm.slane %v415_v34, 5  ;;  %v3656_v56 = vperm.slane %v415_v34, 6  ;;  %v623_v57 = vmul.f32 %v3644_v50, %v487_v24 }
  0x3d   : > { %2206 = vmatpush.bf16.msra.mxu1 %v2990_v29  ;;  %6812 = vst [vmem:[#allocation22_spill] sm:$0xff] %v3644_v50  ;;  %3014 = vmatpush.bf16.msra.mxu3 %v2990_v29  ;;  %v624_v58 = vmul.f32 %v3644_v50, %v3572_v22  ;;  %v3663_v59 = vmul.f32 %v3644_v50, %v3605_v36  ;;  %v3695_v15 = vperm.slane %v415_v34, 7  ;;  %v3700_v20 = vperm.slane %v3672_v61, 3  ;;  %v2995_v29 = vld [vmem:[%s6486_s6 + $0x8] sm:$0xff] }
  0x3e   : > { %6813 = vst [vmem:[#allocation23_spill] sm:$0xff] %v3646_v51  ;;  %v3667_v60 = vmul.f32 %v3644_v50, %v3589_v30  ;;  %v654_v62 = vmul.f32 %v3646_v51, %v3543_v9  ;;  %v655_v63 = vmul.f32 %v3646_v51, %v3546_v10  ;;  %v715_v2 = vmul.f32 %v3648_v52, %v552_v38 }
  0x3f   : > { %6814 = vst [vmem:[#allocation24_spill] sm:$0xff] %v3648_v52  ;;  %v716_v3 = vmul.f32 %v3648_v52, %v591_v45  ;;  %v3688_v7 = vmul.f32 %v3648_v52, %v3616_v40  ;;  %v3692_v8 = vmul.f32 %v3648_v52, %v3632_v46  ;;  %v776_v14 = vmul.f32 %v3650_v53, %v487_v24 }
  0x40   : > { %6815 = vst [vmem:[#allocation25_spill] sm:$0xff] %v3652_v54  ;;  %2070 = vmatpush.bf16.msra.mxu0 %v2997_v47  ;;  %3007 = vmatpush.bf16.msra.mxu2 %v2997_v47  ;;  %v684_v17 = vadd.f32 %v654_v62, %v623_v57  ;;  %v685_v18 = vadd.f32 %v655_v63, %v624_v58  ;;  %v3722_v34 = vperm.slane %v3672_v61, 4  ;;  %v3726_v42 = vperm.slane %v3672_v61, 5  ;;  %v3737_v57 = vld [vmem:[%s6481_s1 + $0x8] ss:$0 sm:$0xff] }
  0x41   : > { %6816 = vst [vmem:[#allocation26_spill] sm:$0xff] %v3663_v59  ;;  %2207 = vmatpush.bf16.msra.mxu1 %v2989_v48  ;;  %3015 = vmatpush.bf16.msra.mxu3 %v2989_v48  ;;  %v777_v19 = vmul.f32 %v3650_v53, %v3572_v22  ;;  %v778_v21 = vmul.f32 %v3650_v53, %v3605_v36 }
  0x42   : > { %6817 = vst [vmem:[#allocation27_spill] sm:$0xff] %v3667_v60  ;;  %v779_v23 = vmul.f32 %v3650_v53, %v3589_v30  ;;  %v809_v24 = vmul.f32 %v3652_v54, %v3543_v9  ;;  %v810_v25 = vmul.f32 %v3652_v54, %v3546_v10  ;;  %v745_v26 = vadd.f32 %v715_v2, %v684_v17  ;;  %v2987_v9 = vld [vmem:[%s6485_s5 + $0x8] sm:$0xff]  ;;  %v2986_v2 = vld [vmem:[%s6485_s5] sm:$0xff] }
  0x43   : > { %6818 = vst [vmem:[#allocation28_spill] sm:$0xff] %v3688_v7  ;;  %v746_v27 = vadd.f32 %v716_v3, %v685_v18  ;;  %v811_v22 = vmul.f32 %v3652_v54, %v3551_v11  ;;  %v812_v28 = vmul.f32 %v3652_v54, %v3554_v12  ;;  %v874_v33 = vmul.f32 %v3654_v55, %v552_v38 }
  0x44   : > { %6819 = vst [vmem:[#allocation29_spill] sm:$0xff] %v3692_v8  ;;  %2071 = vmatpush.bf16.msra.mxu0 %v2996_v4  ;;  %v841_v32 = vadd.f32 %v809_v24, %v776_v14  ;;  %v842_v10 = vadd.f32 %v810_v25, %v777_v19  ;;  %3008 = vmatpush.bf16.msra.mxu2 %v2996_v4  ;;  %v3763_v19 = vperm.slane %v3672_v61, 7 }
  0x45   : > { %2208 = vmatpush.bf16.msra.mxu1 %v2988_v5  ;;  %3016 = vmatpush.bf16.msra.mxu3 %v2988_v5  ;;  %v843_v35 = vadd.f32 %v811_v22, %v778_v21  ;;  %v844_v37 = vadd.f32 %v812_v28, %v779_v23  ;;  %v875_v41 = vmul.f32 %v3654_v55, %v591_v45  ;;  %v3754_v5 = vperm.slane %v3672_v61, 6  ;;  %v3766_v21 = vld [vmem:[%s3512_s28 + $0x60] sm:$0xff]  ;;  %v3775_v28 = vld [vmem:[%s3512_s28 + $0x70] sm:$0xff] }
  0x46   : > { %6820 = vst [vmem:[#allocation30_spill] sm:$0xff] %v3726_v42  ;;  %v876_v44 = vmul.f32 %v3654_v55, %v3616_v40  ;;  %v877_v47 = vmul.f32 %v3654_v55, %v3632_v46  ;;  %v906_v48 = vadd.f32 %v874_v33, %v841_v32  ;;  %v939_v38 = vmul.f32 %v3656_v56, %v3605_v36  ;;  %v2994_v36 = vld [vmem:[%s6486_s6] sm:$0xff] }
  0x47   : > { %v907_v58 = vadd.f32 %v875_v41, %v842_v10  ;;  %v940_v45 = vmul.f32 %v3656_v56, %v3589_v30  ;;  %v941_v62 = vmul.f32 %v3656_v56, %v3612_v39  ;;  %v942_v63 = vmul.f32 %v3656_v56, %v3593_v31  ;;  %6821 = vst [vmem:[#allocation31_spill] sm:$0xff] %v3754_v5  ;;  %v3780_v33 = vld [vmem:[%s3512_s28 + $0x80] sm:$0xff] }
  0x48   : > { %2072 = vmatpush.bf16.msra.mxu0 %v2995_v29  ;;  %v908_v3 = vadd.f32 %v876_v44, %v843_v35  ;;  %v909_v30 = vadd.f32 %v877_v47, %v844_v37  ;;  %v970_v4 = vmul.f32 %v3695_v15, %v3551_v11  ;;  %3009 = vmatpush.bf16.msra.mxu2 %v2995_v29  ;;  %v3783_v35 = vld [vmem:[%s3512_s28 + $0x90] sm:$0xff]  ;;  %v3791_v44 = vld [vmem:[%s6482_s2] ss:$0 sm:$0xff]  ;;  %v3794_v47 = vld [vmem:[%s3512_s28 + $0x68] sm:$0xff] }
  0x49   : > { %2209 = vmatpush.bf16.msra.mxu1 %v2987_v9  ;;  %3017 = vmatpush.bf16.msra.mxu3 %v2987_v9  ;;  %v971_v14 = vmul.f32 %v3695_v15, %v3554_v12  ;;  %v972_v17 = vmul.f32 %v3695_v15, %v3557_v13  ;;  %v973_v18 = vmul.f32 %v3695_v15, %v3563_v16 }
  0x4a   : > { %6822 = vst [vmem:[#allocation32_spill] sm:$0xff] %v3763_v19  ;;  %v1000_v23 = vadd.f32 %v970_v4, %v939_v38  ;;  %v1031_v24 = vmul.f32 %v3737_v57, %v3616_v40  ;;  %v1032_v25 = vmul.f32 %v3737_v57, %v3632_v46  ;;  %v1033_v22 = vmul.f32 %v3737_v57, %v3624_v43  ;;  %v3786_v40 = vld [vmem:[%s3512_s28 + $0xa0] sm:$0xff]  ;;  %v3798_v4 = vld [vmem:[%s3512_s28 + $0x78] sm:$0xff] }
  0x4b   : > { %v1001_v29 = vadd.f32 %v971_v14, %v940_v45  ;;  %v1002_v9 = vadd.f32 %v972_v17, %v941_v62  ;;  %v1003_v32 = vadd.f32 %v973_v18, %v942_v63  ;;  %v1034_v10 = vmul.f32 %v3737_v57, %v3642_v49  ;;  %v3801_v14 = vld [vmem:[%s3512_s28 + $0x88] sm:$0xff] }
  0x4c   : > { %2073 = vmatpush.bf16.msra.mxu0 %v2994_v36  ;;  %v1061_v46 = vadd.f32 %v1031_v24, %v1000_v23  ;;  %v1093_v37 = vadd.f32 %v908_v3, %v745_v26  ;;  %v1094_v41 = vadd.f32 %v909_v30, %v746_v27  ;;  %v6496_v38 = vrot.slane %v3766_v21, 7  ;;  %3010 = vmatpush.bf16.msra.mxu2 %v2994_v36  ;;  %v3804_v26 = vld [vmem:[%s3512_s28 + $0x98] sm:$0xff]  ;;  %v3810_v30 = vld [vmem:[%s6483_s3] ss:$0 sm:$0xff] }
  0x4d   : > { %2210 = vmatpush.bf16.msra.mxu1 %v2986_v2  ;;  %3018 = vmatpush.bf16.msra.mxu3 %v2986_v2  ;;  %v1062_v45 = vadd.f32 %v1032_v25, %v1001_v29  ;;  %v1063_v62 = vadd.f32 %v1033_v22, %v1002_v9  ;;  %v1064_v63 = vadd.f32 %v1034_v10, %v1003_v32  ;;  %v6497_v27 = vrot.slane %v3775_v28, 7  ;;  %v3820_v25 = vld [vmem:[%s3512_s28 + $0xa8] sm:$0xff] }
  0x4e   : > { %v1123_v3 = vadd.f32 %v1061_v46, %v906_v48  ;;  %v6498_v36 = vrot.slane %v3780_v33, 7  ;;  %v6502_v2 = vrot.slane %v3783_v35, 7  ;;  %v439_v48 = vrot.slane %v3794_v47, 7 }
  0x4f   : > { %v1124_v18 = vadd.f32 %v1062_v45, %v907_v58  ;;  %v3815_v23 = vadd.f32 %v1093_v37, %v1063_v62  ;;  %v3817_v24 = vadd.f32 %v1094_v41, %v1064_v63  ;;  %v440_v29 = vrot.slane %v3798_v4, 7 }
  0x50   : > { %v1191_v22 = vmul.f32 %v3791_v44, %v1123_v3  ;;  %v441_v9 = vrot.slane %v3801_v14, 7  ;;  %v442_v32 = vrot.slane %v3804_v26, 7  ;;  %v443_v45 = vrot.slane %v3820_v25, 7 }
  0x51   : > { %6823 = vst [vmem:[#allocation33_spill] sm:$0xff] %v3815_v23  ;;  %v1192_v10 = vmul.f32 %v3791_v44, %v1124_v18  ;;  %v1193_v58 = vmul.f32 %v3791_v44, %v3815_v23  ;;  %v1194_v46 = vmul.f32 %v3791_v44, %v3817_v24  ;;  %v1155_v37 = vpack.c.bf16 %v1124_v18, %v1123_v3 }
  0x52   : > { %6824 = vst [vmem:[#allocation34_spill] sm:$0xff] %v3817_v24  ;;  %v3833_v41 = vadd.f32 %v3810_v30, %v1191_v22  ;;  %v3840_v62 = vsel %vm449_vm0, %v6496_v38, %v439_v48  ;;  %v3846_v63 = vsel %vm449_vm0, %v6497_v27, %v440_v29  ;;  %v3861_v22 = vsel %vm449_vm0, %v6498_v36, %v441_v9 }
  0x53   : > { %6826 = vst [vmem:[#allocation36_spill] sm:$0xff] %v3840_v62  ;;  %v3849_v0 = vadd.f32 %v3810_v30, %v1192_v10  ;;  %v3852_v3 = vadd.f32 %v3810_v30, %v1193_v58  ;;  %v3855_v18 = vadd.f32 %v3810_v30, %v1194_v46  ;;  %2211 = vmatmul.bf16.vlgmr.msra.gmra.mxu1 %v1155_v37 }
  0x54   : > { %6825 = vst [vmem:[#allocation35_spill] sm:$0xff] %v3833_v41  ;;  %v1261_v38 = vrot.slane %v3833_v41, 7  ;;  %v1357_v27 = vrot.slane %v3833_v41, 1  ;;  %v1640_v10 = vmul.f32 %v3722_v34, %v3833_v41  ;;  %v3871_v58 = vsel %vm449_vm0, %v6502_v2, %v442_v32 }
  0x55   : > { %6827 = vst [vmem:[#allocation37_spill] sm:$0xff] %v3846_v63  ;;  %v1262_v46 = vrot.slane %v3852_v3, 7  ;;  %v1277_v37 = vrot.slane %v3849_v0, 7  ;;  %v1278_v36 = vrot.slane %v3855_v18, 7  ;;  %v1358_v17 = vrot.slane %v3852_v3, 1 }
  0x56   : > { %6828 = vst [vmem:[#allocation38_spill] sm:$0xff] %v3849_v0  ;;  %v1373_v24 = vrot.slane %v3849_v0, 1  ;;  %v1374_v23 = vrot.slane %v3855_v18, 1  ;;  %v1641_v41 = vmul.f32 %v3722_v34, %v3849_v0  ;;  %v1801_v8 = vmul.f32 %v3763_v19, %v3852_v3 }
  0x57   : > { %6829 = vst [vmem:[#allocation39_spill] sm:$0xff] %v3852_v3  ;;  %v3885_v2 = vsel %vm449_vm0, %v1261_v38, %v1277_v37  ;;  %v3889_v49 = vsel %vm449_vm0, %v1262_v46, %v1278_v36  ;;  %v1309_v43 = vsel %vm449_vm0, %v1277_v37, %v1261_v38  ;;  %v1310_v7 = vsel %vm449_vm0, %v1278_v36, %v1262_v46  ;;  %v3914_v38 = vld [vmem:[%s6484_s4 + $0x8] ss:$0 sm:$0xff] }
  0x58   : > { %6830 = vst [vmem:[#allocation40_spill] sm:$0xff] %v3855_v18  ;;  %v3897_v0 = vsel %vm449_vm0, 0.0, %v1309_v43  ;;  %v3901_v3 = vsel %vm449_vm0, 0.0, %v1310_v7  ;;  %v3905_v16 = vsel %vm551_vm1, %v1357_v27, %v1373_v24  ;;  %v3909_v13 = vsel %vm551_vm1, %v1358_v17, %v1374_v23 }
  0x59   : > { %6831 = vst [vmem:[#allocation41_spill] sm:$0xff] %v3885_v2  ;;  %v1405_v43 = vsel %vm551_vm1, %v1373_v24, %v1357_v27  ;;  %v1406_v7 = vsel %vm551_vm1, %v1374_v23, %v1358_v17  ;;  %v1607_v36 = vmul.f32 %v3700_v20, %v3897_v0  ;;  %v1608_v46 = vmul.f32 %v3700_v20, %v3885_v2 }
  0x5a   : > { %6832 = vst [vmem:[#allocation42_spill] sm:$0xff] %v3889_v49  ;;  %v3926_v37 = vsel %vm585_vm2, 0.0, %v1405_v43  ;;  %v3930_v31 = vsel %vm585_vm2, 0.0, %v1406_v7  ;;  %v1705_v27 = vmul.f32 %v3726_v42, %v3905_v16  ;;  %v1770_v17 = vmul.f32 %v3754_v5, %v3901_v3 }
  0x5b   : > { %6833 = vst [vmem:[#allocation43_spill] sm:$0xff] %v3897_v0  ;;  %v1672_v23 = vadd.f32 %v1640_v10, %v1607_v36  ;;  %v1673_v24 = vadd.f32 %v1641_v41, %v1608_v46  ;;  %v1706_v0 = vmul.f32 %v3726_v42, %v3926_v37  ;;  %v1771_v2 = vmul.f32 %v3754_v5, %v3889_v49 }
  0x5c   : > { %6834 = vst [vmem:[#allocation44_spill] sm:$0xff] %v3901_v3  ;;  %v1802_v43 = vmul.f32 %v3763_v19, %v3855_v18  ;;  %v1831_v60 = vadd.f32 %v1801_v8, %v1770_v17  ;;  %v1862_v7 = vmul.f32 %v3914_v38, %v3909_v13  ;;  %v6840_v41 = vrot.slane %v3786_v40, 7 }
  0x5d   : > { %6835 = vst [vmem:[#allocation45_spill] sm:$0xff] %v3905_v16  ;;  %v1863_v16 = vmul.f32 %v3914_v38, %v3930_v31  ;;  %v1737_v59 = vadd.f32 %v1705_v27, %v1672_v23  ;;  %v1738_v3 = vadd.f32 %v1706_v0, %v1673_v24  ;;  %v6842_v36 = vrot.slane %v3766_v21, 7 }
  0x5e   : > { %6836 = vst [vmem:[#allocation46_spill] sm:$0xff] %v3909_v13  ;;  %v3950_v10 = vsel %vm449_vm0, %v6840_v41, %v443_v45  ;;  %v1832_v8 = vadd.f32 %v1802_v43, %v1771_v2  ;;  %v1892_v17 = vadd.f32 %v1862_v7, %v1831_v60  ;;  %v6843_v13 = vrot.slane %v3775_v28, 7 }
  0x5f   : > { %6837 = vst [vmem:[#allocation47_spill] sm:$0xff] %v3914_v38  ;;  %v472_v46 = vsel %vm449_vm0, %v439_v48, %v6842_v36  ;;  %v6844_v0 = vrot.slane %v3780_v33, 7  ;;  %v6845_v23 = vrot.slane %v3783_v35, 7  ;;  %v476_v60 = vsel %vm449_vm0, %v443_v45, %v6840_v41 }
  0x60   : > { %6838 = vst [vmem:[#allocation48_spill] sm:$0xff] %v3926_v37  ;;  %v3974_v2 = vsel %vm449_vm0, 0.0, %v472_v46  ;;  %v1893_v48 = vadd.f32 %v1863_v16, %v1832_v8  ;;  %v3990_v45 = vsel %vm449_vm0, 0.0, %v476_v60  ;;  %v525_v43 = vrot.slane %v3766_v21, 1 }
  0x61   : > { %6839 = vst [vmem:[#allocation49_spill] sm:$0xff] %v3930_v31  ;;  %v473_v31 = vsel %vm449_vm0, %v440_v29, %v6843_v13  ;;  %v474_v27 = vsel %vm449_vm0, %v441_v9, %v6844_v0  ;;  %v475_v24 = vsel %vm449_vm0, %v442_v32, %v6845_v23  ;;  %v1954_v29 = vadd.f32 %v1892_v17, %v1737_v59 }
  0x62   : > { %6841 = vst [vmem:[#allocation50_spill] sm:$0xff] %v3950_v10  ;;  %v3978_v13 = vsel %vm449_vm0, 0.0, %v473_v31  ;;  %v3982_v9 = vsel %vm449_vm0, 0.0, %v474_v27  ;;  %v3986_v32 = vsel %vm449_vm0, 0.0, %v475_v24  ;;  %v526_v7 = vrot.slane %v3775_v28, 1 }
  0x63   : > { %6846 = vst [vmem:[#allocation51_spill] sm:$0xff] %v3974_v2  ;;  %v527_v31 = vrot.slane %v3780_v33, 1  ;;  %v1955_v16 = vadd.f32 %v1893_v48, %v1738_v3  ;;  %v528_v59 = vrot.slane %v3783_v35, 1  ;;  %v529_v36 = vrot.slane %v3786_v40, 1 }
  0x64   : > { %6847 = vst [vmem:[#allocation52_spill] sm:$0xff] %v3978_v13  ;;  %v541_v46 = vrot.slane %v3794_v47, 1  ;;  %v542_v8 = vrot.slane %v3798_v4, 1  ;;  %v543_v17 = vrot.slane %v3801_v14, 1  ;;  %v544_v0 = vrot.slane %v3804_v26, 1 }
  0x65   : > { %v545_v27 = vrot.slane %v3820_v25, 1  ;;  %v1986_v23 = vpack.c.bf16 %v1955_v16, %v1954_v29  ;;  %v635_v41 = vmul.f32 %v3644_v50, %v3974_v2 }
  0x66   : > { %v4004_v24 = vsel %vm551_vm1, %v525_v43, %v541_v46  ;;  %v574_v3 = vsel %vm551_vm1, %v541_v46, %v525_v43  ;;  %v4012_v60 = vsel %vm551_vm1, %v526_v7, %v542_v8  ;;  %v4016_v48 = vsel %vm551_vm1, %v527_v31, %v543_v17 }
  0x67   : > { %6848 = vst [vmem:[#allocation53_spill] sm:$0xff] %v4004_v24  ;;  %v4020_v29 = vsel %vm551_vm1, %v528_v59, %v544_v0  ;;  %v4024_v16 = vsel %vm551_vm1, %v529_v36, %v545_v27  ;;  %2074 = vmatmul.bf16.vlgmr.msra.gmra.mxu0 %v1986_v23  ;;  %v575_v43 = vsel %vm551_vm1, %v542_v8, %v526_v7  ;;  %v4036_v49 = vsel %vm585_vm2, 0.0, %v574_v3 }
  0x68   : > { %6849 = vst [vmem:[#allocation54_spill] sm:$0xff] %v4012_v60  ;;  %v576_v46 = vsel %vm551_vm1, %v543_v17, %v527_v31  ;;  %v577_v2 = vsel %vm551_vm1, %v544_v0, %v528_v59  ;;  %v578_v18 = vsel %vm551_vm1, %v545_v27, %v529_v36  ;;  %v4040_v37 = vsel %vm585_vm2, 0.0, %v575_v43 }
  0x69   : > { %6850 = vst [vmem:[#allocation55_spill] sm:$0xff] %v4036_v49  ;;  %v4044_v7 = vsel %vm585_vm2, 0.0, %v576_v46  ;;  %v4048_v31 = vsel %vm585_vm2, 0.0, %v577_v2  ;;  %v4052_v59 = vsel %vm585_vm2, 0.0, %v578_v18  ;;  %v636_v36 = vmul.f32 %v3644_v50, %v3840_v62 }
  0x6a   : > { %6851 = vst [vmem:[#allocation56_spill] sm:$0xff] %v4040_v37  ;;  %v637_v8 = vmul.f32 %v3644_v50, %v3978_v13  ;;  %v638_v17 = vmul.f32 %v3644_v50, %v3846_v63  ;;  %v639_v0 = vmul.f32 %v3644_v50, %v3982_v9  ;;  %v640_v2 = vmul.f32 %v3644_v50, %v3861_v22 }
  0x6b   : > { %v666_v27 = vmul.f32 %v3646_v51, %v3766_v21  ;;  %v667_v18 = vmul.f32 %v3646_v51, %v3794_v47  ;;  %v668_v23 = vmul.f32 %v3646_v51, %v3775_v28  ;;  %v669_v3 = vmul.f32 %v3646_v51, %v3798_v4 }
  0x6c   : > { %v670_v43 = vmul.f32 %v3646_v51, %v3780_v33  ;;  %v671_v46 = vmul.f32 %v3646_v51, %v3801_v14  ;;  %v727_v21 = vmul.f32 %v3648_v52, %v4004_v24  ;;  %v728_v47 = vmul.f32 %v3648_v52, %v4036_v49 }
  0x6d   : > { %v696_v62 = vadd.f32 %v666_v27, %v635_v41  ;;  %v697_v50 = vadd.f32 %v667_v18, %v636_v36  ;;  %v698_v39 = vadd.f32 %v668_v23, %v637_v8  ;;  %v699_v12 = vadd.f32 %v669_v3, %v638_v17 }
  0x6e   : > { %v700_v11 = vadd.f32 %v670_v43, %v639_v0  ;;  %v701_v38 = vadd.f32 %v671_v46, %v640_v2  ;;  %v729_v19 = vmul.f32 %v3648_v52, %v4012_v60  ;;  %v730_v5 = vmul.f32 %v3648_v52, %v4040_v37 }
  0x6f   : > { %v731_v41 = vmul.f32 %v3648_v52, %v4016_v48  ;;  %v732_v36 = vmul.f32 %v3648_v52, %v4044_v7  ;;  %v757_v27 = vadd.f32 %v727_v21, %v696_v62  ;;  %v758_v18 = vadd.f32 %v728_v47, %v697_v50 }
  0x70   : > { %v790_v8 = vmul.f32 %v3650_v53, %v3978_v13  ;;  %v791_v17 = vmul.f32 %v3650_v53, %v3846_v63  ;;  %v4092_v0 = vadd.f32 %v729_v19, %v698_v39  ;;  %v4094_v2 = vadd.f32 %v730_v5, %v699_v12 }
  0x71   : > { %v4096_v23 = vadd.f32 %v731_v41, %v700_v11  ;;  %v4098_v3 = vadd.f32 %v732_v36, %v701_v38  ;;  %v792_v43 = vmul.f32 %v3650_v53, %v3982_v9  ;;  %v793_v50 = vmul.f32 %v3650_v53, %v3861_v22 }
  0x72   : > { %v794_v62 = vmul.f32 %v3650_v53, %v3986_v32  ;;  %v795_v46 = vmul.f32 %v3650_v53, %v3871_v58  ;;  %v823_v12 = vmul.f32 %v3652_v54, %v3775_v28  ;;  %v824_v11 = vmul.f32 %v3652_v54, %v3798_v4 }
  0x73   : > { %v825_v39 = vmul.f32 %v3652_v54, %v3780_v33  ;;  %v826_v5 = vmul.f32 %v3652_v54, %v3801_v14  ;;  %v827_v19 = vmul.f32 %v3652_v54, %v3783_v35  ;;  %v828_v38 = vmul.f32 %v3652_v54, %v3804_v26 }
  0x74   : > { %v888_v21 = vmul.f32 %v3654_v55, %v4012_v60  ;;  %v889_v28 = vmul.f32 %v3654_v55, %v4040_v37  ;;  %v855_v47 = vadd.f32 %v823_v12, %v790_v8  ;;  %v856_v4 = vadd.f32 %v824_v11, %v791_v17 }
  0x75   : > { %v857_v41 = vadd.f32 %v825_v39, %v792_v43  ;;  %v858_v36 = vadd.f32 %v826_v5, %v793_v50  ;;  %v859_v63 = vadd.f32 %v827_v19, %v794_v62  ;;  %v860_v13 = vadd.f32 %v828_v38, %v795_v46 }
  0x76   : > { %v890_v49 = vmul.f32 %v3654_v55, %v4016_v48  ;;  %v891_v24 = vmul.f32 %v3654_v55, %v4044_v7  ;;  %v892_v52 = vmul.f32 %v3654_v55, %v4020_v29  ;;  %v893_v60 = vmul.f32 %v3654_v55, %v4048_v31 }
  0x77   : > { %v920_v54 = vadd.f32 %v888_v21, %v855_v47  ;;  %v921_v37 = vadd.f32 %v889_v28, %v856_v4  ;;  %v953_v43 = vmul.f32 %v3656_v56, %v3982_v9  ;;  %v954_v50 = vmul.f32 %v3656_v56, %v3861_v22 }
  0x78   : > { %v922_v8 = vadd.f32 %v890_v49, %v857_v41  ;;  %v923_v17 = vadd.f32 %v891_v24, %v858_v36  ;;  %v924_v62 = vadd.f32 %v892_v52, %v859_v63  ;;  %v925_v46 = vadd.f32 %v893_v60, %v860_v13 }
  0x79   : > { %v955_v12 = vmul.f32 %v3656_v56, %v3986_v32  ;;  %v956_v11 = vmul.f32 %v3656_v56, %v3871_v58  ;;  %v957_v39 = vmul.f32 %v3656_v56, %v3990_v45  ;;  %v958_v49 = vmul.f32 %v3656_v56, %v3950_v10 }
  0x7a   : > { %v984_v9 = vmul.f32 %v3695_v15, %v3780_v33  ;;  %v985_v22 = vmul.f32 %v3695_v15, %v3801_v14  ;;  %v986_v52 = vmul.f32 %v3695_v15, %v3783_v35  ;;  %v987_v63 = vmul.f32 %v3695_v15, %v3804_v26 }
  0x7b   : > { %v988_v13 = vmul.f32 %v3695_v15, %v3786_v40  ;;  %v989_v24 = vmul.f32 %v3695_v15, %v3820_v25  ;;  %v1045_v33 = vmul.f32 %v3737_v57, %v4016_v48  ;;  %v1046_v14 = vmul.f32 %v3737_v57, %v4044_v7 }
  0x7c   : > { %v1014_v60 = vadd.f32 %v984_v9, %v953_v43  ;;  %v1015_v5 = vadd.f32 %v985_v22, %v954_v50  ;;  %v1016_v19 = vadd.f32 %v986_v52, %v955_v12  ;;  %v1017_v38 = vadd.f32 %v987_v63, %v956_v11 }
  0x7d   : > { %v1018_v21 = vadd.f32 %v988_v13, %v957_v39  ;;  %v1019_v28 = vadd.f32 %v989_v24, %v958_v49  ;;  %v1047_v47 = vmul.f32 %v3737_v57, %v4020_v29  ;;  %v1048_v4 = vmul.f32 %v3737_v57, %v4048_v31  ;;  %v4173_v13 = vld [vmem:[%s3512_s28 + $0x30] sm:$0xff] }
  0x7e   : > { %v1049_v41 = vmul.f32 %v3737_v57, %v4024_v16  ;;  %v1050_v48 = vmul.f32 %v3737_v57, %v4052_v59  ;;  %v1075_v36 = vadd.f32 %v1045_v33, %v1014_v60  ;;  %v1076_v43 = vadd.f32 %v1046_v14, %v1015_v5  ;;  %6852 = vst [vmem:[#allocation57_spill] sm:$0xff] %v4173_v13 }
  0x7f   : > { %v1105_v7 = vadd.f32 %v920_v54, %v757_v27  ;;  %v1106_v50 = vadd.f32 %v921_v37, %v758_v18  ;;  %v1077_v12 = vadd.f32 %v1047_v47, %v1016_v19  ;;  %v1078_v11 = vadd.f32 %v1048_v4, %v1017_v38 }
  0x80   : > { %v1079_v39 = vadd.f32 %v1049_v41, %v1018_v21  ;;  %v1080_v49 = vadd.f32 %v1050_v48, %v1019_v28  ;;  %v1107_v9 = vadd.f32 %v922_v8, %v4092_v0  ;;  %v1108_v22 = vadd.f32 %v923_v17, %v4094_v2 }
  0x81   : > { %v1109_v52 = vadd.f32 %v924_v62, %v4096_v23  ;;  %v1110_v63 = vadd.f32 %v925_v46, %v4098_v3  ;;  %v4175_v24 = vadd.f32 %v1105_v7, %v1075_v36  ;;  %v4177_v60 = vadd.f32 %v1106_v50, %v1076_v43  ;;  %v4190_v23 = vld [vmem:[%s3512_s28 + $0x38] sm:$0xff] }
  0x82   : > { %v4180_v54 = vperm.slane %v3672_v61, 0  ;;  %v4183_v37 = vperm.slane %v3672_v61, 1  ;;  %v1139_v27 = vadd.f32 %v1107_v9, %v1077_v12  ;;  %v1140_v18 = vadd.f32 %v1108_v22, %v1078_v11  ;;  %6857 = vst [vmem:[#allocation62_spill] sm:$0xff] %v4190_v23 }
  0x83   : > { %6853 = vst [vmem:[#allocation58_spill] sm:$0xff] %v4175_v24  ;;  %v4185_v0 = vadd.f32 %v1109_v52, %v1079_v39  ;;  %v4187_v2 = vadd.f32 %v1110_v63, %v1080_v49  ;;  %v1205_v3 = vmul.f32 %v3791_v44, %v4175_v24  ;;  %v1206_v8 = vmul.f32 %v3791_v44, %v4177_v60 }
  0x84   : > { %6854 = vst [vmem:[#allocation59_spill] sm:$0xff] %v4177_v60  ;;  %v4197_v17 = vperm.slane %v3672_v61, 2  ;;  %v1207_v46 = vmul.f32 %v3791_v44, %v1139_v27  ;;  %v1208_v5 = vmul.f32 %v3791_v44, %v1140_v18  ;;  %v1163_v61 = vpack.c.bf16 %v1140_v18, %v1139_v27 }
  0x85   : > { %6855 = vst [vmem:[#allocation60_spill] sm:$0xff] %v4185_v0  ;;  %v1209_v33 = vmul.f32 %v3791_v44, %v4185_v0  ;;  %v1210_v14 = vmul.f32 %v3791_v44, %v4187_v2  ;;  %v4207_v19 = vadd.f32 %v3810_v30, %v1205_v3  ;;  %v4210_v38 = vadd.f32 %v3810_v30, %v1206_v8  ;;  %v6878_v0 = vld [vmem:[#allocation47_spill] sm:$0xff] }
  0x86   : > { %6856 = vst [vmem:[#allocation61_spill] sm:$0xff] %v4187_v2  ;;  %v4214_v28 = vadd.f32 %v3810_v30, %v1207_v46  ;;  %v4217_v47 = vadd.f32 %v3810_v30, %v1208_v5  ;;  %2251 = vmatmul.bf16.vlgmr.msra.gmra.mxu3 %v1163_v61 }
  0x87   : > { %6858 = vst [vmem:[#allocation63_spill] sm:$0xff] %v4207_v19  ;;  %v4220_v4 = vadd.f32 %v3810_v30, %v1209_v33  ;;  %v4223_v41 = vadd.f32 %v3810_v30, %v1210_v14  ;;  %v1268_v48 = vrot.slane %v4207_v19, 7  ;;  %v1284_v36 = vrot.slane %v4210_v38, 7 }
  0x88   : > { %6859 = vst [vmem:[#allocation64_spill] sm:$0xff] %v4210_v38  ;;  %v1364_v43 = vrot.slane %v4207_v19, 1  ;;  %v1380_v7 = vrot.slane %v4210_v38, 1  ;;  %v1269_v50 = vrot.slane %v4214_v28, 7  ;;  %v1285_v11 = vrot.slane %v4217_v47, 7 }
  0x89   : > { %6860 = vst [vmem:[#allocation65_spill] sm:$0xff] %v4214_v28  ;;  %v1270_v12 = vrot.slane %v4220_v4, 7  ;;  %v1286_v39 = vrot.slane %v4223_v41, 7  ;;  %v4235_v49 = vsel %vm449_vm0, %v1268_v48, %v1284_v36  ;;  %v1316_v9 = vsel %vm449_vm0, %v1284_v36, %v1268_v48 }
  0x8a   : > { %6861 = vst [vmem:[#allocation66_spill] sm:$0xff] %v4217_v47  ;;  %v1365_v22 = vrot.slane %v4214_v28, 1  ;;  %v1366_v52 = vrot.slane %v4220_v4, 1  ;;  %v4243_v63 = vsel %vm449_vm0, %v1269_v50, %v1285_v11  ;;  %v1317_v18 = vsel %vm449_vm0, %v1285_v11, %v1269_v50 }
  0x8b   : > { %6862 = vst [vmem:[#allocation67_spill] sm:$0xff] %v4220_v4  ;;  %v4247_v27 = vsel %vm449_vm0, %v1270_v12, %v1286_v39  ;;  %v1318_v3 = vsel %vm449_vm0, %v1286_v39, %v1270_v12  ;;  %v4255_v8 = vsel %vm449_vm0, 0.0, %v1316_v9  ;;  %v4259_v46 = vsel %vm449_vm0, 0.0, %v1317_v18 }
  0x8c   : > { %6863 = vst [vmem:[#allocation68_spill] sm:$0xff] %v4223_v41  ;;  %v4263_v5 = vsel %vm449_vm0, 0.0, %v1318_v3  ;;  %v1381_v33 = vrot.slane %v4217_v47, 1  ;;  %v1382_v14 = vrot.slane %v4223_v41, 1  ;;  %v4269_v61 = vsel %vm551_vm1, %v1364_v43, %v1380_v7 }
  0x8d   : > { %6864 = vst [vmem:[#allocation69_spill] sm:$0xff] %v4235_v49  ;;  %v1412_v48 = vsel %vm551_vm1, %v1380_v7, %v1364_v43  ;;  %v1468_v36 = vmul.f32 %v4180_v54, %v4255_v8  ;;  %v1469_v39 = vmul.f32 %v4180_v54, %v4235_v49  ;;  %v1500_v3 = vmul.f32 %v4183_v37, %v4210_v38 }
  0x8e   : > { %6865 = vst [vmem:[#allocation70_spill] sm:$0xff] %v4243_v63  ;;  %v4277_v50 = vsel %vm551_vm1, %v1365_v22, %v1381_v33  ;;  %v1413_v12 = vsel %vm551_vm1, %v1381_v33, %v1365_v22  ;;  %v4283_v11 = vsel %vm585_vm2, 0.0, %v1412_v48  ;;  %v4289_v43 = vsel %vm551_vm1, %v1366_v52, %v1382_v14 }
  0x8f   : > { %6866 = vst [vmem:[#allocation71_spill] sm:$0xff] %v4247_v27  ;;  %v1414_v7 = vsel %vm551_vm1, %v1382_v14, %v1366_v52  ;;  %v4295_v9 = vsel %vm585_vm2, 0.0, %v1413_v12  ;;  %v1499_v22 = vmul.f32 %v4183_v37, %v4207_v19  ;;  %v1560_v33 = vmul.f32 %v4197_v17, %v4269_v61 }
  0x90   : > { %6867 = vst [vmem:[#allocation72_spill] sm:$0xff] %v4255_v8  ;;  %v4301_v18 = vsel %vm585_vm2, 0.0, %v1414_v7  ;;  %v1561_v52 = vmul.f32 %v4197_v17, %v4283_v11  ;;  %v1623_v48 = vmul.f32 %v3700_v20, %v4259_v46  ;;  %v1624_v12 = vmul.f32 %v3700_v20, %v4243_v63 }
  0x91   : > { %6868 = vst [vmem:[#allocation73_spill] sm:$0xff] %v4259_v46  ;;  %v1529_v14 = vadd.f32 %v1499_v22, %v1468_v36  ;;  %v1656_v7 = vmul.f32 %v3722_v34, %v4214_v28  ;;  %v1530_v62 = vadd.f32 %v1500_v3, %v1469_v39  ;;  %v1657_v21 = vmul.f32 %v3722_v34, %v4217_v47  ;;  %v6877_v39 = vld [vmem:[#allocation32_spill] sm:$0xff] }
  0x92   : > { %6869 = vst [vmem:[#allocation74_spill] sm:$0xff] %v4263_v5  ;;  %v1721_v60 = vmul.f32 %v3726_v42, %v4277_v50  ;;  %v1722_v24 = vmul.f32 %v3726_v42, %v4295_v9  ;;  %v1817_v3 = vmul.f32 %v6877_v39, %v4220_v4  ;;  %v1818_v8 = vmul.f32 %v6877_v39, %v4223_v41 }
  0x93   : > { %6870 = vst [vmem:[#allocation75_spill] sm:$0xff] %v4269_v61  ;;  %v1590_v36 = vadd.f32 %v1560_v33, %v1529_v14  ;;  %v1688_v22 = vadd.f32 %v1656_v7, %v1623_v48  ;;  %v1591_v19 = vadd.f32 %v1561_v52, %v1530_v62  ;;  %v1689_v49 = vadd.f32 %v1657_v21, %v1624_v12 }
  0x94   : > { %6871 = vst [vmem:[#allocation76_spill] sm:$0xff] %v4277_v50  ;;  %v1879_v33 = vmul.f32 %v6878_v0, %v4301_v18  ;;  %v6879_v14 = vrot.slane %v4190_v23, 7  ;;  %v6880_v48 = vrot.slane %v4173_v13, 7  ;;  %v522_v41 = vrot.slane %v4173_v13, 1 }
  0x95   : > { %6872 = vst [vmem:[#allocation77_spill] sm:$0xff] %v4283_v11  ;;  %v6876_v11 = vld [vmem:[#allocation31_spill] sm:$0xff]  ;;  %v1753_v2 = vadd.f32 %v1721_v60, %v1688_v22  ;;  %v1754_v21 = vadd.f32 %v1722_v24, %v1689_v49 }
  0x96   : > { %6873 = vst [vmem:[#allocation78_spill] sm:$0xff] %v4289_v43  ;;  %v1786_v61 = vmul.f32 %v6876_v11, %v4263_v5  ;;  %v1787_v38 = vmul.f32 %v6876_v11, %v4247_v27  ;;  %v4339_v62 = vsel %vm449_vm0, %v6880_v48, %v6879_v14  ;;  %v6882_v7 = vmov %v6880_v48 }
  0x97   : > { %6874 = vst [vmem:[#allocation79_spill] sm:$0xff] %v4295_v9  ;;  %v1878_v9 = vmul.f32 %v6878_v0, %v4289_v43  ;;  %v6883_v60 = vmov %v6879_v14  ;;  %v1938_v43 = vadd.f32 %v1753_v2, %v1590_v36  ;;  %v538_v14 = vrot.slane %v4190_v23, 1  ;;  %v6887_v36 = vld [vmem:[#allocation15_spill] sm:$0xff] }
  0x98   : > { %6875 = vst [vmem:[#allocation80_spill] sm:$0xff] %v4301_v18  ;;  %v1847_v52 = vadd.f32 %v1817_v3, %v1786_v61  ;;  %v1848_v12 = vadd.f32 %v1818_v8, %v1787_v38  ;;  %v469_v22 = vsel %vm449_vm0, %v6883_v60, %v6882_v7  ;;  %v1939_v49 = vadd.f32 %v1754_v21, %v1591_v19  ;;  %v6885_v38 = vld [vmem:[#allocation14_spill] sm:$0xff]  ;;  %v6888_v7 = vld [vmem:[#allocation19_spill] sm:$0xff] }
  0x99   : > { %6881 = vst [vmem:[#allocation32_spill] sm:$0xff] %v4339_v62  ;;  %v4349_v18 = vsel %vm449_vm0, 0.0, %v469_v22  ;;  %v656_v8 = vmul.f32 %v3646_v51, %v6885_v38  ;;  %v4357_v61 = vsel %vm551_vm1, %v522_v41, %v538_v14  ;;  %v571_v2 = vsel %vm551_vm1, %v538_v14, %v522_v41  ;;  %v6892_v38 = vld [vmem:[#allocation18_spill] sm:$0xff]  ;;  %v6893_v41 = vld [vmem:[#allocation16_spill] sm:$0xff]  ;;  %v6894_v14 = vld [vmem:[#allocation25_spill] sm:$0xff] }
  0x9a   : > { %6884 = vst [vmem:[#allocation47_spill] sm:$0xff] %v4349_v18  ;;  %v1908_v48 = vadd.f32 %v1878_v9, %v1847_v52  ;;  %v1909_v24 = vadd.f32 %v1879_v33, %v1848_v12  ;;  %v657_v3 = vmul.f32 %v3646_v51, %v6887_v36  ;;  %v780_v60 = vmul.f32 %v3650_v53, %v6888_v7  ;;  %v6890_v33 = vld [vmem:[#allocation26_spill] sm:$0xff]  ;;  %v6891_v52 = vld [vmem:[#allocation27_spill] sm:$0xff]  ;;  %v6895_v36 = vld [vmem:[#allocation17_spill] sm:$0xff] }
  0x9b   : > { %6886 = vst [vmem:[#allocation14_spill] sm:$0xff] %v4357_v61  ;;  %v4367_v19 = vsel %vm585_vm2, 0.0, %v571_v2  ;;  %v686_v21 = vadd.f32 %v656_v8, %v6890_v33  ;;  %v781_v4 = vmul.f32 %v3650_v53, %v6892_v38  ;;  %v813_v27 = vmul.f32 %v6894_v14, %v6893_v41  ;;  %v6898_v2 = vld [vmem:[#allocation21_spill] sm:$0xff] }
  0x9c   : > { %v1970_v22 = vadd.f32 %v1938_v43, %v1908_v48  ;;  %v1971_v9 = vadd.f32 %v1939_v49, %v1909_v24  ;;  %6889 = vst [vmem:[#allocation15_spill] sm:$0xff] %v4367_v19  ;;  %v687_v12 = vadd.f32 %v657_v3, %v6891_v52  ;;  %v814_v5 = vmul.f32 %v6894_v14, %v6895_v36  ;;  %v6896_v43 = vld [vmem:[#allocation28_spill] sm:$0xff]  ;;  %v6899_v33 = vld [vmem:[#allocation29_spill] sm:$0xff] }
  0x9d   : > { %v747_v48 = vadd.f32 %v6896_v43, %v686_v21  ;;  %v6897_v24 = vld [vmem:[#allocation20_spill] sm:$0xff]  ;;  %v879_v8 = vmul.f32 %v3654_v55, %v6898_v2  ;;  %v845_v52 = vadd.f32 %v813_v27, %v780_v60  ;;  %v943_v38 = vmul.f32 %v3656_v56, %v4349_v18  ;;  %v6900_v27 = vld [vmem:[#allocation43_spill] sm:$0xff]  ;;  %v6901_v43 = vld [vmem:[#allocation41_spill] sm:$0xff] }
  0x9e   : > { %v1994_v7 = vpack.c.bf16 %v1971_v9, %v1970_v22  ;;  %v878_v49 = vmul.f32 %v3654_v55, %v6897_v24  ;;  %v748_v3 = vadd.f32 %v6899_v33, %v687_v12  ;;  %v846_v50 = vadd.f32 %v814_v5, %v781_v4 }
  0x9f   : > { %v944_v41 = vmul.f32 %v3656_v56, %v4339_v62  ;;  %v974_v22 = vmul.f32 %v3695_v15, %v4173_v13  ;;  %v975_v9 = vmul.f32 %v3695_v15, %v4190_v23  ;;  %v1035_v21 = vmul.f32 %v3737_v57, %v4357_v61  ;;  %v6902_v13 = vld [vmem:[#allocation35_spill] sm:$0xff]  ;;  %v6903_v61 = vld [vmem:[#allocation38_spill] sm:$0xff] }
  0xa0   : > { %2114 = vmatmul.bf16.vlgmr.msra.gmra.mxu2 %v1994_v7  ;;  %v910_v36 = vadd.f32 %v878_v49, %v845_v52  ;;  %v911_v12 = vadd.f32 %v879_v8, %v846_v50  ;;  %v1036_v4 = vmul.f32 %v3737_v57, %v4367_v19  ;;  %v1454_v5 = vmul.f32 %v4180_v54, %v6900_v27  ;;  %v6904_v49 = vld [vmem:[#allocation45_spill] sm:$0xff] }
  0xa1   : > { %v1004_v7 = vadd.f32 %v974_v22, %v943_v38  ;;  %v1005_v60 = vadd.f32 %v975_v9, %v944_v41  ;;  %v1455_v33 = vmul.f32 %v4180_v54, %v6901_v43  ;;  %v1485_v62 = vmul.f32 %v4183_v37, %v6902_v13  ;;  %v6905_v41 = vld [vmem:[#allocation48_spill] sm:$0xff] }
  0xa2   : > { %v1095_v23 = vadd.f32 %v910_v36, %v747_v48  ;;  %v1096_v18 = vadd.f32 %v911_v12, %v748_v3  ;;  %v1486_v50 = vmul.f32 %v4183_v37, %v6903_v61  ;;  %v1546_v8 = vmul.f32 %v4197_v17, %v6904_v49  ;;  %v6906_v43 = vld [vmem:[#allocation44_spill] sm:$0xff]  ;;  %v6907_v48 = vld [vmem:[#allocation42_spill] sm:$0xff]  ;;  %v6908_v36 = vld [vmem:[#allocation39_spill] sm:$0xff] }
  0xa3   : > { %v1065_v52 = vadd.f32 %v1035_v21, %v1004_v7  ;;  %v1066_v27 = vadd.f32 %v1036_v4, %v1005_v60  ;;  %v1515_v38 = vadd.f32 %v1485_v62, %v1454_v5  ;;  %v1547_v22 = vmul.f32 %v4197_v17, %v6905_v41  ;;  %v6911_v4 = vld [vmem:[#allocation40_spill] sm:$0xff]  ;;  %v4420_v5 = vld [vmem:[%s3512_s28 + $0xb0] sm:$0xff]  ;;  %v4423_v7 = vld [vmem:[%s3512_s28 + $0xb8] sm:$0xff] }
  0xa4   : > { %v1516_v9 = vadd.f32 %v1486_v50, %v1455_v33  ;;  %v1609_v13 = vmul.f32 %v3700_v20, %v6906_v43  ;;  %v1610_v3 = vmul.f32 %v3700_v20, %v6907_v48  ;;  %v1642_v12 = vmul.f32 %v3722_v34, %v6908_v36  ;;  %v6912_v50 = vld [vmem:[#allocation46_spill] sm:$0xff]  ;;  %v6913_v41 = vld [vmem:[#allocation49_spill] sm:$0xff] }
  0xa5   : > { %v4413_v61 = vadd.f32 %v1095_v23, %v1065_v52  ;;  %v4415_v19 = vadd.f32 %v1096_v18, %v1066_v27  ;;  %v1576_v21 = vadd.f32 %v1546_v8, %v1515_v38  ;;  %v1643_v62 = vmul.f32 %v3722_v34, %v6911_v4  ;;  %v6914_v52 = vld [vmem:[#allocation33_spill] sm:$0xff]  ;;  %v6915_v27 = vld [vmem:[#allocation34_spill] sm:$0xff] }
  0xa6   : > { %v1577_v60 = vadd.f32 %v1547_v22, %v1516_v9  ;;  %v1674_v33 = vadd.f32 %v1642_v12, %v1609_v13  ;;  %v1707_v49 = vmul.f32 %v3726_v42, %v6912_v50  ;;  %v1708_v36 = vmul.f32 %v3726_v42, %v6913_v41  ;;  %v6924_v50 = vld [vmem:[#allocation24_spill] sm:$0xff] }
  0xa7   : > { %6909 = vst [vmem:[#allocation26_spill] sm:$0xff] %v4413_v61  ;;  %v1195_v23 = vmul.f32 %v3791_v44, %v4413_v61  ;;  %v1196_v18 = vmul.f32 %v3791_v44, %v4415_v19  ;;  %v1675_v8 = vadd.f32 %v1643_v62, %v1610_v3  ;;  %v1156_v38 = vpack.c.bf16 %v6915_v27, %v6914_v52  ;;  %v6919_v52 = vld [vmem:[#allocation22_spill] sm:$0xff] }
  0xa8   : > { %6910 = vst [vmem:[#allocation27_spill] sm:$0xff] %v4415_v19  ;;  %v1739_v4 = vadd.f32 %v1707_v49, %v1674_v33  ;;  %v428_v22 = vrot.slane %v4420_v5, 7  ;;  %v444_v9 = vrot.slane %v4423_v7, 7  ;;  %v530_v13 = vrot.slane %v4420_v5, 1 }
  0xa9   : > { %v4439_v12 = vadd.f32 %v3810_v30, %v1195_v23  ;;  %v4442_v41 = vadd.f32 %v3810_v30, %v1196_v18  ;;  %v1740_v61 = vadd.f32 %v1708_v36, %v1675_v8  ;;  %2216 = vmatmul.bf16.gmra.mxu1 %v1156_v38  ;;  %v546_v3 = vrot.slane %v4423_v7, 1 }
  0xaa   : > { %v1924_v62 = vadd.f32 %v1739_v4, %v1576_v21  ;;  %v4447_v33 = vsel %vm449_vm0, %v428_v22, %v444_v9  ;;  %v477_v49 = vsel %vm449_vm0, %v444_v9, %v428_v22  ;;  %v641_v27 = vmul.f32 %v6919_v52, %v3986_v32 }
  0xab   : > { %6916 = vst [vmem:[#allocation16_spill] sm:$0xff] %v4439_v12  ;;  %v1263_v23 = vrot.slane %v4439_v12, 7  ;;  %v1279_v18 = vrot.slane %v4442_v41, 7  ;;  %v1359_v36 = vrot.slane %v4439_v12, 1  ;;  %v1375_v8 = vrot.slane %v4442_v41, 1 }
  0xac   : > { %6917 = vst [vmem:[#allocation25_spill] sm:$0xff] %v4442_v41  ;;  %v1803_v21 = vmul.f32 %v6877_v39, %v4439_v12  ;;  %v1804_v4 = vmul.f32 %v6877_v39, %v4442_v41  ;;  %v1925_v38 = vadd.f32 %v1740_v61, %v1577_v60  ;;  %v4463_v22 = vsel %vm449_vm0, 0.0, %v477_v49 }
  0xad   : > { %6918 = vst [vmem:[#allocation17_spill] sm:$0xff] %v4447_v33  ;;  %v4467_v32 = vsel %vm449_vm0, %v1263_v23, %v1279_v18  ;;  %v1311_v9 = vsel %vm449_vm0, %v1279_v18, %v1263_v23  ;;  %v4473_v19 = vsel %vm551_vm1, %v1359_v36, %v1375_v8  ;;  %v1407_v12 = vsel %vm551_vm1, %v1375_v8, %v1359_v36 }
  0xae   : > { %6920 = vst [vmem:[#allocation28_spill] sm:$0xff] %v4467_v32  ;;  %v4479_v61 = vsel %vm449_vm0, 0.0, %v1311_v9  ;;  %v4483_v60 = vsel %vm585_vm2, 0.0, %v1407_v12  ;;  %v1773_v49 = vmul.f32 %v6876_v11, %v4467_v32  ;;  %v1864_v23 = vmul.f32 %v6878_v0, %v4473_v19 }
  0xaf   : > { %6921 = vst [vmem:[#allocation20_spill] sm:$0xff] %v4473_v19  ;;  %v1772_v18 = vmul.f32 %v6876_v11, %v4479_v61  ;;  %v1865_v36 = vmul.f32 %v6878_v0, %v4483_v60  ;;  %v4495_v8 = vsel %vm551_vm1, %v530_v13, %v546_v3  ;;  %v579_v12 = vsel %vm551_vm1, %v546_v3, %v530_v13 }
  0xb0   : > { %6922 = vst [vmem:[#allocation21_spill] sm:$0xff] %v4479_v61  ;;  %v1834_v9 = vadd.f32 %v1804_v4, %v1773_v49  ;;  %v4501_v41 = vsel %vm585_vm2, 0.0, %v579_v12  ;;  %v642_v19 = vmul.f32 %v6919_v52, %v3871_v58  ;;  %v672_v32 = vmul.f32 %v3646_v51, %v3783_v35 }
  0xb1   : > { %6923 = vst [vmem:[#allocation29_spill] sm:$0xff] %v4483_v60  ;;  %v1833_v61 = vadd.f32 %v1803_v21, %v1772_v18  ;;  %v673_v60 = vmul.f32 %v3646_v51, %v3804_v26  ;;  %v733_v48 = vmul.f32 %v6924_v50, %v4020_v29  ;;  %v734_v13 = vmul.f32 %v6924_v50, %v4048_v31 }
  0xb2   : > { %v1895_v3 = vadd.f32 %v1865_v36, %v1834_v9  ;;  %v702_v4 = vadd.f32 %v672_v32, %v641_v27  ;;  %v796_v49 = vmul.f32 %v3650_v53, %v3990_v45  ;;  %v797_v58 = vmul.f32 %v3650_v53, %v3950_v10 }
  0xb3   : > { %v1894_v12 = vadd.f32 %v1864_v23, %v1833_v61  ;;  %v703_v35 = vadd.f32 %v673_v60, %v642_v19  ;;  %v829_v21 = vmul.f32 %v6894_v14, %v3786_v40  ;;  %v830_v26 = vmul.f32 %v6894_v14, %v3820_v25 }
  0xb4   : > { %v1957_v29 = vadd.f32 %v1925_v38, %v1895_v3  ;;  %v763_v18 = vadd.f32 %v733_v48, %v702_v4  ;;  %v894_v31 = vmul.f32 %v3654_v55, %v4024_v16  ;;  %v895_v27 = vmul.f32 %v3654_v55, %v4052_v59 }
  0xb5   : > { %v1956_v32 = vadd.f32 %v1924_v62, %v1894_v12  ;;  %v764_v36 = vadd.f32 %v734_v13, %v703_v35  ;;  %v861_v9 = vadd.f32 %v829_v21, %v796_v49  ;;  %v862_v10 = vadd.f32 %v830_v26, %v797_v58 }
  0xb6   : > { %v959_v19 = vmul.f32 %v3656_v56, %v4463_v22  ;;  %v960_v40 = vmul.f32 %v3656_v56, %v4447_v33  ;;  %v990_v25 = vmul.f32 %v3695_v15, %v4420_v5  ;;  %v991_v48 = vmul.f32 %v3695_v15, %v4423_v7 }
  0xb7   : > { %v1987_v38 = vpack.c.bf16 %v1957_v29, %v1956_v32  ;;  %v926_v61 = vadd.f32 %v894_v31, %v861_v9  ;;  %v927_v60 = vadd.f32 %v895_v27, %v862_v10  ;;  %v1051_v62 = vmul.f32 %v3737_v57, %v4495_v8  ;;  %v6926_v27 = vld [vmem:[#allocation79_spill] sm:$0xff]  ;;  %v6927_v32 = vld [vmem:[#allocation74_spill] sm:$0xff] }
  0xb8   : > { %v1020_v23 = vadd.f32 %v990_v25, %v959_v19  ;;  %v1021_v13 = vadd.f32 %v991_v48, %v960_v40  ;;  %v1052_v3 = vmul.f32 %v3737_v57, %v4501_v41  ;;  %v1470_v4 = vmul.f32 %v4180_v54, %v4259_v46  ;;  %v6925_v57 = vld [vmem:[#allocation76_spill] sm:$0xff]  ;;  %v6928_v9 = vld [vmem:[#allocation71_spill] sm:$0xff] }
  0xb9   : > { %2079 = vmatmul.bf16.gmra.mxu0 %v1987_v38  ;;  %v1111_v49 = vadd.f32 %v926_v61, %v763_v18  ;;  %v1112_v58 = vadd.f32 %v927_v60, %v764_v36  ;;  %v1471_v12 = vmul.f32 %v4180_v54, %v4243_v63  ;;  %v1501_v10 = vmul.f32 %v4183_v37, %v4214_v28  ;;  %v6931_v38 = vld [vmem:[#allocation67_spill] sm:$0xff]  ;;  %v4560_v60 = vld [vmem:[%s3512_s28 + $0x40] sm:$0xff] }
  0xba   : > { %v1081_v35 = vadd.f32 %v1051_v62, %v1020_v23  ;;  %v1082_v21 = vadd.f32 %v1052_v3, %v1021_v13  ;;  %v1502_v26 = vmul.f32 %v4183_v37, %v4217_v47  ;;  %v1562_v29 = vmul.f32 %v4197_v17, %v6925_v57  ;;  %6932 = vst [vmem:[#allocation35_spill] sm:$0xff] %v4560_v60  ;;  %v4563_v62 = vld [vmem:[%s3512_s28 + $0x48] sm:$0xff]  ;;  %v6934_v13 = vld [vmem:[#allocation68_spill] sm:$0xff] }
  0xbb   : > { %v1531_v31 = vadd.f32 %v1501_v10, %v1470_v4  ;;  %v1563_v18 = vmul.f32 %v4197_v17, %v6926_v27  ;;  %v1625_v36 = vmul.f32 %v3700_v20, %v6927_v32  ;;  %v1626_v19 = vmul.f32 %v3700_v20, %v6928_v9  ;;  %6933 = vst [vmem:[#allocation38_spill] sm:$0xff] %v4563_v62  ;;  %v6935_v4 = vld [vmem:[#allocation78_spill] sm:$0xff]  ;;  %v6936_v27 = vld [vmem:[#allocation80_spill] sm:$0xff] }
  0xbc   : > { %v4553_v40 = vadd.f32 %v1111_v49, %v1081_v35  ;;  %v4555_v25 = vadd.f32 %v1112_v58, %v1082_v21  ;;  %v1532_v48 = vadd.f32 %v1502_v26, %v1471_v12  ;;  %v1658_v61 = vmul.f32 %v3722_v34, %v6931_v38  ;;  %v6937_v57 = vld [vmem:[#allocation60_spill] sm:$0xff] }
  0xbd   : > { %v1592_v23 = vadd.f32 %v1562_v29, %v1531_v31  ;;  %v1659_v3 = vmul.f32 %v3722_v34, %v6934_v13  ;;  %v1723_v10 = vmul.f32 %v3726_v42, %v6935_v4  ;;  %v1724_v49 = vmul.f32 %v3726_v42, %v6936_v27  ;;  %v6938_v29 = vld [vmem:[#allocation61_spill] sm:$0xff] }
  0xbe   : > { %6929 = vst [vmem:[#allocation43_spill] sm:$0xff] %v4553_v40  ;;  %v1211_v58 = vmul.f32 %v3791_v44, %v4553_v40  ;;  %v1212_v12 = vmul.f32 %v3791_v44, %v4555_v25  ;;  %v1593_v35 = vadd.f32 %v1563_v18, %v1532_v48  ;;  %v1690_v21 = vadd.f32 %v1658_v61, %v1625_v36 }
  0xbf   : > { %6930 = vst [vmem:[#allocation41_spill] sm:$0xff] %v4555_v25  ;;  %v1691_v26 = vadd.f32 %v1659_v3, %v1626_v19  ;;  %v1164_v31 = vpack.c.bf16 %v6938_v29, %v6937_v57  ;;  %v421_v47 = vrot.slane %v4560_v60, 7  ;;  %v437_v28 = vrot.slane %v4563_v62, 7 }
  0xc0   : > { %v4580_v63 = vadd.f32 %v3810_v30, %v1211_v58  ;;  %v4583_v46 = vadd.f32 %v3810_v30, %v1212_v12  ;;  %v1755_v40 = vadd.f32 %v1723_v10, %v1690_v21  ;;  %v523_v27 = vrot.slane %v4560_v60, 1 }
  0xc1   : > { %v1756_v44 = vadd.f32 %v1724_v49, %v1691_v26  ;;  %2256 = vmatmul.bf16.gmra.mxu3 %v1164_v31  ;;  %v4588_v18 = vsel %vm449_vm0, %v421_v47, %v437_v28  ;;  %v470_v57 = vsel %vm449_vm0, %v437_v28, %v421_v47  ;;  %v539_v36 = vrot.slane %v4563_v62, 1 }
  0xc2   : > { %6939 = vst [vmem:[#allocation45_spill] sm:$0xff] %v4580_v63  ;;  %v1271_v19 = vrot.slane %v4580_v63, 7  ;;  %v1287_v48 = vrot.slane %v4583_v46, 7  ;;  %v1367_v30 = vrot.slane %v4580_v63, 1  ;;  %v1383_v61 = vrot.slane %v4583_v46, 1 }
  0xc3   : > { %6940 = vst [vmem:[#allocation48_spill] sm:$0xff] %v4583_v46  ;;  %v1819_v3 = vmul.f32 %v6877_v39, %v4580_v63  ;;  %v1820_v10 = vmul.f32 %v6877_v39, %v4583_v46  ;;  %v1940_v49 = vadd.f32 %v1755_v40, %v1592_v23  ;;  %v1941_v58 = vadd.f32 %v1756_v44, %v1593_v35  ;;  %v3213_v46 = vld [vmem:[%s3512_s28 + $0x28] sm:$0xff]  ;;  %v6952_v63 = vld [vmem:[#allocation32_spill] sm:$0xff] }
  0xc4   : > { %6941 = vst [vmem:[#allocation44_spill] sm:$0xff] %v4588_v18  ;;  %v4603_v28 = vsel %vm449_vm0, %v1271_v19, %v1287_v48  ;;  %v1319_v47 = vsel %vm449_vm0, %v1287_v48, %v1271_v19  ;;  %v4609_v12 = vsel %vm551_vm1, %v1367_v30, %v1383_v61  ;;  %v1415_v21 = vsel %vm551_vm1, %v1383_v61, %v1367_v30  ;;  %v6948_v61 = vld [vmem:[#allocation19_spill] sm:$0xff] }
  0xc5   : > { %6942 = vst [vmem:[#allocation33_spill] sm:$0xff] %v4603_v28  ;;  %v4615_v26 = vsel %vm449_vm0, 0.0, %v1319_v47  ;;  %v4619_v40 = vsel %vm585_vm2, 0.0, %v1415_v21  ;;  %v1789_v23 = vmul.f32 %v6876_v11, %v4603_v28  ;;  %v1880_v35 = vmul.f32 %v6878_v0, %v4609_v12  ;;  %v6949_v21 = vld [vmem:[#allocation18_spill] sm:$0xff] }
  0xc6   : > { %6943 = vst [vmem:[#allocation34_spill] sm:$0xff] %v4609_v12  ;;  %v1788_v29 = vmul.f32 %v6876_v11, %v4615_v26  ;;  %v1881_v31 = vmul.f32 %v6878_v0, %v4619_v40  ;;  %v4631_v44 = vsel %vm449_vm0, 0.0, %v470_v57  ;;  %v4635_v19 = vsel %vm551_vm1, %v523_v27, %v539_v36  ;;  %v3212_v57 = vld [vmem:[%s3512_s28 + $0x20] sm:$0xff] }
  0xc7   : > { %6944 = vst [vmem:[#allocation74_spill] sm:$0xff] %v4615_v26  ;;  %v1850_v48 = vadd.f32 %v1820_v10, %v1789_v23  ;;  %v572_v30 = vsel %vm551_vm1, %v539_v36, %v523_v27  ;;  %v627_v47 = vmul.f32 %v6919_v52, %v6948_v61  ;;  %v628_v25 = vmul.f32 %v6919_v52, %v6949_v21  ;;  %v6951_v61 = vld [vmem:[#allocation47_spill] sm:$0xff]  ;;  %v6953_v26 = vld [vmem:[#allocation57_spill] sm:$0xff] }
  0xc8   : > { %6945 = vst [vmem:[#allocation71_spill] sm:$0xff] %v4619_v40  ;;  %v1849_v12 = vadd.f32 %v1819_v3, %v1788_v29  ;;  %v4645_v0 = vsel %vm585_vm2, 0.0, %v572_v30  ;;  %v658_v40 = vmul.f32 %v3212_v57, %v3646_v51  ;;  %v659_v10 = vmul.f32 %v3213_v46, %v3646_v51 }
  0xc9   : > { %6946 = vst [vmem:[#allocation60_spill] sm:$0xff] %v4631_v44  ;;  %v1911_v23 = vadd.f32 %v1881_v31, %v1850_v48  ;;  %v719_v27 = vmul.f32 %v6924_v50, %v6897_v24  ;;  %v720_v36 = vmul.f32 %v6924_v50, %v6898_v2  ;;  %v782_v3 = vmul.f32 %v3650_v53, %v6951_v61  ;;  %v6954_v31 = vld [vmem:[#allocation62_spill] sm:$0xff]  ;;  %v6956_v61 = vld [vmem:[#allocation15_spill] sm:$0xff] }
  0xca   : > { %6947 = vst [vmem:[#allocation61_spill] sm:$0xff] %v4635_v19  ;;  %v1910_v29 = vadd.f32 %v1880_v35, %v1849_v12  ;;  %v688_v21 = vadd.f32 %v658_v40, %v627_v47  ;;  %v689_v30 = vadd.f32 %v659_v10, %v628_v25  ;;  %v783_v28 = vmul.f32 %v3650_v53, %v6952_v63  ;;  %v6955_v24 = vld [vmem:[#allocation14_spill] sm:$0xff] }
  0xcb   : > { %6950 = vst [vmem:[#allocation19_spill] sm:$0xff] %v4645_v0  ;;  %v1973_v57 = vadd.f32 %v1941_v58, %v1911_v23  ;;  %v815_v46 = vmul.f32 %v6894_v14, %v6953_v26  ;;  %v816_v48 = vmul.f32 %v6894_v14, %v6954_v31  ;;  %v880_v4 = vmul.f32 %v3654_v55, %v6955_v24  ;;  %v4678_v23 = vld [vmem:[%s6481_s1 + $0x8] ss:$0 sm:$0xff] }
  0xcc   : > { %v1972_v2 = vadd.f32 %v1940_v49, %v1910_v29  ;;  %v749_v13 = vadd.f32 %v719_v27, %v688_v21  ;;  %v750_v38 = vadd.f32 %v720_v36, %v689_v30  ;;  %v881_v12 = vmul.f32 %v3654_v55, %v6956_v61 }
  0xcd   : > { %v847_v25 = vadd.f32 %v815_v46, %v782_v3  ;;  %v848_v40 = vadd.f32 %v816_v48, %v783_v28  ;;  %v945_v58 = vmul.f32 %v3656_v56, %v4631_v44  ;;  %v946_v35 = vmul.f32 %v3656_v56, %v4588_v18  ;;  %v6958_v48 = vld [vmem:[#allocation39_spill] sm:$0xff] }
  0xce   : > { %v1995_v47 = vpack.c.bf16 %v1973_v57, %v1972_v2  ;;  %v976_v10 = vmul.f32 %v3695_v15, %v4560_v60  ;;  %v977_v49 = vmul.f32 %v3695_v15, %v4563_v62  ;;  %v1037_v28 = vmul.f32 %v4678_v23, %v4635_v19  ;;  %v6957_v57 = vld [vmem:[#allocation42_spill] sm:$0xff] }
  0xcf   : > { %v912_v27 = vadd.f32 %v880_v4, %v847_v25  ;;  %v913_v36 = vadd.f32 %v881_v12, %v848_v40  ;;  %v1038_v3 = vmul.f32 %v4678_v23, %v4645_v0  ;;  %v1456_v29 = vmul.f32 %v4180_v54, %v6906_v43  ;;  %v6959_v4 = vld [vmem:[#allocation40_spill] sm:$0xff]  ;;  %v6960_v25 = vld [vmem:[#allocation46_spill] sm:$0xff] }
  0xd0   : > { %2119 = vmatmul.bf16.gmra.mxu2 %v1995_v47  ;;  %v1006_v21 = vadd.f32 %v976_v10, %v945_v58  ;;  %v1007_v30 = vadd.f32 %v977_v49, %v946_v35  ;;  %v1457_v46 = vmul.f32 %v4180_v54, %v6957_v57  ;;  %v1487_v2 = vmul.f32 %v4183_v37, %v6958_v48  ;;  %v6961_v35 = vld [vmem:[#allocation49_spill] sm:$0xff] }
  0xd1   : > { %v1097_v62 = vadd.f32 %v912_v27, %v749_v13  ;;  %v1098_v19 = vadd.f32 %v913_v36, %v750_v38  ;;  %v1488_v12 = vmul.f32 %v4183_v37, %v6959_v4  ;;  %v1548_v40 = vmul.f32 %v4197_v17, %v6960_v25  ;;  %v6962_v57 = vld [vmem:[#allocation21_spill] sm:$0xff]  ;;  %v6963_v13 = vld [vmem:[#allocation28_spill] sm:$0xff] }
  0xd2   : > { %v1067_v43 = vadd.f32 %v1037_v28, %v1006_v21  ;;  %v1068_v47 = vadd.f32 %v1038_v3, %v1007_v30  ;;  %v1517_v58 = vadd.f32 %v1487_v2, %v1456_v29  ;;  %v1549_v10 = vmul.f32 %v4197_v17, %v6961_v35  ;;  %v6964_v27 = vld [vmem:[#allocation16_spill] sm:$0xff]  ;;  %v6967_v3 = vld [vmem:[#allocation25_spill] sm:$0xff] }
  0xd3   : > { %v1518_v49 = vadd.f32 %v1488_v12, %v1457_v46  ;;  %v1611_v48 = vmul.f32 %v3700_v20, %v6962_v57  ;;  %v1612_v38 = vmul.f32 %v3700_v20, %v6963_v13  ;;  %v1644_v36 = vmul.f32 %v3722_v34, %v6964_v27  ;;  %v4709_v21 = vld [vmem:[%s3512_s28 + $0xc0] sm:$0xff]  ;;  %v4712_v30 = vld [vmem:[%s3512_s28 + $0xc8] sm:$0xff]  ;;  %v6983_v13 = vld [vmem:[#allocation50_spill] sm:$0xff] }
  0xd4   : > { %v4702_v4 = vadd.f32 %v1097_v62, %v1067_v43  ;;  %v4704_v0 = vadd.f32 %v1098_v19, %v1068_v47  ;;  %v1578_v28 = vadd.f32 %v1548_v40, %v1517_v58  ;;  %v1645_v29 = vmul.f32 %v3722_v34, %v6967_v3  ;;  %6968 = vst [vmem:[#allocation57_spill] sm:$0xff] %v4712_v30  ;;  %v6969_v12 = vld [vmem:[#allocation20_spill] sm:$0xff]  ;;  %v6970_v35 = vld [vmem:[#allocation29_spill] sm:$0xff]  ;;  %v6971_v47 = vld [vmem:[#allocation26_spill] sm:$0xff] }
  0xd5   : > { %v1579_v46 = vadd.f32 %v1549_v10, %v1518_v49  ;;  %v1676_v2 = vadd.f32 %v1644_v36, %v1611_v48  ;;  %v1709_v25 = vmul.f32 %v3726_v42, %v6969_v12  ;;  %v1710_v27 = vmul.f32 %v3726_v42, %v6970_v35  ;;  %v4721_v62 = vld [vmem:[%s6482_s2] ss:$0 sm:$0xff]  ;;  %v6972_v58 = vld [vmem:[#allocation27_spill] sm:$0xff] }
  0xd6   : > { %6965 = vst [vmem:[#allocation18_spill] sm:$0xff] %v4702_v4  ;;  %v1197_v19 = vmul.f32 %v4721_v62, %v4702_v4  ;;  %v1198_v40 = vmul.f32 %v4721_v62, %v4704_v0  ;;  %v1677_v43 = vadd.f32 %v1645_v29, %v1612_v38  ;;  %v1157_v10 = vpack.c.bf16 %v6972_v58, %v6971_v47  ;;  %v4735_v12 = vld [vmem:[%s6483_s3] ss:$0 sm:$0xff] }
  0xd7   : > { %6966 = vst [vmem:[#allocation32_spill] sm:$0xff] %v4704_v0  ;;  %v1741_v49 = vadd.f32 %v1709_v25, %v1676_v2  ;;  %v429_v48 = vrot.slane %v4709_v21, 7  ;;  %v445_v36 = vrot.slane %v4712_v30, 7  ;;  %v531_v35 = vrot.slane %v4709_v21, 1  ;;  %v3218_v57 = vld [vmem:[%s3512_s28 + $0xa0] sm:$0xff] }
  0xd8   : > { %v4738_v4 = vadd.f32 %v4735_v12, %v1197_v19  ;;  %v4741_v38 = vadd.f32 %v4735_v12, %v1198_v40  ;;  %v1742_v29 = vadd.f32 %v1710_v27, %v1677_v43  ;;  %2221 = vmatmul.bf16.gmra.mxu1 %v1157_v10  ;;  %v547_v2 = vrot.slane %v4712_v30, 1 }
  0xd9   : > { %v1926_v25 = vadd.f32 %v1741_v49, %v1578_v28  ;;  %v4746_v47 = vsel %vm449_vm0, %v429_v48, %v445_v36  ;;  %v478_v58 = vsel %vm449_vm0, %v445_v36, %v429_v48  ;;  %v643_v0 = vmul.f32 %v6919_v52, %v3990_v45 }
  0xda   : > { %6973 = vst [vmem:[#allocation62_spill] sm:$0xff] %v4738_v4  ;;  %v1264_v19 = vrot.slane %v4738_v4, 7  ;;  %v1280_v40 = vrot.slane %v4741_v38, 7  ;;  %v1360_v27 = vrot.slane %v4738_v4, 1  ;;  %v1376_v43 = vrot.slane %v4741_v38, 1 }
  0xdb   : > { %6974 = vst [vmem:[#allocation14_spill] sm:$0xff] %v4741_v38  ;;  %v1805_v28 = vmul.f32 %v6877_v39, %v4738_v4  ;;  %v1806_v10 = vmul.f32 %v6877_v39, %v4741_v38  ;;  %v1927_v49 = vadd.f32 %v1742_v29, %v1579_v46  ;;  %v4762_v48 = vsel %vm449_vm0, 0.0, %v478_v58 }
  0xdc   : > { %6975 = vst [vmem:[#allocation15_spill] sm:$0xff] %v4746_v47  ;;  %v4766_v45 = vsel %vm449_vm0, %v1264_v19, %v1280_v40  ;;  %v1312_v36 = vsel %vm449_vm0, %v1280_v40, %v1264_v19  ;;  %v4772_v3 = vsel %vm551_vm1, %v1360_v27, %v1376_v43  ;;  %v1408_v38 = vsel %vm551_vm1, %v1376_v43, %v1360_v27  ;;  %v4789_v19 = vld [vmem:[%s6484_s4 + $0x8] ss:$0 sm:$0xff] }
  0xdd   : > { %6976 = vst [vmem:[#allocation42_spill] sm:$0xff] %v4762_v48  ;;  %v4778_v46 = vsel %vm449_vm0, 0.0, %v1312_v36  ;;  %v4782_v29 = vsel %vm585_vm2, 0.0, %v1408_v38  ;;  %v1775_v58 = vmul.f32 %v6876_v11, %v4766_v45  ;;  %v1866_v40 = vmul.f32 %v4789_v19, %v4772_v3 }
  0xde   : > { %6977 = vst [vmem:[#allocation39_spill] sm:$0xff] %v4766_v45  ;;  %v1774_v27 = vmul.f32 %v6876_v11, %v4778_v46  ;;  %v1867_v43 = vmul.f32 %v4789_v19, %v4782_v29  ;;  %v4799_v38 = vsel %vm551_vm1, %v531_v35, %v547_v2  ;;  %v580_v36 = vsel %vm551_vm1, %v547_v2, %v531_v35 }
  0xdf   : > { %6978 = vst [vmem:[#allocation40_spill] sm:$0xff] %v4772_v3  ;;  %v1836_v4 = vadd.f32 %v1806_v10, %v1775_v58  ;;  %v4805_v45 = vsel %vm585_vm2, 0.0, %v580_v36  ;;  %v644_v3 = vmul.f32 %v6919_v52, %v6983_v13  ;;  %v735_v44 = vmul.f32 %v6924_v50, %v4024_v16 }
  0xe0   : > { %6979 = vst [vmem:[#allocation46_spill] sm:$0xff] %v4778_v46  ;;  %v674_v46 = vmul.f32 %v3218_v57, %v3646_v51  ;;  %v1835_v60 = vadd.f32 %v1805_v28, %v1774_v27  ;;  %v736_v35 = vmul.f32 %v6924_v50, %v4052_v59  ;;  %v798_v58 = vmul.f32 %v3650_v53, %v4463_v22 }
  0xe1   : > { %6980 = vst [vmem:[#allocation49_spill] sm:$0xff] %v4782_v29  ;;  %v3219_v29 = vld [vmem:[%s3512_s28 + $0xa8] sm:$0xff]  ;;  %v1897_v2 = vadd.f32 %v1867_v43, %v1836_v4  ;;  %v799_v13 = vmul.f32 %v3650_v53, %v4447_v33  ;;  %v831_v28 = vmul.f32 %v6894_v14, %v4420_v5  ;;  %v896_v59 = vmul.f32 %v3654_v55, %v4495_v8 }
  0xe2   : > { %6981 = vst [vmem:[#allocation26_spill] sm:$0xff] %v4799_v38  ;;  %v675_v18 = vmul.f32 %v3219_v29, %v3646_v51  ;;  %v704_v10 = vadd.f32 %v674_v46, %v643_v0  ;;  %v1896_v36 = vadd.f32 %v1866_v40, %v1835_v60  ;;  %v832_v29 = vmul.f32 %v6894_v14, %v4423_v7 }
  0xe3   : > { %6982 = vst [vmem:[#allocation27_spill] sm:$0xff] %v4805_v45  ;;  %v1959_v16 = vadd.f32 %v1927_v49, %v1897_v2  ;;  %v897_v0 = vmul.f32 %v3654_v55, %v4501_v41  ;;  %v863_v43 = vadd.f32 %v831_v28, %v798_v58  ;;  %v961_v60 = vmul.f32 %v3656_v56, %v4762_v48 }
  0xe4   : > { %v705_v57 = vadd.f32 %v675_v18, %v644_v3  ;;  %v765_v27 = vadd.f32 %v735_v44, %v704_v10  ;;  %v1958_v4 = vadd.f32 %v1926_v25, %v1896_v36  ;;  %v864_v33 = vadd.f32 %v832_v29, %v799_v13 }
  0xe5   : > { %v962_v18 = vmul.f32 %v3656_v56, %v4746_v47  ;;  %v992_v3 = vmul.f32 %v3695_v15, %v4709_v21  ;;  %v993_v44 = vmul.f32 %v3695_v15, %v4712_v30  ;;  %v928_v40 = vadd.f32 %v896_v59, %v863_v43  ;;  %v6986_v43 = vld [vmem:[#allocation78_spill] sm:$0xff] }
  0xe6   : > { %v766_v46 = vadd.f32 %v736_v35, %v705_v57  ;;  %v1988_v49 = vpack.c.bf16 %v1959_v16, %v1958_v4  ;;  %v929_v2 = vadd.f32 %v897_v0, %v864_v33  ;;  %v1053_v25 = vmul.f32 %v4678_v23, %v4799_v38  ;;  %v6984_v33 = vld [vmem:[#allocation67_spill] sm:$0xff]  ;;  %v6985_v0 = vld [vmem:[#allocation68_spill] sm:$0xff] }
  0xe7   : > { %v1022_v35 = vadd.f32 %v992_v3, %v961_v60  ;;  %v1023_v10 = vadd.f32 %v993_v44, %v962_v18  ;;  %v1054_v58 = vmul.f32 %v4678_v23, %v4805_v45  ;;  %v1472_v13 = vmul.f32 %v4180_v54, %v6927_v32  ;;  %v6987_v18 = vld [vmem:[#allocation80_spill] sm:$0xff]  ;;  %v6989_v44 = vld [vmem:[#allocation33_spill] sm:$0xff] }
  0xe8   : > { %2084 = vmatmul.bf16.gmra.mxu0 %v1988_v49  ;;  %v1113_v36 = vadd.f32 %v928_v40, %v765_v27  ;;  %v1114_v57 = vadd.f32 %v929_v2, %v766_v46  ;;  %v1473_v28 = vmul.f32 %v4180_v54, %v6928_v9  ;;  %v1503_v29 = vmul.f32 %v4183_v37, %v6984_v33  ;;  %v6988_v46 = vld [vmem:[#allocation74_spill] sm:$0xff]  ;;  %v6995_v33 = vld [vmem:[#allocation48_spill] sm:$0xff] }
  0xe9   : > { %v1083_v16 = vadd.f32 %v1053_v25, %v1022_v35  ;;  %v1084_v59 = vadd.f32 %v1054_v58, %v1023_v10  ;;  %v1504_v4 = vmul.f32 %v4183_v37, %v6985_v0  ;;  %v1564_v60 = vmul.f32 %v4197_v17, %v6986_v43  ;;  %v6992_v25 = vld [vmem:[#allocation45_spill] sm:$0xff]  ;;  %v4864_v10 = vld [vmem:[%s3512_s28 + $0x50] sm:$0xff]  ;;  %v4867_v58 = vld [vmem:[%s3512_s28 + $0x58] sm:$0xff] }
  0xea   : > { %v1533_v32 = vadd.f32 %v1503_v29, %v1472_v13  ;;  %v1565_v27 = vmul.f32 %v4197_v17, %v6987_v18  ;;  %v1627_v3 = vmul.f32 %v3700_v20, %v6988_v46  ;;  %v1628_v9 = vmul.f32 %v3700_v20, %v6989_v44  ;;  %6993 = vst [vmem:[#allocation68_spill] sm:$0xff] %v4864_v10  ;;  %v6996_v0 = vld [vmem:[#allocation34_spill] sm:$0xff]  ;;  %v6997_v18 = vld [vmem:[#allocation71_spill] sm:$0xff] }
  0xeb   : > { %v4857_v49 = vadd.f32 %v1113_v36, %v1083_v16  ;;  %v4859_v40 = vadd.f32 %v1114_v57, %v1084_v59  ;;  %v1534_v2 = vadd.f32 %v1504_v4, %v1473_v28  ;;  %v1660_v35 = vmul.f32 %v3722_v34, %v6992_v25  ;;  %6994 = vst [vmem:[#allocation78_spill] sm:$0xff] %v4867_v58  ;;  %v6998_v25 = vld [vmem:[#allocation43_spill] sm:$0xff] }
  0xec   : > { %v1594_v13 = vadd.f32 %v1564_v60, %v1533_v32  ;;  %v1661_v29 = vmul.f32 %v3722_v34, %v6995_v33  ;;  %v1725_v43 = vmul.f32 %v3726_v42, %v6996_v0  ;;  %v1726_v36 = vmul.f32 %v3726_v42, %v6997_v18  ;;  %v6999_v60 = vld [vmem:[#allocation41_spill] sm:$0xff] }
  0xed   : > { %6990 = vst [vmem:[#allocation50_spill] sm:$0xff] %v4857_v49  ;;  %v1213_v57 = vmul.f32 %v4721_v62, %v4857_v49  ;;  %v1214_v28 = vmul.f32 %v4721_v62, %v4859_v40  ;;  %v1595_v16 = vadd.f32 %v1565_v27, %v1534_v2  ;;  %v1692_v59 = vadd.f32 %v1660_v35, %v1627_v3 }
  0xee   : > { %6991 = vst [vmem:[#allocation67_spill] sm:$0xff] %v4859_v40  ;;  %v1693_v4 = vadd.f32 %v1661_v29, %v1628_v9  ;;  %v1165_v32 = vpack.c.bf16 %v6999_v60, %v6998_v25  ;;  %v422_v33 = vrot.slane %v4864_v10, 7  ;;  %v438_v44 = vrot.slane %v4867_v58, 7 }
  0xef   : > { %v4884_v0 = vadd.f32 %v4735_v12, %v1213_v57  ;;  %v4887_v18 = vadd.f32 %v4735_v12, %v1214_v28  ;;  %v1757_v49 = vadd.f32 %v1725_v43, %v1692_v59  ;;  %v524_v46 = vrot.slane %v4864_v10, 1 }
  0xf0   : > { %v1758_v40 = vadd.f32 %v1726_v36, %v1693_v4  ;;  %2261 = vmatmul.bf16.gmra.mxu3 %v1165_v32  ;;  %v4892_v27 = vsel %vm449_vm0, %v422_v33, %v438_v44  ;;  %v471_v3 = vsel %vm449_vm0, %v438_v44, %v422_v33  ;;  %v540_v9 = vrot.slane %v4867_v58, 1 }
  0xf1   : > { %7000 = vst [vmem:[#allocation80_spill] sm:$0xff] %v4884_v0  ;;  %v1272_v2 = vrot.slane %v4884_v0, 7  ;;  %v1288_v25 = vrot.slane %v4887_v18, 7  ;;  %v1368_v35 = vrot.slane %v4884_v0, 1  ;;  %v1384_v29 = vrot.slane %v4887_v18, 1 }
  0xf2   : > { %7001 = vst [vmem:[#allocation43_spill] sm:$0xff] %v4887_v18  ;;  %v1821_v43 = vmul.f32 %v6877_v39, %v4884_v0  ;;  %v1822_v36 = vmul.f32 %v6877_v39, %v4887_v18  ;;  %v1942_v57 = vadd.f32 %v1757_v49, %v1594_v13  ;;  %v1943_v28 = vadd.f32 %v1758_v40, %v1595_v16  ;;  %v7012_v0 = vld [vmem:[#allocation44_spill] sm:$0xff] }
  0xf3   : > { %7002 = vst [vmem:[#allocation41_spill] sm:$0xff] %v4892_v27  ;;  %v4907_v44 = vsel %vm449_vm0, %v1272_v2, %v1288_v25  ;;  %v1320_v33 = vsel %vm449_vm0, %v1288_v25, %v1272_v2  ;;  %v4913_v59 = vsel %vm551_vm1, %v1368_v35, %v1384_v29  ;;  %v1416_v4 = vsel %vm551_vm1, %v1384_v29, %v1368_v35 }
  0xf4   : > { %7003 = vst [vmem:[#allocation81_spill] sm:$0xff] %v4907_v44  ;;  %v4919_v60 = vsel %vm449_vm0, 0.0, %v1320_v33  ;;  %v4923_v49 = vsel %vm585_vm2, 0.0, %v1416_v4  ;;  %v1791_v40 = vmul.f32 %v6876_v11, %v4907_v44  ;;  %v1882_v13 = vmul.f32 %v4789_v19, %v4913_v59  ;;  %v7009_v33 = vld [vmem:[#allocation47_spill] sm:$0xff] }
  0xf5   : > { %7004 = vst [vmem:[#allocation82_spill] sm:$0xff] %v4913_v59  ;;  %v1790_v16 = vmul.f32 %v6876_v11, %v4919_v60  ;;  %v1883_v32 = vmul.f32 %v4789_v19, %v4923_v49  ;;  %v4935_v2 = vsel %vm449_vm0, 0.0, %v471_v3  ;;  %v4939_v25 = vsel %vm551_vm1, %v524_v46, %v540_v9 }
  0xf6   : > { %7005 = vst [vmem:[#allocation83_spill] sm:$0xff] %v4919_v60  ;;  %v1852_v35 = vadd.f32 %v1822_v36, %v1791_v40  ;;  %v573_v29 = vsel %vm551_vm1, %v540_v9, %v524_v46  ;;  %v629_v4 = vmul.f32 %v6919_v52, %v7009_v33  ;;  %v630_v59 = vmul.f32 %v6919_v52, %v6952_v63  ;;  %v7011_v33 = vld [vmem:[#allocation60_spill] sm:$0xff]  ;;  %v7013_v60 = vld [vmem:[#allocation35_spill] sm:$0xff] }
  0xf7   : > { %7006 = vst [vmem:[#allocation84_spill] sm:$0xff] %v4923_v49  ;;  %v1851_v18 = vadd.f32 %v1821_v43, %v1790_v16  ;;  %v4949_v49 = vsel %vm585_vm2, 0.0, %v573_v29  ;;  %v660_v3 = vmul.f32 %v3646_v51, %v6953_v26  ;;  %v661_v36 = vmul.f32 %v3646_v51, %v6954_v31 }
  0xf8   : > { %7007 = vst [vmem:[#allocation85_spill] sm:$0xff] %v4935_v2  ;;  %v1913_v40 = vadd.f32 %v1883_v32, %v1852_v35  ;;  %v721_v46 = vmul.f32 %v6924_v50, %v6955_v24  ;;  %v722_v9 = vmul.f32 %v6924_v50, %v6956_v61  ;;  %v784_v63 = vmul.f32 %v3650_v53, %v7011_v33  ;;  %v7014_v32 = vld [vmem:[#allocation38_spill] sm:$0xff]  ;;  %v7015_v24 = vld [vmem:[#allocation61_spill] sm:$0xff]  ;;  %v7016_v33 = vld [vmem:[#allocation19_spill] sm:$0xff] }
  0xf9   : > { %7008 = vst [vmem:[#allocation86_spill] sm:$0xff] %v4939_v25  ;;  %v1912_v43 = vadd.f32 %v1882_v13, %v1851_v18  ;;  %v690_v16 = vadd.f32 %v660_v3, %v629_v4  ;;  %v691_v29 = vadd.f32 %v661_v36, %v630_v59  ;;  %v785_v44 = vmul.f32 %v3650_v53, %v7012_v0 }
  0xfa   : > { %7010 = vst [vmem:[#allocation47_spill] sm:$0xff] %v4949_v49  ;;  %v1975_v26 = vadd.f32 %v1943_v28, %v1913_v40  ;;  %v817_v31 = vmul.f32 %v6894_v14, %v7013_v60  ;;  %v818_v35 = vmul.f32 %v6894_v14, %v7014_v32  ;;  %v882_v45 = vmul.f32 %v3654_v55, %v7015_v24 }
  0xfb   : > { %v1974_v61 = vadd.f32 %v1942_v57, %v1912_v43  ;;  %v751_v38 = vadd.f32 %v721_v46, %v690_v16  ;;  %v752_v30 = vadd.f32 %v722_v9, %v691_v29  ;;  %v883_v18 = vmul.f32 %v3654_v55, %v7016_v33 }
  0xfc   : > { %v849_v59 = vadd.f32 %v817_v31, %v784_v63  ;;  %v850_v13 = vadd.f32 %v818_v35, %v785_v44  ;;  %v947_v28 = vmul.f32 %v3656_v56, %v4935_v2  ;;  %v948_v4 = vmul.f32 %v3656_v56, %v4892_v27  ;;  %v7017_v63 = vld [vmem:[#allocation21_spill] sm:$0xff]  ;;  %v7019_v35 = vld [vmem:[#allocation16_spill] sm:$0xff] }
  0xfd   : > { %v1996_v3 = vpack.c.bf16 %v1975_v26, %v1974_v61  ;;  %v978_v36 = vmul.f32 %v3695_v15, %v4864_v10  ;;  %v979_v57 = vmul.f32 %v3695_v15, %v4867_v58  ;;  %v1039_v40 = vmul.f32 %v4678_v23, %v4939_v25  ;;  %v7018_v26 = vld [vmem:[#allocation28_spill] sm:$0xff] }
  0xfe   : > { %v914_v46 = vadd.f32 %v882_v45, %v849_v59  ;;  %v915_v9 = vadd.f32 %v883_v18, %v850_v13  ;;  %v1040_v44 = vmul.f32 %v4678_v23, %v4949_v49  ;;  %v1458_v43 = vmul.f32 %v4180_v54, %v7017_v63  ;;  %v7020_v45 = vld [vmem:[#allocation25_spill] sm:$0xff]  ;;  %v7021_v59 = vld [vmem:[#allocation20_spill] sm:$0xff] }
  0xff   : > { %2124 = vmatmul.bf16.gmra.mxu2 %v1996_v3  ;;  %v1008_v16 = vadd.f32 %v978_v36, %v947_v28  ;;  %v1009_v29 = vadd.f32 %v979_v57, %v948_v4  ;;  %v1459_v31 = vmul.f32 %v4180_v54, %v7018_v26  ;;  %v1489_v61 = vmul.f32 %v4183_v37, %v7019_v35  ;;  %v7022_v4 = vld [vmem:[#allocation29_spill] sm:$0xff]  ;;  %v7023_v26 = vld [vmem:[#allocation46_spill] sm:$0xff] }
 0x100   : > { %v1099_v58 = vadd.f32 %v914_v46, %v751_v38  ;;  %v1100_v25 = vadd.f32 %v915_v9, %v752_v30  ;;  %v1490_v18 = vmul.f32 %v4183_v37, %v7020_v45  ;;  %v1550_v13 = vmul.f32 %v4197_v17, %v7021_v59  ;;  %v7024_v38 = vld [vmem:[#allocation39_spill] sm:$0xff]  ;;  %v7025_v46 = vld [vmem:[#allocation62_spill] sm:$0xff] }
 0x101   : > { %v1069_v63 = vadd.f32 %v1039_v40, %v1008_v16  ;;  %v1070_v3 = vadd.f32 %v1040_v44, %v1009_v29  ;;  %v1519_v28 = vadd.f32 %v1489_v61, %v1458_v43  ;;  %v1551_v36 = vmul.f32 %v4197_v17, %v7022_v4  ;;  %v7028_v44 = vld [vmem:[#allocation14_spill] sm:$0xff]  ;;  %v5011_v29 = vld [vmem:[%s3512_s28 + $0xd8] sm:$0xff]  ;;  %v7031_v4 = vld [vmem:[#allocation49_spill] sm:$0xff] }
 0x102   : > { %v1520_v57 = vadd.f32 %v1490_v18, %v1459_v31  ;;  %v1613_v35 = vmul.f32 %v3700_v20, %v7023_v26  ;;  %v1614_v30 = vmul.f32 %v3700_v20, %v7024_v38  ;;  %v1646_v9 = vmul.f32 %v3722_v34, %v7025_v46  ;;  %v5008_v16 = vld [vmem:[%s3512_s28 + $0xd0] sm:$0xff]  ;;  %7029 = vst [vmem:[#allocation38_spill] sm:$0xff] %v5011_v29  ;;  %v7030_v18 = vld [vmem:[#allocation40_spill] sm:$0xff] }
 0x103   : > { %v5001_v45 = vadd.f32 %v1099_v58, %v1069_v63  ;;  %v5003_v49 = vadd.f32 %v1100_v25, %v1070_v3  ;;  %v1580_v40 = vadd.f32 %v1550_v13, %v1519_v28  ;;  %v1647_v43 = vmul.f32 %v3722_v34, %v7028_v44  ;;  %v7032_v63 = vld [vmem:[#allocation18_spill] sm:$0xff]  ;;  %v7033_v3 = vld [vmem:[#allocation32_spill] sm:$0xff] }
 0x104   : > { %v1581_v31 = vadd.f32 %v1551_v36, %v1520_v57  ;;  %v1678_v61 = vadd.f32 %v1646_v9, %v1613_v35  ;;  %v1711_v59 = vmul.f32 %v3726_v42, %v7030_v18  ;;  %v1712_v46 = vmul.f32 %v3726_v42, %v7031_v4  ;;  %v7042_v26 = vld [vmem:[#allocation26_spill] sm:$0xff] }
 0x105   : > { %7026 = vst [vmem:[#allocation44_spill] sm:$0xff] %v5001_v45  ;;  %v1199_v58 = vmul.f32 %v4721_v62, %v5001_v45  ;;  %v1200_v25 = vmul.f32 %v4721_v62, %v5003_v49  ;;  %v1679_v13 = vadd.f32 %v1647_v43, %v1614_v30  ;;  %v1158_v28 = vpack.c.bf16 %v7033_v3, %v7032_v63 }
 0x106   : > { %7027 = vst [vmem:[#allocation35_spill] sm:$0xff] %v5003_v49  ;;  %v1743_v44 = vadd.f32 %v1711_v59, %v1678_v61  ;;  %v430_v36 = vrot.slane %v5008_v16, 7  ;;  %v446_v57 = vrot.slane %v5011_v29, 7  ;;  %v532_v35 = vrot.slane %v5008_v16, 1 }
 0x107   : > { %v5027_v9 = vadd.f32 %v4735_v12, %v1199_v58  ;;  %v5030_v4 = vadd.f32 %v4735_v12, %v1200_v25  ;;  %v1744_v45 = vadd.f32 %v1712_v46, %v1679_v13  ;;  %2226 = vmatmul.bf16.gmra.mxu1 %v1158_v28  ;;  %v548_v30 = vrot.slane %v5011_v29, 1 }
 0x108   : > { %v1928_v43 = vadd.f32 %v1743_v44, %v1580_v40  ;;  %v5035_v61 = vsel %vm449_vm0, %v430_v36, %v446_v57  ;;  %v479_v59 = vsel %vm449_vm0, %v446_v57, %v430_v36  ;;  %v645_v63 = vmul.f32 %v6919_v52, %v4463_v22 }
 0x109   : > { %7034 = vst [vmem:[#allocation61_spill] sm:$0xff] %v5027_v9  ;;  %v1265_v58 = vrot.slane %v5027_v9, 7  ;;  %v1281_v25 = vrot.slane %v5030_v4, 7  ;;  %v1361_v46 = vrot.slane %v5027_v9, 1  ;;  %v1377_v13 = vrot.slane %v5030_v4, 1 }
 0x10a   : > { %7035 = vst [vmem:[#allocation19_spill] sm:$0xff] %v5030_v4  ;;  %v1807_v40 = vmul.f32 %v6877_v39, %v5027_v9  ;;  %v1808_v44 = vmul.f32 %v6877_v39, %v5030_v4  ;;  %v1929_v3 = vadd.f32 %v1744_v45, %v1581_v31  ;;  %v5051_v28 = vsel %vm449_vm0, 0.0, %v479_v59  ;;  %v7040_v9 = vld [vmem:[#allocation17_spill] sm:$0xff] }
 0x10b   : > { %v5055_v22 = vsel %vm449_vm0, %v1265_v58, %v1281_v25  ;;  %v1313_v36 = vsel %vm449_vm0, %v1281_v25, %v1265_v58  ;;  %v5061_v57 = vsel %vm551_vm1, %v1361_v46, %v1377_v13  ;;  %v1409_v49 = vsel %vm551_vm1, %v1377_v13, %v1361_v46 }
 0x10c   : > { %7036 = vst [vmem:[#allocation21_spill] sm:$0xff] %v5055_v22  ;;  %v5067_v45 = vsel %vm449_vm0, 0.0, %v1313_v36  ;;  %v5071_v31 = vsel %vm585_vm2, 0.0, %v1409_v49  ;;  %v1777_v59 = vmul.f32 %v6876_v11, %v5055_v22  ;;  %v1868_v58 = vmul.f32 %v4789_v19, %v5061_v57 }
 0x10d   : > { %7037 = vst [vmem:[#allocation28_spill] sm:$0xff] %v5061_v57  ;;  %v1776_v25 = vmul.f32 %v6876_v11, %v5067_v45  ;;  %v1869_v46 = vmul.f32 %v4789_v19, %v5071_v31  ;;  %v5083_v13 = vsel %vm551_vm1, %v532_v35, %v548_v30  ;;  %v581_v49 = vsel %vm551_vm1, %v548_v30, %v532_v35 }
 0x10e   : > { %7038 = vst [vmem:[#allocation16_spill] sm:$0xff] %v5067_v45  ;;  %v1838_v36 = vadd.f32 %v1808_v44, %v1777_v59  ;;  %v5089_v4 = vsel %vm585_vm2, 0.0, %v581_v49  ;;  %v646_v57 = vmul.f32 %v6919_v52, %v7040_v9  ;;  %v676_v22 = vmul.f32 %v3646_v51, %v4420_v5 }
 0x10f   : > { %7039 = vst [vmem:[#allocation25_spill] sm:$0xff] %v5071_v31  ;;  %v1837_v45 = vadd.f32 %v1807_v40, %v1776_v25  ;;  %v677_v31 = vmul.f32 %v3646_v51, %v4423_v7  ;;  %v737_v18 = vmul.f32 %v6924_v50, %v4495_v8  ;;  %v738_v35 = vmul.f32 %v6924_v50, %v4501_v41  ;;  %v7041_v7 = vld [vmem:[#allocation57_spill] sm:$0xff] }
 0x110   : > { %v1899_v30 = vadd.f32 %v1869_v46, %v1838_v36  ;;  %v706_v44 = vadd.f32 %v676_v22, %v645_v63  ;;  %v800_v59 = vmul.f32 %v3650_v53, %v4762_v48  ;;  %v801_v9 = vmul.f32 %v3650_v53, %v4746_v47  ;;  %v7043_v63 = vld [vmem:[#allocation27_spill] sm:$0xff] }
 0x111   : > { %v1898_v49 = vadd.f32 %v1868_v58, %v1837_v45  ;;  %v707_v5 = vadd.f32 %v677_v31, %v646_v57  ;;  %v833_v40 = vmul.f32 %v6894_v14, %v4709_v21  ;;  %v834_v25 = vmul.f32 %v6894_v14, %v7041_v7 }
 0x112   : > { %v1961_v8 = vadd.f32 %v1929_v3, %v1899_v30  ;;  %v767_v38 = vadd.f32 %v737_v18, %v706_v44  ;;  %v898_v41 = vmul.f32 %v3654_v55, %v7042_v26  ;;  %v899_v22 = vmul.f32 %v3654_v55, %v7043_v63 }
 0x113   : > { %v1960_v46 = vadd.f32 %v1928_v43, %v1898_v49  ;;  %v768_v36 = vadd.f32 %v738_v35, %v707_v5  ;;  %v865_v48 = vadd.f32 %v833_v40, %v800_v59  ;;  %v866_v47 = vadd.f32 %v834_v25, %v801_v9  ;;  %v7044_v9 = vld [vmem:[#allocation74_spill] sm:$0xff]  ;;  %v7045_v25 = vld [vmem:[#allocation33_spill] sm:$0xff] }
 0x114   : > { %v963_v57 = vmul.f32 %v3656_v56, %v5051_v28  ;;  %v964_v45 = vmul.f32 %v3656_v56, %v5035_v61  ;;  %v994_v3 = vmul.f32 %v3695_v15, %v5008_v16  ;;  %v995_v18 = vmul.f32 %v3695_v15, %v5011_v29 }
 0x115   : > { %v1989_v31 = vpack.c.bf16 %v1961_v8, %v1960_v46  ;;  %v930_v58 = vadd.f32 %v898_v41, %v865_v48  ;;  %v931_v30 = vadd.f32 %v899_v22, %v866_v47  ;;  %v1055_v43 = vmul.f32 %v4678_v23, %v5083_v13  ;;  %v7046_v8 = vld [vmem:[#allocation45_spill] sm:$0xff]  ;;  %v7047_v22 = vld [vmem:[#allocation48_spill] sm:$0xff] }
 0x116   : > { %v1024_v35 = vadd.f32 %v994_v3, %v963_v57  ;;  %v1025_v44 = vadd.f32 %v995_v18, %v964_v45  ;;  %v1056_v59 = vmul.f32 %v4678_v23, %v5089_v4  ;;  %v1474_v49 = vmul.f32 %v4180_v54, %v7044_v9  ;;  %v7048_v57 = vld [vmem:[#allocation34_spill] sm:$0xff]  ;;  %v7049_v18 = vld [vmem:[#allocation71_spill] sm:$0xff] }
 0x117   : > { %2089 = vmatmul.bf16.gmra.mxu0 %v1989_v31  ;;  %v1115_v5 = vadd.f32 %v930_v58, %v767_v38  ;;  %v1116_v40 = vadd.f32 %v931_v30, %v768_v36  ;;  %v1475_v29 = vmul.f32 %v4180_v54, %v7045_v25  ;;  %v1505_v47 = vmul.f32 %v4183_v37, %v7046_v8  ;;  %v7050_v38 = vld [vmem:[#allocation83_spill] sm:$0xff]  ;;  %v7051_v58 = vld [vmem:[#allocation81_spill] sm:$0xff] }
 0x118   : > { %v1085_v48 = vadd.f32 %v1055_v43, %v1024_v35  ;;  %v1086_v41 = vadd.f32 %v1056_v59, %v1025_v44  ;;  %v1506_v46 = vmul.f32 %v4183_v37, %v7047_v22  ;;  %v1566_v45 = vmul.f32 %v4197_v17, %v7048_v57  ;;  %v7054_v44 = vld [vmem:[#allocation80_spill] sm:$0xff]  ;;  %v7055_v8 = vld [vmem:[#allocation43_spill] sm:$0xff] }
 0x119   : > { %v1535_v3 = vadd.f32 %v1505_v47, %v1474_v49  ;;  %v1567_v31 = vmul.f32 %v4197_v17, %v7049_v18  ;;  %v1629_v36 = vmul.f32 %v3700_v20, %v7050_v38  ;;  %v1630_v30 = vmul.f32 %v3700_v20, %v7051_v58  ;;  %v7056_v47 = vld [vmem:[#allocation82_spill] sm:$0xff]  ;;  %v7057_v57 = vld [vmem:[#allocation84_spill] sm:$0xff] }
 0x11a   : > { %v5141_v9 = vadd.f32 %v1115_v5, %v1085_v48  ;;  %v5143_v43 = vadd.f32 %v1116_v40, %v1086_v41  ;;  %v1536_v35 = vadd.f32 %v1506_v46, %v1475_v29  ;;  %v1662_v59 = vmul.f32 %v3722_v34, %v7054_v44  ;;  %v7058_v46 = vld [vmem:[#allocation50_spill] sm:$0xff]  ;;  %v7060_v44 = vld [vmem:[#allocation60_spill] sm:$0xff] }
 0x11b   : > { %v1596_v25 = vadd.f32 %v1566_v45, %v1535_v3  ;;  %v1663_v49 = vmul.f32 %v3722_v34, %v7055_v8  ;;  %v1727_v22 = vmul.f32 %v3726_v42, %v7056_v47  ;;  %v1728_v18 = vmul.f32 %v3726_v42, %v7057_v57  ;;  %v7059_v45 = vld [vmem:[#allocation67_spill] sm:$0xff] }
 0x11c   : > { %7052 = vst [vmem:[#allocation20_spill] sm:$0xff] %v5141_v9  ;;  %v1215_v5 = vmul.f32 %v4721_v62, %v5141_v9  ;;  %v1216_v40 = vmul.f32 %v4721_v62, %v5143_v43  ;;  %v1597_v29 = vadd.f32 %v1567_v31, %v1536_v35  ;;  %v1694_v48 = vadd.f32 %v1662_v59, %v1629_v36 }
 0x11d   : > { %7053 = vst [vmem:[#allocation29_spill] sm:$0xff] %v5143_v43  ;;  %v1695_v41 = vadd.f32 %v1663_v49, %v1630_v30  ;;  %v1166_v3 = vpack.c.bf16 %v7059_v45, %v7058_v46  ;;  %v631_v8 = vmul.f32 %v6919_v52, %v7060_v44  ;;  %v632_v47 = vmul.f32 %v6919_v52, %v7012_v0 }
 0x11e   : > { %v5164_v57 = vadd.f32 %v4735_v12, %v1215_v5  ;;  %v5167_v9 = vadd.f32 %v4735_v12, %v1216_v40  ;;  %v1759_v58 = vadd.f32 %v1727_v22, %v1694_v48  ;;  %v662_v31 = vmul.f32 %v3646_v51, %v7013_v60 }
 0x11f   : > { %v1760_v36 = vadd.f32 %v1728_v18, %v1695_v41  ;;  %2266 = vmatmul.bf16.gmra.mxu3 %v1166_v3  ;;  %v663_v30 = vmul.f32 %v3646_v51, %v7014_v32  ;;  %v723_v35 = vmul.f32 %v6924_v50, %v7015_v24  ;;  %v724_v0 = vmul.f32 %v6924_v50, %v7016_v33 }
 0x120   : > { %7061 = vst [vmem:[#allocation18_spill] sm:$0xff] %v5167_v9  ;;  %v1273_v44 = vrot.slane %v5164_v57, 7  ;;  %v1289_v59 = vrot.slane %v5167_v9, 7  ;;  %v1369_v49 = vrot.slane %v5164_v57, 1  ;;  %v1385_v22 = vrot.slane %v5167_v9, 1 }
 0x121   : > { %v1823_v60 = vmul.f32 %v6877_v39, %v5164_v57  ;;  %v1824_v32 = vmul.f32 %v6877_v39, %v5167_v9  ;;  %v1944_v18 = vadd.f32 %v1759_v58, %v1596_v25  ;;  %v1945_v5 = vadd.f32 %v1760_v36, %v1597_v29  ;;  %v7067_v9 = vld [vmem:[#allocation51_spill] sm:$0xff] }
 0x122   : > { %v5187_v24 = vsel %vm449_vm0, %v1273_v44, %v1289_v59  ;;  %v1321_v33 = vsel %vm449_vm0, %v1289_v59, %v1273_v44  ;;  %v5193_v40 = vsel %vm551_vm1, %v1369_v49, %v1385_v22  ;;  %v1417_v48 = vsel %vm551_vm1, %v1385_v22, %v1369_v49 }
 0x123   : > { %7062 = vst [vmem:[#allocation32_spill] sm:$0xff] %v5193_v40  ;;  %v5199_v41 = vsel %vm449_vm0, 0.0, %v1321_v33  ;;  %v5203_v58 = vsel %vm585_vm2, 0.0, %v1417_v48  ;;  %v1793_v25 = vmul.f32 %v6876_v11, %v5187_v24  ;;  %v1884_v29 = vmul.f32 %v4789_v19, %v5193_v40  ;;  %v7064_v40 = vld [vmem:[#allocation78_spill] sm:$0xff] }
 0x124   : > { %7063 = vst [vmem:[#allocation17_spill] sm:$0xff] %v5203_v58  ;;  %v1792_v46 = vmul.f32 %v6876_v11, %v5199_v41  ;;  %v1885_v45 = vmul.f32 %v4789_v19, %v5203_v58  ;;  %v692_v3 = vadd.f32 %v662_v31, %v631_v8  ;;  %v693_v36 = vadd.f32 %v663_v30, %v632_v47  ;;  %v7065_v31 = vld [vmem:[#allocation86_spill] sm:$0xff] }
 0x125   : > { %v1854_v44 = vadd.f32 %v1824_v32, %v1793_v25  ;;  %v786_v59 = vmul.f32 %v3650_v53, %v4935_v2  ;;  %v787_v49 = vmul.f32 %v3650_v53, %v4892_v27  ;;  %v819_v22 = vmul.f32 %v6894_v14, %v4864_v10  ;;  %v7066_v32 = vld [vmem:[#allocation47_spill] sm:$0xff] }
 0x126   : > { %v1853_v33 = vadd.f32 %v1823_v60, %v1792_v46  ;;  %v753_v48 = vadd.f32 %v723_v35, %v692_v3  ;;  %v754_v43 = vadd.f32 %v724_v0, %v693_v36  ;;  %v820_v58 = vmul.f32 %v6894_v14, %v7064_v40  ;;  %v7068_v60 = vld [vmem:[#allocation36_spill] sm:$0xff]  ;;  %v5235_v36 = vld [vmem:[%s3512_s28 + $0x68] sm:$0xff] }
 0x127   : > { %v1915_v8 = vadd.f32 %v1885_v45, %v1854_v44  ;;  %v851_v47 = vadd.f32 %v819_v22, %v786_v59  ;;  %v884_v30 = vmul.f32 %v3654_v55, %v7065_v31  ;;  %v885_v25 = vmul.f32 %v3654_v55, %v7066_v32  ;;  %v5230_v3 = vld [vmem:[%s3512_s28 + $0x60] sm:$0xff]  ;;  %7070 = vst [vmem:[#allocation26_spill] sm:$0xff] %v5235_v36  ;;  %v7071_v59 = vld [vmem:[#allocation53_spill] sm:$0xff]  ;;  %v7072_v22 = vld [vmem:[#allocation55_spill] sm:$0xff] }
 0x128   : > { %v1914_v27 = vadd.f32 %v1884_v29, %v1853_v33  ;;  %v852_v2 = vadd.f32 %v820_v58, %v787_v49  ;;  %v949_v10 = vmul.f32 %v3656_v56, %v7067_v9  ;;  %v950_v35 = vmul.f32 %v3656_v56, %v7068_v60  ;;  %7069 = vst [vmem:[#allocation57_spill] sm:$0xff] %v5230_v3  ;;  %v7074_v32 = vld [vmem:[#allocation39_spill] sm:$0xff] }
 0x129   : > { %v1977_v0 = vadd.f32 %v1945_v5, %v1915_v8  ;;  %v916_v46 = vadd.f32 %v884_v30, %v851_v47  ;;  %v980_v45 = vmul.f32 %v5230_v3, %v3695_v15  ;;  %v981_v44 = vmul.f32 %v5235_v36, %v3695_v15  ;;  %v7073_v30 = vld [vmem:[#allocation46_spill] sm:$0xff] }
 0x12a   : > { %v1976_v29 = vadd.f32 %v1944_v18, %v1914_v27  ;;  %v917_v58 = vadd.f32 %v885_v25, %v852_v2  ;;  %v1041_v49 = vmul.f32 %v4678_v23, %v7071_v59  ;;  %v1042_v33 = vmul.f32 %v4678_v23, %v7072_v22  ;;  %v7075_v27 = vld [vmem:[#allocation62_spill] sm:$0xff] }
 0x12b   : > { %v1010_v5 = vadd.f32 %v980_v45, %v949_v10  ;;  %v1011_v8 = vadd.f32 %v981_v44, %v950_v35  ;;  %v1101_v47 = vadd.f32 %v916_v46, %v753_v48  ;;  %v1460_v60 = vmul.f32 %v4180_v54, %v7073_v30  ;;  %v7076_v59 = vld [vmem:[#allocation14_spill] sm:$0xff]  ;;  %v7077_v35 = vld [vmem:[#allocation40_spill] sm:$0xff]  ;;  %v7080_v44 = vld [vmem:[#allocation21_spill] sm:$0xff] }
 0x12c   : > { %v1997_v3 = vpack.c.bf16 %v1977_v0, %v1976_v29  ;;  %v1102_v9 = vadd.f32 %v917_v58, %v754_v43  ;;  %v1461_v36 = vmul.f32 %v4180_v54, %v7074_v32  ;;  %v1491_v2 = vmul.f32 %v4183_v37, %v7075_v27  ;;  %v7078_v0 = vld [vmem:[#allocation49_spill] sm:$0xff]  ;;  %v7079_v45 = vld [vmem:[#allocation16_spill] sm:$0xff]  ;;  %v7085_v30 = vld [vmem:[#allocation19_spill] sm:$0xff] }
 0x12d   : > { %v1071_v18 = vadd.f32 %v1041_v49, %v1010_v5  ;;  %v1072_v25 = vadd.f32 %v1042_v33, %v1011_v8  ;;  %v1492_v10 = vmul.f32 %v4183_v37, %v7076_v59  ;;  %v1552_v48 = vmul.f32 %v4197_v17, %v7077_v35  ;;  %v7083_v59 = vld [vmem:[#allocation61_spill] sm:$0xff]  ;;  %v5266_v8 = vld [vmem:[%s3512_s28 + $0xe0] sm:$0xff] }
 0x12e   : > { %2129 = vmatmul.bf16.gmra.mxu2 %v1997_v3  ;;  %v1521_v46 = vadd.f32 %v1491_v2, %v1460_v60  ;;  %v1553_v43 = vmul.f32 %v4197_v17, %v7078_v0  ;;  %v1615_v32 = vmul.f32 %v3700_v20, %v7079_v45  ;;  %v1616_v29 = vmul.f32 %v3700_v20, %v7080_v44  ;;  %v5269_v60 = vld [vmem:[%s3512_s28 + $0xe8] sm:$0xff]  ;;  %v7086_v2 = vld [vmem:[#allocation28_spill] sm:$0xff] }
 0x12f   : > { %v5259_v58 = vadd.f32 %v1101_v47, %v1071_v18  ;;  %v5261_v49 = vadd.f32 %v1102_v9, %v1072_v25  ;;  %v1522_v33 = vadd.f32 %v1492_v10, %v1461_v36  ;;  %v1648_v5 = vmul.f32 %v3722_v34, %v7083_v59  ;;  %7084 = vst [vmem:[#allocation33_spill] sm:$0xff] %v5269_v60  ;;  %v7087_v0 = vld [vmem:[#allocation25_spill] sm:$0xff]  ;;  %v7088_v59 = vld [vmem:[#allocation44_spill] sm:$0xff] }
 0x130   : > { %v1582_v3 = vadd.f32 %v1552_v48, %v1521_v46  ;;  %v1649_v27 = vmul.f32 %v3722_v34, %v7085_v30  ;;  %v1713_v35 = vmul.f32 %v3726_v42, %v7086_v2  ;;  %v1714_v47 = vmul.f32 %v3726_v42, %v7087_v0  ;;  %v7089_v48 = vld [vmem:[#allocation35_spill] sm:$0xff] }
 0x131   : > { %7081 = vst [vmem:[#allocation27_spill] sm:$0xff] %v5259_v58  ;;  %v1201_v9 = vmul.f32 %v4721_v62, %v5259_v58  ;;  %v1202_v36 = vmul.f32 %v4721_v62, %v5261_v49  ;;  %v1583_v18 = vadd.f32 %v1553_v43, %v1522_v33  ;;  %v1680_v25 = vadd.f32 %v1648_v5, %v1615_v32 }
 0x132   : > { %7082 = vst [vmem:[#allocation74_spill] sm:$0xff] %v5261_v49  ;;  %v1681_v10 = vadd.f32 %v1649_v27, %v1616_v29  ;;  %v1159_v46 = vpack.c.bf16 %v7089_v48, %v7088_v59  ;;  %v431_v30 = vrot.slane %v5266_v8, 7  ;;  %v447_v44 = vrot.slane %v5269_v60, 7 }
 0x133   : > { %v5286_v2 = vadd.f32 %v4735_v12, %v1201_v9  ;;  %v5289_v0 = vadd.f32 %v4735_v12, %v1202_v36  ;;  %v1745_v58 = vadd.f32 %v1713_v35, %v1680_v25  ;;  %v533_v45 = vrot.slane %v5266_v8, 1 }
 0x134   : > { %v1746_v49 = vadd.f32 %v1714_v47, %v1681_v10  ;;  %2231 = vmatmul.bf16.gmra.mxu1 %v1159_v46  ;;  %v5294_v43 = vsel %vm449_vm0, %v431_v30, %v447_v44  ;;  %v480_v32 = vsel %vm449_vm0, %v447_v44, %v431_v30  ;;  %v549_v29 = vrot.slane %v5269_v60, 1 }
 0x135   : > { %7090 = vst [vmem:[#allocation45_spill] sm:$0xff] %v5286_v2  ;;  %v1266_v33 = vrot.slane %v5286_v2, 7  ;;  %v1282_v59 = vrot.slane %v5289_v0, 7  ;;  %v1362_v5 = vrot.slane %v5286_v2, 1  ;;  %v1378_v27 = vrot.slane %v5289_v0, 1 }
 0x136   : > { %7091 = vst [vmem:[#allocation48_spill] sm:$0xff] %v5289_v0  ;;  %v1809_v35 = vmul.f32 %v6877_v39, %v5286_v2  ;;  %v1810_v47 = vmul.f32 %v6877_v39, %v5289_v0  ;;  %v1930_v9 = vadd.f32 %v1745_v58, %v1582_v3  ;;  %v1931_v36 = vadd.f32 %v1746_v49, %v1583_v18 }
 0x137   : > { %v5309_v44 = vsel %vm449_vm0, %v1266_v33, %v1282_v59  ;;  %v1314_v30 = vsel %vm449_vm0, %v1282_v59, %v1266_v33  ;;  %v5315_v25 = vsel %vm551_vm1, %v1362_v5, %v1378_v27  ;;  %v1410_v10 = vsel %vm551_vm1, %v1378_v27, %v1362_v5 }
 0x138   : > { %7092 = vst [vmem:[#allocation34_spill] sm:$0xff] %v5309_v44  ;;  %v5321_v48 = vsel %vm449_vm0, 0.0, %v1314_v30  ;;  %v5325_v58 = vsel %vm585_vm2, 0.0, %v1410_v10  ;;  %v1779_v49 = vmul.f32 %v6876_v11, %v5309_v44  ;;  %v1870_v3 = vmul.f32 %v4789_v19, %v5315_v25  ;;  %v7097_v30 = vld [vmem:[#allocation42_spill] sm:$0xff] }
 0x139   : > { %7093 = vst [vmem:[#allocation71_spill] sm:$0xff] %v5315_v25  ;;  %v1778_v18 = vmul.f32 %v6876_v11, %v5321_v48  ;;  %v1871_v46 = vmul.f32 %v4789_v19, %v5325_v58  ;;  %v5337_v33 = vsel %vm449_vm0, 0.0, %v480_v32  ;;  %v5341_v59 = vsel %vm551_vm1, %v533_v45, %v549_v29  ;;  %v7098_v25 = vld [vmem:[#allocation15_spill] sm:$0xff] }
 0x13a   : > { %7094 = vst [vmem:[#allocation83_spill] sm:$0xff] %v5321_v48  ;;  %v1840_v5 = vadd.f32 %v1810_v47, %v1779_v49  ;;  %v582_v27 = vsel %vm551_vm1, %v549_v29, %v533_v45  ;;  %v647_v10 = vmul.f32 %v6919_v52, %v7097_v30  ;;  %v648_v0 = vmul.f32 %v6919_v52, %v7098_v25 }
 0x13b   : > { %7095 = vst [vmem:[#allocation50_spill] sm:$0xff] %v5325_v58  ;;  %v1839_v2 = vadd.f32 %v1809_v35, %v1778_v18  ;;  %v5351_v58 = vsel %vm585_vm2, 0.0, %v582_v27  ;;  %v678_v32 = vmul.f32 %v3646_v51, %v4709_v21  ;;  %v679_v47 = vmul.f32 %v3646_v51, %v7041_v7 }
 0x13c   : > { %7096 = vst [vmem:[#allocation67_spill] sm:$0xff] %v5341_v59  ;;  %v1901_v49 = vadd.f32 %v1871_v46, %v1840_v5  ;;  %v739_v45 = vmul.f32 %v6924_v50, %v7042_v26  ;;  %v740_v29 = vmul.f32 %v6924_v50, %v7043_v63  ;;  %v802_v35 = vmul.f32 %v3650_v53, %v5051_v28  ;;  %v7099_v46 = vld [vmem:[#allocation38_spill] sm:$0xff] }
 0x13d   : > { %v1900_v25 = vadd.f32 %v1870_v3, %v1839_v2  ;;  %v708_v18 = vadd.f32 %v678_v32, %v647_v10  ;;  %v709_v27 = vadd.f32 %v679_v47, %v648_v0  ;;  %v803_v30 = vmul.f32 %v3650_v53, %v5035_v61 }
 0x13e   : > { %v1963_v21 = vadd.f32 %v1931_v36, %v1901_v49  ;;  %v835_v7 = vmul.f32 %v6894_v14, %v5008_v16  ;;  %v836_v5 = vmul.f32 %v6894_v14, %v7099_v46  ;;  %v900_v26 = vmul.f32 %v3654_v55, %v5083_v13 }
 0x13f   : > { %v1962_v63 = vadd.f32 %v1930_v9, %v1900_v25  ;;  %v769_v44 = vadd.f32 %v739_v45, %v708_v18  ;;  %v770_v48 = vadd.f32 %v740_v29, %v709_v27  ;;  %v901_v2 = vmul.f32 %v3654_v55, %v5089_v4 }
 0x140   : > { %v867_v0 = vadd.f32 %v835_v7, %v802_v35  ;;  %v868_v3 = vadd.f32 %v836_v5, %v803_v30  ;;  %v965_v36 = vmul.f32 %v3656_v56, %v5337_v33  ;;  %v966_v10 = vmul.f32 %v3656_v56, %v5294_v43  ;;  %v7100_v30 = vld [vmem:[#allocation81_spill] sm:$0xff]  ;;  %v7101_v7 = vld [vmem:[#allocation80_spill] sm:$0xff] }
 0x141   : > { %v1990_v32 = vpack.c.bf16 %v1963_v21, %v1962_v63  ;;  %v996_v47 = vmul.f32 %v3695_v15, %v5266_v8  ;;  %v997_v9 = vmul.f32 %v3695_v15, %v5269_v60  ;;  %v1057_v49 = vmul.f32 %v4678_v23, %v5341_v59  ;;  %v7102_v59 = vld [vmem:[#allocation43_spill] sm:$0xff] }
 0x142   : > { %v932_v45 = vadd.f32 %v900_v26, %v867_v0  ;;  %v933_v29 = vadd.f32 %v901_v2, %v868_v3  ;;  %v1058_v35 = vmul.f32 %v4678_v23, %v5351_v58  ;;  %v1476_v25 = vmul.f32 %v4180_v54, %v7050_v38  ;;  %v7103_v2 = vld [vmem:[#allocation82_spill] sm:$0xff] }
 0x143   : > { %2094 = vmatmul.bf16.gmra.mxu0 %v1990_v32  ;;  %v1026_v18 = vadd.f32 %v996_v47, %v965_v36  ;;  %v1027_v27 = vadd.f32 %v997_v9, %v966_v10  ;;  %v1477_v21 = vmul.f32 %v4180_v54, %v7100_v30  ;;  %v1507_v5 = vmul.f32 %v4183_v37, %v7101_v7  ;;  %v7104_v32 = vld [vmem:[#allocation84_spill] sm:$0xff]  ;;  %v7109_v30 = vld [vmem:[#allocation17_spill] sm:$0xff] }
 0x144   : > { %v1117_v63 = vadd.f32 %v932_v45, %v769_v44  ;;  %v1118_v60 = vadd.f32 %v933_v29, %v770_v48  ;;  %v1508_v26 = vmul.f32 %v4183_v37, %v7102_v59  ;;  %v1568_v23 = vmul.f32 %v4197_v17, %v7103_v2  ;;  %v7107_v45 = vld [vmem:[#allocation18_spill] sm:$0xff] }
 0x145   : > { %v1087_v0 = vadd.f32 %v1057_v49, %v1026_v18  ;;  %v1088_v3 = vadd.f32 %v1058_v35, %v1027_v27  ;;  %v1537_v38 = vadd.f32 %v1507_v5, %v1476_v25  ;;  %v1569_v36 = vmul.f32 %v4197_v17, %v7104_v32  ;;  %v7108_v18 = vld [vmem:[#allocation32_spill] sm:$0xff] }
 0x146   : > { %v1538_v10 = vadd.f32 %v1508_v26, %v1477_v21  ;;  %v1631_v47 = vmul.f32 %v3700_v20, %v5199_v41  ;;  %v1632_v44 = vmul.f32 %v3700_v20, %v5187_v24  ;;  %v1664_v48 = vmul.f32 %v3722_v34, %v5164_v57  ;;  %v7111_v26 = vld [vmem:[#allocation29_spill] sm:$0xff] }
 0x147   : > { %v5403_v59 = vadd.f32 %v1117_v63, %v1087_v0  ;;  %v5405_v9 = vadd.f32 %v1118_v60, %v1088_v3  ;;  %v1598_v49 = vadd.f32 %v1568_v23, %v1537_v38  ;;  %v1665_v29 = vmul.f32 %v3722_v34, %v7107_v45  ;;  %v7110_v63 = vld [vmem:[#allocation20_spill] sm:$0xff]  ;;  %v7112_v0 = vld [vmem:[#allocation85_spill] sm:$0xff] }
 0x148   : > { %v1599_v35 = vadd.f32 %v1569_v36, %v1538_v10  ;;  %v1696_v25 = vadd.f32 %v1664_v48, %v1631_v47  ;;  %v1729_v27 = vmul.f32 %v3726_v42, %v7108_v18  ;;  %v1730_v21 = vmul.f32 %v3726_v42, %v7109_v30  ;;  %v7113_v38 = vld [vmem:[#allocation41_spill] sm:$0xff]  ;;  %v7114_v36 = vld [vmem:[#allocation68_spill] sm:$0xff] }
 0x149   : > { %7105 = vst [vmem:[#allocation60_spill] sm:$0xff] %v5403_v59  ;;  %v1217_v7 = vmul.f32 %v4721_v62, %v5403_v59  ;;  %v1218_v5 = vmul.f32 %v4721_v62, %v5405_v9  ;;  %v1697_v60 = vadd.f32 %v1665_v29, %v1632_v44  ;;  %v1167_v2 = vpack.c.bf16 %v7111_v26, %v7110_v63  ;;  %v7117_v63 = vld [vmem:[#allocation47_spill] sm:$0xff] }
 0x14a   : > { %7106 = vst [vmem:[#allocation78_spill] sm:$0xff] %v5405_v9  ;;  %v1761_v23 = vadd.f32 %v1729_v27, %v1696_v25  ;;  %v633_v3 = vmul.f32 %v6919_v52, %v7112_v0  ;;  %v634_v32 = vmul.f32 %v6919_v52, %v7113_v38  ;;  %v664_v10 = vmul.f32 %v3646_v51, %v7114_v36 }
 0x14b   : > { %v5426_v47 = vadd.f32 %v4735_v12, %v1217_v7  ;;  %v5429_v48 = vadd.f32 %v4735_v12, %v1218_v5  ;;  %v1762_v62 = vadd.f32 %v1730_v21, %v1697_v60  ;;  %2271 = vmatmul.bf16.gmra.mxu3 %v1167_v2  ;;  %v665_v44 = vmul.f32 %v3646_v51, %v7064_v40 }
 0x14c   : > { %v1946_v29 = vadd.f32 %v1761_v23, %v1598_v49  ;;  %v694_v25 = vadd.f32 %v664_v10, %v633_v3  ;;  %v725_v27 = vmul.f32 %v6924_v50, %v7065_v31  ;;  %v726_v26 = vmul.f32 %v6924_v50, %v7117_v63 }
 0x14d   : > { %7115 = vst [vmem:[#allocation86_spill] sm:$0xff] %v5426_v47  ;;  %v1274_v0 = vrot.slane %v5426_v47, 7  ;;  %v1290_v7 = vrot.slane %v5429_v48, 7  ;;  %v1370_v12 = vrot.slane %v5426_v47, 1  ;;  %v1386_v21 = vrot.slane %v5429_v48, 1 }
 0x14e   : > { %7116 = vst [vmem:[#allocation55_spill] sm:$0xff] %v5429_v48  ;;  %v1825_v5 = vmul.f32 %v6877_v39, %v5426_v47  ;;  %v1826_v40 = vmul.f32 %v6877_v39, %v5429_v48  ;;  %v1947_v49 = vadd.f32 %v1762_v62, %v1599_v35  ;;  %v695_v60 = vadd.f32 %v665_v44, %v634_v32  ;;  %v7126_v47 = vld [vmem:[#allocation53_spill] sm:$0xff] }
 0x14f   : > { %v5447_v31 = vsel %vm449_vm0, %v1274_v0, %v1290_v7  ;;  %v1322_v2 = vsel %vm449_vm0, %v1290_v7, %v1274_v0  ;;  %v5453_v23 = vsel %vm551_vm1, %v1370_v12, %v1386_v21  ;;  %v1418_v3 = vsel %vm551_vm1, %v1386_v21, %v1370_v12  ;;  %v7122_v7 = vld [vmem:[#allocation51_spill] sm:$0xff]  ;;  %v7123_v21 = vld [vmem:[#allocation36_spill] sm:$0xff] }
 0x150   : > { %7118 = vst [vmem:[#allocation46_spill] sm:$0xff] %v5447_v31  ;;  %v5459_v38 = vsel %vm449_vm0, 0.0, %v1322_v2  ;;  %v5463_v35 = vsel %vm585_vm2, 0.0, %v1418_v3  ;;  %v1795_v32 = vmul.f32 %v6876_v11, %v5447_v31  ;;  %v1886_v36 = vmul.f32 %v4789_v19, %v5453_v23  ;;  %v7124_v3 = vld [vmem:[#allocation57_spill] sm:$0xff] }
 0x151   : > { %7119 = vst [vmem:[#allocation39_spill] sm:$0xff] %v5453_v23  ;;  %v1794_v10 = vmul.f32 %v6876_v11, %v5459_v38  ;;  %v1887_v62 = vmul.f32 %v4789_v19, %v5463_v35  ;;  %v755_v44 = vadd.f32 %v725_v27, %v694_v25  ;;  %v756_v63 = vadd.f32 %v726_v26, %v695_v60  ;;  %v7125_v23 = vld [vmem:[#allocation26_spill] sm:$0xff] }
 0x152   : > { %7120 = vst [vmem:[#allocation62_spill] sm:$0xff] %v5459_v38  ;;  %v1856_v0 = vadd.f32 %v1826_v40, %v1795_v32  ;;  %v788_v12 = vmul.f32 %v3650_v53, %v7122_v7  ;;  %v789_v2 = vmul.f32 %v3650_v53, %v7123_v21  ;;  %v821_v9 = vmul.f32 %v7124_v3, %v6894_v14  ;;  %v7127_v40 = vld [vmem:[#allocation52_spill] sm:$0xff]  ;;  %v7128_v32 = vld [vmem:[#allocation37_spill] sm:$0xff] }
 0x153   : > { %7121 = vst [vmem:[#allocation14_spill] sm:$0xff] %v5463_v35  ;;  %v1855_v59 = vadd.f32 %v1825_v5, %v1794_v10  ;;  %v822_v48 = vmul.f32 %v7125_v23, %v6894_v14  ;;  %v886_v19 = vmul.f32 %v3654_v55, %v7126_v47  ;;  %v887_v25 = vmul.f32 %v3654_v55, %v7072_v22  ;;  %v3222_v5 = vld [vmem:[%s3512_s28 + $0x70] sm:$0xff]  ;;  %v3223_v23 = vld [vmem:[%s3512_s28 + $0x78] sm:$0xff]  ;;  %v5496_v22 = vld [vmem:[%s6481_s1 + $0x8] ss:$0 sm:$0xff] }
 0x154   : > { %v1917_v27 = vadd.f32 %v1887_v62, %v1856_v0  ;;  %v853_v26 = vadd.f32 %v821_v9, %v788_v12  ;;  %v951_v60 = vmul.f32 %v3656_v56, %v7127_v40  ;;  %v952_v7 = vmul.f32 %v3656_v56, %v7128_v32  ;;  %v7129_v9 = vld [vmem:[#allocation54_spill] sm:$0xff]  ;;  %v7130_v0 = vld [vmem:[#allocation56_spill] sm:$0xff] }
 0x155   : > { %v1916_v21 = vadd.f32 %v1886_v36, %v1855_v59  ;;  %v854_v3 = vadd.f32 %v822_v48, %v789_v2  ;;  %v982_v10 = vmul.f32 %v3222_v5, %v3695_v15  ;;  %v983_v35 = vmul.f32 %v3223_v23, %v3695_v15  ;;  %v7131_v32 = vld [vmem:[#allocation16_spill] sm:$0xff] }
 0x156   : > { %v1979_v47 = vadd.f32 %v1947_v49, %v1917_v27  ;;  %v918_v31 = vadd.f32 %v886_v19, %v853_v26  ;;  %v1043_v62 = vmul.f32 %v5496_v22, %v7129_v9  ;;  %v1044_v59 = vmul.f32 %v5496_v22, %v7130_v0  ;;  %v7132_v19 = vld [vmem:[#allocation21_spill] sm:$0xff] }
 0x157   : > { %v1978_v48 = vadd.f32 %v1946_v29, %v1916_v21  ;;  %v919_v36 = vadd.f32 %v887_v25, %v854_v3  ;;  %v1012_v12 = vadd.f32 %v982_v10, %v951_v60  ;;  %v1013_v2 = vadd.f32 %v983_v35, %v952_v7  ;;  %v7133_v26 = vld [vmem:[#allocation61_spill] sm:$0xff]  ;;  %v7134_v29 = vld [vmem:[#allocation19_spill] sm:$0xff] }
 0x158   : > { %v1103_v40 = vadd.f32 %v918_v31, %v755_v44  ;;  %v1462_v49 = vmul.f32 %v4180_v54, %v7131_v32  ;;  %v1463_v27 = vmul.f32 %v4180_v54, %v7132_v19  ;;  %v1493_v5 = vmul.f32 %v4183_v37, %v7133_v26  ;;  %v7135_v31 = vld [vmem:[#allocation28_spill] sm:$0xff]  ;;  %v7136_v60 = vld [vmem:[#allocation25_spill] sm:$0xff]  ;;  %v7139_v10 = vld [vmem:[#allocation83_spill] sm:$0xff] }
 0x159   : > { %v1998_v23 = vpack.c.bf16 %v1979_v47, %v1978_v48  ;;  %v1073_v38 = vadd.f32 %v1043_v62, %v1012_v12  ;;  %v1074_v9 = vadd.f32 %v1044_v59, %v1013_v2  ;;  %v1104_v0 = vadd.f32 %v919_v36, %v756_v63  ;;  %v7140_v62 = vld [vmem:[#allocation34_spill] sm:$0xff]  ;;  %v7141_v36 = vld [vmem:[#allocation45_spill] sm:$0xff]  ;;  %v7142_v2 = vld [vmem:[#allocation48_spill] sm:$0xff] }
 0x15a   : > { %v1494_v25 = vmul.f32 %v4183_v37, %v7134_v29  ;;  %v1523_v35 = vadd.f32 %v1493_v5, %v1462_v49  ;;  %v1554_v44 = vmul.f32 %v4197_v17, %v7135_v31  ;;  %v1555_v7 = vmul.f32 %v4197_v17, %v7136_v60  ;;  %v5527_v49 = vld [vmem:[%s3512_s28 + $0xf0] sm:$0xff]  ;;  %v7144_v26 = vld [vmem:[#allocation71_spill] sm:$0xff]  ;;  %v5550_v60 = vld [vmem:[%s6483_s3] ss:$0 sm:$0xff] }
 0x15b   : > { %2134 = vmatmul.bf16.gmra.mxu2 %v1998_v23  ;;  %v5514_v21 = vadd.f32 %v1103_v40, %v1073_v38  ;;  %v5516_v3 = vadd.f32 %v1104_v0, %v1074_v9  ;;  %v1617_v47 = vmul.f32 %v3700_v20, %v7139_v10  ;;  %v1618_v63 = vmul.f32 %v3700_v20, %v7140_v62  ;;  %v5530_v38 = vld [vmem:[%s3512_s28 + $0xf8] sm:$0xff]  ;;  %v5535_v40 = vld [vmem:[%s6482_s2] ss:$0 sm:$0xff]  ;;  %v7145_v23 = vld [vmem:[#allocation50_spill] sm:$0xff] }
 0x15c   : > { %v1524_v59 = vadd.f32 %v1494_v25, %v1463_v27  ;;  %v1584_v48 = vadd.f32 %v1554_v44, %v1523_v35  ;;  %v1650_v12 = vmul.f32 %v3722_v34, %v7141_v36  ;;  %v1651_v32 = vmul.f32 %v3722_v34, %v7142_v2  ;;  %7143 = vst [vmem:[#allocation44_spill] sm:$0xff] %v5535_v40  ;;  %v7146_v35 = vld [vmem:[#allocation27_spill] sm:$0xff]  ;;  %v7147_v31 = vld [vmem:[#allocation74_spill] sm:$0xff] }
 0x15d   : > { %7137 = vst [vmem:[#allocation40_spill] sm:$0xff] %v5514_v21  ;;  %v1203_v19 = vmul.f32 %v5535_v40, %v5514_v21  ;;  %v1204_v27 = vmul.f32 %v5535_v40, %v5516_v3  ;;  %v1715_v5 = vmul.f32 %v3726_v42, %v7144_v26  ;;  %v1716_v9 = vmul.f32 %v3726_v42, %v7145_v23 }
 0x15e   : > { %7138 = vst [vmem:[#allocation49_spill] sm:$0xff] %v5516_v3  ;;  %v1585_v0 = vadd.f32 %v1555_v7, %v1524_v59  ;;  %v1682_v29 = vadd.f32 %v1650_v12, %v1617_v47  ;;  %v1683_v25 = vadd.f32 %v1651_v32, %v1618_v63  ;;  %v1160_v44 = vpack.c.bf16 %v7147_v31, %v7146_v35 }
 0x15f   : > { %7148 = vst [vmem:[#allocation35_spill] sm:$0xff] %v5550_v60  ;;  %v5553_v21 = vadd.f32 %v5550_v60, %v1203_v19  ;;  %v5556_v3 = vadd.f32 %v5550_v60, %v1204_v27  ;;  %v432_v26 = vrot.slane %v5527_v49, 7  ;;  %v448_v7 = vrot.slane %v5530_v38, 7 }
 0x160   : > { %v1747_v47 = vadd.f32 %v1715_v5, %v1682_v29  ;;  %v1748_v63 = vadd.f32 %v1716_v9, %v1683_v25  ;;  %2236 = vmatmul.bf16.gmra.mxu1 %v1160_v44  ;;  %v534_v59 = vrot.slane %v5527_v49, 1  ;;  %v550_v12 = vrot.slane %v5530_v38, 1 }
 0x161   : > { %7149 = vst [vmem:[#allocation42_spill] sm:$0xff] %v5553_v21  ;;  %v1267_v32 = vrot.slane %v5553_v21, 7  ;;  %v1283_v35 = vrot.slane %v5556_v3, 7  ;;  %v1363_v19 = vrot.slane %v5553_v21, 1  ;;  %v1379_v27 = vrot.slane %v5556_v3, 1 }
 0x162   : > { %7150 = vst [vmem:[#allocation15_spill] sm:$0xff] %v5556_v3  ;;  %v1811_v31 = vmul.f32 %v6877_v39, %v5553_v21  ;;  %v1812_v5 = vmul.f32 %v6877_v39, %v5556_v3  ;;  %v1932_v9 = vadd.f32 %v1747_v47, %v1584_v48  ;;  %v1933_v29 = vadd.f32 %v1748_v63, %v1585_v0  ;;  %v5595_v47 = vld [vmem:[%s6484_s4 + $0x8] ss:$0 sm:$0xff] }
 0x163   : > { %v5572_v25 = vsel %vm449_vm0, %v1267_v32, %v1283_v35  ;;  %v1315_v44 = vsel %vm449_vm0, %v1283_v35, %v1267_v32  ;;  %v5578_v23 = vsel %vm551_vm1, %v1363_v19, %v1379_v27  ;;  %v1411_v2 = vsel %vm551_vm1, %v1379_v27, %v1363_v19  ;;  %7155 = vst [vmem:[#allocation82_spill] sm:$0xff] %v5595_v47 }
 0x164   : > { %7151 = vst [vmem:[#allocation38_spill] sm:$0xff] %v5572_v25  ;;  %v5584_v21 = vsel %vm449_vm0, 0.0, %v1315_v44  ;;  %v5588_v48 = vsel %vm585_vm2, 0.0, %v1411_v2  ;;  %v1781_v0 = vmul.f32 %v6876_v11, %v5572_v25  ;;  %v1872_v63 = vmul.f32 %v5595_v47, %v5578_v23 }
 0x165   : > { %7152 = vst [vmem:[#allocation81_spill] sm:$0xff] %v5578_v23  ;;  %v1780_v32 = vmul.f32 %v6876_v11, %v5584_v21  ;;  %v1873_v35 = vmul.f32 %v5595_v47, %v5588_v48  ;;  %v5605_v2 = vsel %vm449_vm0, %v432_v26, %v448_v7  ;;  %v481_v19 = vsel %vm449_vm0, %v448_v7, %v432_v26 }
 0x166   : > { %7153 = vst [vmem:[#allocation80_spill] sm:$0xff] %v5584_v21  ;;  %v1842_v27 = vadd.f32 %v1812_v5, %v1781_v0  ;;  %v5611_v44 = vsel %vm449_vm0, 0.0, %v481_v19  ;;  %v5615_v23 = vsel %vm551_vm1, %v534_v59, %v550_v12  ;;  %v583_v3 = vsel %vm551_vm1, %v550_v12, %v534_v59 }
 0x167   : > { %7154 = vst [vmem:[#allocation43_spill] sm:$0xff] %v5588_v48  ;;  %v1841_v48 = vadd.f32 %v1811_v31, %v1780_v32  ;;  %v5621_v47 = vsel %vm585_vm2, 0.0, %v583_v3  ;;  %v649_v26 = vmul.f32 %v6919_v52, %v5051_v28  ;;  %v650_v7 = vmul.f32 %v6919_v52, %v5035_v61 }
 0x168   : > { %v1903_v5 = vadd.f32 %v1873_v35, %v1842_v27  ;;  %v680_v0 = vmul.f32 %v3646_v51, %v5008_v16  ;;  %v681_v19 = vmul.f32 %v3646_v51, %v7099_v46  ;;  %v741_v59 = vmul.f32 %v6924_v50, %v5083_v13  ;;  %v7156_v27 = vld [vmem:[#allocation33_spill] sm:$0xff] }
 0x169   : > { %v1902_v12 = vadd.f32 %v1872_v63, %v1841_v48  ;;  %v742_v3 = vmul.f32 %v6924_v50, %v5089_v4  ;;  %v804_v28 = vmul.f32 %v3650_v53, %v5337_v33  ;;  %v805_v61 = vmul.f32 %v3650_v53, %v5294_v43  ;;  %v7157_v48 = vld [vmem:[#allocation67_spill] sm:$0xff] }
 0x16a   : > { %v1965_v31 = vadd.f32 %v1933_v29, %v1903_v5  ;;  %v710_v32 = vadd.f32 %v680_v0, %v649_v26  ;;  %v711_v35 = vadd.f32 %v681_v19, %v650_v7  ;;  %v837_v16 = vmul.f32 %v6894_v14, %v5266_v8 }
 0x16b   : > { %v1964_v46 = vadd.f32 %v1932_v9, %v1902_v12  ;;  %v838_v13 = vmul.f32 %v6894_v14, %v7156_v27  ;;  %v902_v63 = vmul.f32 %v3654_v55, %v7157_v48  ;;  %v903_v4 = vmul.f32 %v3654_v55, %v5351_v58 }
 0x16c   : > { %v771_v50 = vadd.f32 %v741_v59, %v710_v32  ;;  %v772_v51 = vadd.f32 %v742_v3, %v711_v35  ;;  %v869_v52 = vadd.f32 %v837_v16, %v804_v28  ;;  %v967_v29 = vmul.f32 %v3656_v56, %v5611_v44  ;;  %v7177_v1 = vld [vmem:[#allocation81_spill] sm:$0xff] }
 0x16d   : > { %v1991_v26 = vpack.c.bf16 %v1965_v31, %v1964_v46  ;;  %v870_v7 = vadd.f32 %v838_v13, %v805_v61  ;;  %v968_v9 = vmul.f32 %v3656_v56, %v5605_v2  ;;  %v998_v5 = vmul.f32 %v3695_v15, %v5527_v49 }
 0x16e   : > { %v934_v0 = vadd.f32 %v902_v63, %v869_v52  ;;  %v999_v19 = vmul.f32 %v3695_v15, %v5530_v38  ;;  %v1059_v59 = vmul.f32 %v5496_v22, %v5615_v23  ;;  %v1060_v12 = vmul.f32 %v5496_v22, %v5621_v47 }
 0x16f   : > { %2099 = vmatmul.bf16.gmra.mxu0 %v1991_v26  ;;  %v935_v3 = vadd.f32 %v903_v4, %v870_v7  ;;  %v1028_v28 = vadd.f32 %v998_v5, %v967_v29  ;;  %v1478_v61 = vmul.f32 %v4180_v54, %v5199_v41  ;;  %v1479_v56 = vmul.f32 %v4180_v54, %v5187_v24  ;;  %v7158_v24 = vld [vmem:[#allocation62_spill] sm:$0xff]  ;;  %v7162_v26 = vld [vmem:[#allocation55_spill] sm:$0xff] }
 0x170   : > { %v1029_v31 = vadd.f32 %v999_v19, %v968_v9  ;;  %v1119_v52 = vadd.f32 %v934_v0, %v771_v50  ;;  %v1509_v15 = vmul.f32 %v4183_v37, %v5164_v57  ;;  %v1510_v32 = vmul.f32 %v4183_v37, %v7107_v45  ;;  %v7160_v57 = vld [vmem:[#allocation46_spill] sm:$0xff]  ;;  %v7164_v5 = vld [vmem:[#allocation39_spill] sm:$0xff] }
 0x171   : > { %v1089_v35 = vadd.f32 %v1059_v59, %v1028_v28  ;;  %v1120_v16 = vadd.f32 %v935_v3, %v772_v51  ;;  %v1570_v22 = vmul.f32 %v4197_v17, %v7108_v18  ;;  %v1571_v46 = vmul.f32 %v4197_v17, %v7109_v30  ;;  %v7161_v45 = vld [vmem:[#allocation86_spill] sm:$0xff] }
 0x172   : > { %v1090_v41 = vadd.f32 %v1060_v12, %v1029_v31  ;;  %v1539_v13 = vadd.f32 %v1509_v15, %v1478_v61  ;;  %v1540_v63 = vadd.f32 %v1510_v32, %v1479_v56  ;;  %v1633_v50 = vmul.f32 %v3700_v20, %v7158_v24  ;;  %v7165_v3 = vld [vmem:[#allocation14_spill] sm:$0xff]  ;;  %v7166_v56 = vld [vmem:[#allocation60_spill] sm:$0xff] }
 0x173   : > { %v5673_v4 = vadd.f32 %v1119_v52, %v1089_v35  ;;  %v1634_v29 = vmul.f32 %v3700_v20, %v7160_v57  ;;  %v1666_v51 = vmul.f32 %v3722_v34, %v7161_v45  ;;  %v1667_v18 = vmul.f32 %v3722_v34, %v7162_v26  ;;  %v7167_v31 = vld [vmem:[#allocation78_spill] sm:$0xff] }
 0x174   : > { %v5681_v7 = vadd.f32 %v1120_v16, %v1090_v41  ;;  %v1600_v30 = vadd.f32 %v1570_v22, %v1539_v13  ;;  %v1601_v9 = vadd.f32 %v1571_v46, %v1540_v63  ;;  %v1731_v0 = vmul.f32 %v3726_v42, %v7164_v5  ;;  %v7169_v13 = vld [vmem:[#allocation48_spill] sm:$0xff] }
 0x175   : > { %7159 = vst [vmem:[#allocation84_spill] sm:$0xff] %v5673_v4  ;;  %v1219_v19 = vmul.f32 %v5535_v40, %v5673_v4  ;;  %v1698_v59 = vadd.f32 %v1666_v51, %v1633_v50  ;;  %v1699_v12 = vadd.f32 %v1667_v18, %v1634_v29  ;;  %v1732_v28 = vmul.f32 %v3726_v42, %v7165_v3  ;;  %v7170_v50 = vld [vmem:[#allocation71_spill] sm:$0xff]  ;;  %v7171_v29 = vld [vmem:[#allocation50_spill] sm:$0xff] }
 0x176   : > { %7163 = vst [vmem:[#allocation18_spill] sm:$0xff] %v5681_v7  ;;  %v1220_v61 = vmul.f32 %v5535_v40, %v5681_v7  ;;  %v1168_v52 = vpack.c.bf16 %v7167_v31, %v7166_v56  ;;  %v1464_v15 = vmul.f32 %v4180_v54, %v7139_v10  ;;  %v1465_v32 = vmul.f32 %v4180_v54, %v7140_v62  ;;  %v7179_v7 = vld [vmem:[#allocation72_spill] sm:$0xff] }
 0x177   : > { %v5698_v35 = vadd.f32 %v5550_v60, %v1219_v19  ;;  %v1763_v16 = vadd.f32 %v1731_v0, %v1698_v59  ;;  %v1764_v22 = vadd.f32 %v1732_v28, %v1699_v12  ;;  %v1495_v46 = vmul.f32 %v4183_v37, %v7141_v36 }
 0x178   : > { %v5703_v41 = vadd.f32 %v5550_v60, %v1220_v61  ;;  %2276 = vmatmul.bf16.gmra.mxu3 %v1168_v52  ;;  %v1496_v63 = vmul.f32 %v4183_v37, %v7169_v13  ;;  %v1556_v10 = vmul.f32 %v4197_v17, %v7170_v50  ;;  %v1557_v62 = vmul.f32 %v4197_v17, %v7171_v29 }
 0x179   : > { %v1275_v51 = vrot.slane %v5698_v35, 7  ;;  %v1371_v18 = vrot.slane %v5698_v35, 1  ;;  %v1827_v36 = vmul.f32 %v6877_v39, %v5698_v35  ;;  %v1948_v0 = vadd.f32 %v1763_v16, %v1600_v30 }
 0x17a   : > { %7168 = vst [vmem:[#allocation32_spill] sm:$0xff] %v5703_v41  ;;  %v1291_v19 = vrot.slane %v5703_v41, 7  ;;  %v1387_v59 = vrot.slane %v5703_v41, 1  ;;  %v1828_v12 = vmul.f32 %v6877_v39, %v5703_v41  ;;  %v1949_v28 = vadd.f32 %v1764_v22, %v1601_v9 }
 0x17b   : > { %v1525_v61 = vadd.f32 %v1495_v46, %v1464_v15  ;;  %v1526_v56 = vadd.f32 %v1496_v63, %v1465_v32  ;;  %v1619_v31 = vmul.f32 %v3700_v20, %v5584_v21  ;;  %v1620_v52 = vmul.f32 %v3700_v20, %v5572_v25  ;;  %v7174_v46 = vld [vmem:[#allocation82_spill] sm:$0xff]  ;;  %v7178_v21 = vld [vmem:[#allocation43_spill] sm:$0xff] }
 0x17c   : > { %v5725_v13 = vsel %vm449_vm0, %v1275_v51, %v1291_v19  ;;  %v1323_v30 = vsel %vm449_vm0, %v1291_v19, %v1275_v51  ;;  %v5731_v16 = vsel %vm551_vm1, %v1371_v18, %v1387_v59  ;;  %v1419_v9 = vsel %vm551_vm1, %v1387_v59, %v1371_v18  ;;  %v7175_v59 = vld [vmem:[#allocation42_spill] sm:$0xff] }
 0x17d   : > { %7172 = vst [vmem:[#allocation17_spill] sm:$0xff] %v5731_v16  ;;  %v5737_v15 = vsel %vm449_vm0, 0.0, %v1323_v30  ;;  %v5741_v32 = vsel %vm585_vm2, 0.0, %v1419_v9  ;;  %v1797_v22 = vmul.f32 %v6876_v11, %v5725_v13  ;;  %v1888_v63 = vmul.f32 %v7174_v46, %v5731_v16  ;;  %v7176_v9 = vld [vmem:[#allocation15_spill] sm:$0xff] }
 0x17e   : > { %7173 = vst [vmem:[#allocation20_spill] sm:$0xff] %v5741_v32  ;;  %v1796_v50 = vmul.f32 %v6876_v11, %v5737_v15  ;;  %v1889_v29 = vmul.f32 %v7174_v46, %v5741_v32  ;;  %v1586_v51 = vadd.f32 %v1556_v10, %v1525_v61  ;;  %v1587_v18 = vadd.f32 %v1557_v62, %v1526_v56  ;;  %v7180_v32 = vld [vmem:[#allocation69_spill] sm:$0xff]  ;;  %v7181_v56 = vld [vmem:[#allocation63_spill] sm:$0xff] }
 0x17f   : > { %v1858_v19 = vadd.f32 %v1828_v12, %v1797_v22  ;;  %v1652_v30 = vmul.f32 %v3722_v34, %v7175_v59  ;;  %v1653_v6 = vmul.f32 %v3722_v34, %v7176_v9  ;;  %v1717_v60 = vmul.f32 %v3726_v42, %v7177_v1  ;;  %v7182_v59 = vld [vmem:[#allocation64_spill] sm:$0xff] }
 0x180   : > { %v1857_v25 = vadd.f32 %v1827_v36, %v1796_v50  ;;  %v1718_v40 = vmul.f32 %v3726_v42, %v7178_v21  ;;  %v1782_v4 = vmul.f32 %v6876_v11, %v7179_v7  ;;  %v1783_v10 = vmul.f32 %v6876_v11, %v7180_v32  ;;  %v7183_v36 = vld [vmem:[#allocation75_spill] sm:$0xff]  ;;  %v7184_v21 = vld [vmem:[#allocation77_spill] sm:$0xff] }
 0x181   : > { %v1919_v62 = vadd.f32 %v1889_v29, %v1858_v19  ;;  %v1684_v12 = vadd.f32 %v1652_v30, %v1619_v31  ;;  %v1685_v61 = vadd.f32 %v1653_v6, %v1620_v52  ;;  %v1813_v22 = vmul.f32 %v6877_v39, %v7181_v56  ;;  %v7185_v6 = vld [vmem:[#allocation40_spill] sm:$0xff]  ;;  %v7186_v52 = vld [vmem:[#allocation49_spill] sm:$0xff] }
 0x182   : > { %v1918_v9 = vadd.f32 %v1888_v63, %v1857_v25  ;;  %v1814_v1 = vmul.f32 %v6877_v39, %v7182_v59  ;;  %v1874_v50 = vmul.f32 %v7174_v46, %v7183_v36  ;;  %v1875_v42 = vmul.f32 %v7174_v46, %v7184_v21  ;;  %v7187_v25 = vld [vmem:[#allocation22_spill] sm:$0xff] }
 0x183   : > { %v1981_v7 = vadd.f32 %v1949_v28, %v1919_v62  ;;  %v1749_v16 = vadd.f32 %v1717_v60, %v1684_v12  ;;  %v1750_v41 = vadd.f32 %v1718_v40, %v1685_v61  ;;  %v1843_v32 = vadd.f32 %v1813_v22, %v1782_v4  ;;  %v7188_v40 = vld [vmem:[#allocation23_spill] sm:$0xff]  ;;  %v7192_v12 = vld [vmem:[#allocation30_spill] sm:$0xff] }
 0x184   : > { %v1980_v29 = vadd.f32 %v1948_v0, %v1918_v9  ;;  %v1844_v31 = vadd.f32 %v1814_v1, %v1783_v10  ;;  %v1161_v19 = vpack.c.bf16 %v7186_v52, %v7185_v6  ;;  %v651_v63 = vmul.f32 %v7187_v25, %v5337_v33  ;;  %v7189_v0 = vld [vmem:[#allocation24_spill] sm:$0xff] }
 0x185   : > { %v1904_v30 = vadd.f32 %v1874_v50, %v1843_v32  ;;  %v1934_v59 = vadd.f32 %v1749_v16, %v1586_v51  ;;  %v1935_v56 = vadd.f32 %v1750_v41, %v1587_v18  ;;  %v652_v36 = vmul.f32 %v7187_v25, %v5294_v43  ;;  %v5799_v51 = vpop.f32.mrf.mxu0  ;;  %v7194_v52 = vld [vmem:[#allocation84_spill] sm:$0xff] }
 0x186   : > { %v1999_v11 = vpack.c.bf16 %v1981_v7, %v1980_v29  ;;  %v1905_v21 = vadd.f32 %v1875_v42, %v1844_v31  ;;  %2241 = vmatmul.bf16.gmra.mxu1 %v1161_v19  ;;  %v682_v60 = vmul.f32 %v7188_v40, %v5266_v8  ;;  %v683_v1 = vmul.f32 %v7188_v40, %v7156_v27  ;;  %v7195_v19 = vld [vmem:[#allocation18_spill] sm:$0xff] }
 0x187   : > { %v1966_v4 = vadd.f32 %v1934_v59, %v1904_v30  ;;  %v743_v28 = vmul.f32 %v7189_v0, %v7157_v48  ;;  %v744_v33 = vmul.f32 %v7189_v0, %v5351_v58  ;;  %v806_v41 = vmul.f32 %v3650_v53, %v5611_v44 }
 0x188   : > { %2139 = vmatmul.bf16.gmra.mxu2 %v1999_v11  ;;  %v1967_v43 = vadd.f32 %v1935_v56, %v1905_v21  ;;  %v712_v42 = vadd.f32 %v682_v60, %v651_v63  ;;  %v713_v7 = vadd.f32 %v683_v1, %v652_v36  ;;  %v807_v8 = vmul.f32 %v3650_v53, %v5605_v2  ;;  %v5801_v53 = vpop.f32.mrf.mxu1  ;;  %v7193_v36 = vld [vmem:[#allocation20_spill] sm:$0xff] }
 0x189   : > { %v839_v27 = vmul.f32 %v6894_v14, %v5527_v49  ;;  %v840_v16 = vmul.f32 %v6894_v14, %v5530_v38  ;;  %v904_v48 = vmul.f32 %v3654_v55, %v5615_v23  ;;  %v905_v58 = vmul.f32 %v3654_v55, %v5621_v47  ;;  %v7196_v63 = vld [vmem:[#allocation44_spill] sm:$0xff] }
 0x18a   : > { %v1992_v44 = vpack.c.bf16 %v1967_v43, %v1966_v4  ;;  %v773_v11 = vadd.f32 %v743_v28, %v712_v42  ;;  %v774_v21 = vadd.f32 %v744_v33, %v713_v7  ;;  %v1480_v32 = vmul.f32 %v4180_v54, %v7158_v24  ;;  %v7197_v60 = vld [vmem:[#allocation80_spill] sm:$0xff]  ;;  %v7198_v4 = vld [vmem:[#allocation38_spill] sm:$0xff]  ;;  %v7200_v42 = vld [vmem:[#allocation15_spill] sm:$0xff] }
 0x18b   : > { %v871_v49 = vadd.f32 %v839_v27, %v806_v41  ;;  %v872_v2 = vadd.f32 %v840_v16, %v807_v8  ;;  %v1481_v14 = vmul.f32 %v4180_v54, %v7160_v57  ;;  %v1511_v38 = vmul.f32 %v4183_v37, %v7161_v45  ;;  %v7199_v41 = vld [vmem:[#allocation42_spill] sm:$0xff]  ;;  %v7201_v8 = vld [vmem:[#allocation35_spill] sm:$0xff] }
 0x18c   : > { %2104 = vmatmul.bf16.gmra.mxu0 %v1992_v44  ;;  %v1512_v55 = vmul.f32 %v4183_v37, %v7162_v26  ;;  %v1572_v23 = vmul.f32 %v4197_v17, %v7164_v5  ;;  %v1573_v47 = vmul.f32 %v4197_v17, %v7165_v3  ;;  %v1635_v24 = vmul.f32 %v3700_v20, %v5737_v15  ;;  %v7190_v26 = vld [vmem:[#allocation32_spill] sm:$0xff]  ;;  %v7191_v5 = vld [vmem:[#allocation17_spill] sm:$0xff]  ;;  %v7203_v44 = vld [vmem:[#allocation43_spill] sm:$0xff] }
 0x18d   : > { %v936_v18 = vadd.f32 %v904_v48, %v871_v49  ;;  %v937_v59 = vadd.f32 %v905_v58, %v872_v2  ;;  %v1541_v9 = vadd.f32 %v1511_v38, %v1480_v32  ;;  %v1636_v57 = vmul.f32 %v3700_v20, %v5725_v13  ;;  %v7202_v48 = vld [vmem:[#allocation81_spill] sm:$0xff]  ;;  %v5855_v32 = vpop.f32.mrf.mxu3 }
 0x18e   : > { %v1542_v45 = vadd.f32 %v1512_v55, %v1481_v14  ;;  %v1668_v10 = vmul.f32 %v3722_v34, %v5698_v35  ;;  %v1669_v62 = vmul.f32 %v3722_v34, %v7190_v26  ;;  %v1733_v61 = vmul.f32 %v7192_v12, %v7191_v5  ;;  %v5857_v55 = vpop.f32.mrf.mxu0 }
 0x18f   : > { %v5823_v3 = vadd.f32 %v936_v18, %v773_v11  ;;  %v5825_v56 = vadd.f32 %v937_v59, %v774_v21  ;;  %v1602_v22 = vadd.f32 %v1572_v23, %v1541_v9  ;;  %v1734_v50 = vmul.f32 %v7192_v12, %v7193_v36  ;;  %v5853_v21 = vpop.f32.mrf.mxu2 }
 0x190   : > { %v1603_v29 = vadd.f32 %v1573_v47, %v1542_v45  ;;  %v1700_v31 = vadd.f32 %v1668_v10, %v1635_v24  ;;  %v1701_v6 = vadd.f32 %v1669_v62, %v1636_v57  ;;  %v1169_v25 = vpack.c.bf16 %v7195_v19, %v7194_v52  ;;  %v5859_v23 = vpop.f32.mrf.mxu1  ;;  %v7206_v19 = vld [vmem:[#allocation31_spill] sm:$0xff] }
 0x191   : > { %v1221_v30 = vmul.f32 %v7196_v63, %v5823_v3  ;;  %v1222_v40 = vmul.f32 %v7196_v63, %v5825_v56  ;;  %v1466_v1 = vmul.f32 %v4180_v54, %v7197_v60  ;;  %v1467_v0 = vmul.f32 %v4180_v54, %v7198_v4  ;;  %v7207_v60 = vld [vmem:[#allocation72_spill] sm:$0xff]  ;;  %v7208_v4 = vld [vmem:[#allocation69_spill] sm:$0xff] }
 0x192   : > { %v1765_v28 = vadd.f32 %v1733_v61, %v1700_v31  ;;  %v1766_v33 = vadd.f32 %v1734_v50, %v1701_v6  ;;  %2281 = vmatmul.bf16.gmra.mxu3 %v1169_v25  ;;  %v1497_v43 = vmul.f32 %v4183_v37, %v7199_v41  ;;  %v1498_v7 = vmul.f32 %v4183_v37, %v7200_v42 }
 0x193   : > { %v5844_v27 = vadd.f32 %v7201_v8, %v1221_v30  ;;  %v5847_v16 = vadd.f32 %v7201_v8, %v1222_v40  ;;  %v1558_v58 = vmul.f32 %v4197_v17, %v7202_v48  ;;  %v1559_v11 = vmul.f32 %v4197_v17, %v7203_v44 }
 0x194   : > { %v1950_v49 = vadd.f32 %v1765_v28, %v1602_v22  ;;  %v1951_v2 = vadd.f32 %v1766_v33, %v1603_v29  ;;  %v1527_v14 = vadd.f32 %v1497_v43, %v1466_v1  ;;  %v1528_v38 = vadd.f32 %v1498_v7, %v1467_v0  ;;  %v7209_v33 = vld [vmem:[#allocation63_spill] sm:$0xff]  ;;  %v7210_v43 = vld [vmem:[#allocation64_spill] sm:$0xff] }
 0x195   : > { %v1276_v47 = vrot.slane %v5844_v27, 7  ;;  %v1292_v24 = vrot.slane %v5847_v16, 7  ;;  %v1372_v18 = vrot.slane %v5844_v27, 1  ;;  %v1388_v59 = vrot.slane %v5847_v16, 1  ;;  %v7211_v7 = vld [vmem:[#allocation75_spill] sm:$0xff] }
 0x196   : > { %v1829_v9 = vmul.f32 %v6877_v39, %v5844_v27  ;;  %v1830_v57 = vmul.f32 %v6877_v39, %v5847_v16  ;;  %v1588_v45 = vadd.f32 %v1558_v58, %v1527_v14  ;;  %v1589_v10 = vadd.f32 %v1559_v11, %v1528_v38  ;;  %v7212_v58 = vld [vmem:[#allocation77_spill] sm:$0xff]  ;;  %v7214_v38 = vld [vmem:[#allocation70_spill] sm:$0xff] }
 0x197   : > { %v5871_v61 = vsel %vm449_vm0, %v1276_v47, %v1292_v24  ;;  %v1324_v22 = vsel %vm449_vm0, %v1292_v24, %v1276_v47  ;;  %v5877_v50 = vsel %vm551_vm1, %v1372_v18, %v1388_v59  ;;  %v1420_v29 = vsel %vm551_vm1, %v1388_v59, %v1372_v18  ;;  %v7213_v11 = vld [vmem:[#allocation73_spill] sm:$0xff]  ;;  %v5910_v24 = vpop.f32.mrf.mxu2  ;;  %v5912_v18 = vpop.f32.mrf.mxu3 }
 0x198   : > { %v1355_v31 = vsel %vm449_vm0, 0.0, %v1324_v22  ;;  %v5885_v52 = vsel %vm585_vm2, 0.0, %v1420_v29  ;;  %v1799_v25 = vmul.f32 %v7206_v19, %v5871_v61  ;;  %v1890_v63 = vmul.f32 %v7174_v46, %v5877_v50  ;;  %v7215_v22 = vld [vmem:[#allocation65_spill] sm:$0xff]  ;;  %v5918_v6 = vpop.f32.mrf.mxu1 }
 0x199   : > { %v1798_v30 = vmul.f32 %v7206_v19, %v1355_v31  ;;  %v1891_v40 = vmul.f32 %v7174_v46, %v5885_v52  ;;  %v1621_v1 = vmul.f32 %v3700_v20, %v7207_v60  ;;  %v1622_v0 = vmul.f32 %v3700_v20, %v7208_v4  ;;  %v7217_v4 = vld [vmem:[#allocation76_spill] sm:$0xff] }
 0x19a   : > { %v1860_v28 = vadd.f32 %v1830_v57, %v1799_v25  ;;  %v1654_v41 = vmul.f32 %v3722_v34, %v7209_v33  ;;  %v1655_v42 = vmul.f32 %v3722_v34, %v7210_v43  ;;  %v1719_v8 = vmul.f32 %v7192_v12, %v7211_v7  ;;  %v7218_v33 = vld [vmem:[#allocation79_spill] sm:$0xff]  ;;  %v7219_v7 = vld [vmem:[#allocation58_spill] sm:$0xff] }
 0x19b   : > { %v1859_v48 = vadd.f32 %v1829_v9, %v1798_v30  ;;  %v1720_v44 = vmul.f32 %v7192_v12, %v7212_v58  ;;  %v1784_v14 = vmul.f32 %v7206_v19, %v7213_v11  ;;  %v1785_v47 = vmul.f32 %v7206_v19, %v7214_v38  ;;  %v5916_v9 = vpop.f32.mrf.mxu0  ;;  %v7216_v30 = vld [vmem:[#allocation66_spill] sm:$0xff] }
 0x19c   : > { %v1921_v59 = vadd.f32 %v1891_v40, %v1860_v28  ;;  %v1686_v57 = vadd.f32 %v1654_v41, %v1621_v1  ;;  %v1687_v62 = vadd.f32 %v1655_v42, %v1622_v0  ;;  %v1815_v29 = vmul.f32 %v6877_v39, %v7215_v22  ;;  %v5929_v40 = vld [vmem:[%s6487_s7] ss:$0 sm:$0xff] }
 0x19d   : > { %v1920_v25 = vadd.f32 %v1890_v63, %v1859_v48  ;;  %v1816_v60 = vmul.f32 %v6877_v39, %v7216_v30  ;;  %v1876_v19 = vmul.f32 %v7174_v46, %v7217_v4  ;;  %v1877_v43 = vmul.f32 %v7174_v46, %v7218_v33  ;;  %v7220_v48 = vld [vmem:[#allocation59_spill] sm:$0xff] }
 0x19e   : > { %v1983_v1 = vadd.f32 %v1951_v2, %v1921_v59  ;;  %v1751_v0 = vadd.f32 %v1719_v8, %v1686_v57  ;;  %v1752_v28 = vadd.f32 %v1720_v44, %v1687_v62  ;;  %v1845_v41 = vadd.f32 %v1815_v29, %v1784_v14 }
 0x19f   : > { %v1982_v42 = vadd.f32 %v1950_v49, %v1920_v25  ;;  %v1846_v63 = vadd.f32 %v1816_v60, %v1785_v47  ;;  %v1162_v39 = vpack.c.bf16 %v7220_v48, %v7219_v7  ;;  %v2213_v58 = vadd.f32 %v5801_v53, %v5799_v51 }
 0x1a0   : > { %v1906_v11 = vadd.f32 %v1876_v19, %v1845_v41  ;;  %v1936_v46 = vadd.f32 %v1751_v0, %v1588_v45  ;;  %v1937_v38 = vadd.f32 %v1752_v28, %v1589_v10  ;;  %v1482_v22 = vmul.f32 %v4180_v54, %v5737_v15  ;;  %v3228_v45 = vld [vmem:[%s3512_s28] sm:$0xff]  ;;  %v5958_v62 = vpop.f32.mrf.mxu1 }
 0x1a1   : > { %v2000_v30 = vpack.c.bf16 %v1983_v1, %v1982_v42  ;;  %v1907_v2 = vadd.f32 %v1877_v43, %v1846_v63  ;;  %2246 = vmatmul.bf16.gmra.mxu1 %v1162_v39  ;;  %v2296_v8 = vadd.f32 %v5929_v40, %v2213_v58  ;;  %v1483_v49 = vmul.f32 %v4180_v54, %v5725_v13  ;;  %v5950_v54 = vpop.f32.mrf.mxu2  ;;  %v2257_v13 = vpop.f32.mrf.mxu3  ;;  %v3230_v1 = vld [vmem:[%s3512_s28 + $0x8] sm:$0xff] }
 0x1a2   : > { %v1968_v44 = vadd.f32 %v1936_v46, %v1906_v11  ;;  %v1513_v14 = vmul.f32 %v4183_v37, %v5698_v35  ;;  %v1514_v51 = vmul.f32 %v4183_v37, %v7190_v26  ;;  %v1574_v53 = vmul.f32 %v4197_v17, %v7191_v5  ;;  %v3231_v63 = vld [vmem:[%s3512_s28 + $0x88] sm:$0xff] }
 0x1a3   : > { %2144 = vmatmul.bf16.gmra.mxu2 %v2000_v30  ;;  %v1969_v15 = vadd.f32 %v1937_v38, %v1907_v2  ;;  %v2328_v10 = vadd.f32 %v3228_v45, %v2296_v8  ;;  %v1575_v47 = vmul.f32 %v4197_v17, %v7193_v36  ;;  %v1637_v59 = vmul.f32 %v3700_v20, %v1355_v31  ;;  %v5956_v5 = vpop.f32.mrf.mxu0  ;;  %v3232_v2 = vld [vmem:[%s3512_s28 + $0x20] sm:$0xff] }
 0x1a4   : > { %v1543_v57 = vadd.f32 %v1513_v14, %v1482_v22  ;;  %v1544_v35 = vadd.f32 %v1514_v51, %v1483_v49  ;;  %v1638_v37 = vmul.f32 %v3700_v20, %v5871_v61  ;;  %v1670_v26 = vmul.f32 %v3722_v34, %v5844_v27  ;;  %v5969_v20 = vld [vmem:[%s6488_s8] ss:$0 sm:$0xff] }
 0x1a5   : > { %v1993_v29 = vpack.c.bf16 %v1969_v15, %v1968_v44  ;;  %v1671_v17 = vmul.f32 %v3722_v34, %v5847_v16  ;;  %v1735_v36 = vmul.f32 %v7192_v12, %v5877_v50  ;;  %v1736_v31 = vmul.f32 %v7192_v12, %v5885_v52 }
 0x1a6   : > { %v1604_v27 = vadd.f32 %v1574_v53, %v1543_v57  ;;  %v1605_v61 = vadd.f32 %v1575_v47, %v1544_v35  ;;  %v1702_v25 = vadd.f32 %v1670_v26, %v1637_v59  ;;  %v1170_v60 = vpack.c.bf16 %v5825_v56, %v5823_v3  ;;  %v3233_v47 = vld [vmem:[%s3512_s28 + $0x10] sm:$0xff] }
 0x1a7   : > { %2109 = vmatmul.bf16.gmra.mxu0 %v1993_v29  ;;  %v1703_v34 = vadd.f32 %v1671_v17, %v1638_v37  ;;  %v2253_v16 = vadd.f32 %v5855_v32, %v5853_v21  ;;  %v2215_v12 = vadd.f32 %v5859_v23, %v5857_v55  ;;  %v5977_v50 = vmax.f32 %v2328_v10, 0.0  ;;  %v3229_v23 = vld [vmem:[%s3512_s28 + $0x80] sm:$0xff]  ;;  %v3234_v37 = vld [vmem:[%s3512_s28 + $0x28] sm:$0xff] }
 0x1a8   : > { %v1767_v52 = vadd.f32 %v1735_v36, %v1702_v25  ;;  %2286 = vmatmul.bf16.gmra.mxu3 %v1170_v60  ;;  %v2255_v4 = vadd.f32 %v5912_v18, %v5910_v24  ;;  %v2222_v41 = vpop.f32.mrf.mxu1  ;;  %v2218_v11 = vadd.f32 %v5918_v6, %v5916_v9  ;;  %v2258_v53 = vadd.f32 %v2257_v13, %v5950_v54 }
 0x1a9   : > { %v1768_v19 = vadd.f32 %v1736_v31, %v1703_v34  ;;  %v2312_v3 = vadd.f32 %v5929_v40, %v2253_v16  ;;  %v2297_v56 = vadd.f32 %v5929_v40, %v2215_v12  ;;  %v2396_v33 = vmul.f32 %v5969_v20, %v5977_v50  ;;  %v5988_v28 = vpop.f32.mrf.mxu2  ;;  %v5990_v24 = vpop.f32.mrf.mxu3 }
 0x1aa   : > { %v2313_v21 = vadd.f32 %v5929_v40, %v2255_v4  ;;  %v1952_v32 = vadd.f32 %v1767_v52, %v1604_v27  ;;  %v2298_v49 = vadd.f32 %v5929_v40, %v2218_v11  ;;  %v2314_v35 = vadd.f32 %v5929_v40, %v2258_v53 }
 0x1ab   : > { %v1953_v55 = vadd.f32 %v1768_v19, %v1605_v61  ;;  %v2344_v43 = vadd.f32 %v3229_v23, %v2312_v3  ;;  %v2329_v0 = vadd.f32 %v3230_v1, %v2297_v56  ;;  %2428 = vadd.xlane.f32.xlu0 %v2396_v33  ;;  %v2085_v18 = vpop.f32.mrf.mxu0  ;;  %v3235_v61 = vld [vmem:[%s3512_s28 + $0x90] sm:$0xff]  ;;  %v2220_v12 = vadd.f32 %v5958_v62, %v5956_v5  ;;  %v3236_v19 = vld [vmem:[%s3512_s28 + $0xa8] sm:$0xff] }
 0x1ac   : > { %v2345_v7 = vadd.f32 %v3231_v63, %v2313_v21  ;;  %v2223_v39 = vadd.f32 %v2222_v41, %v2085_v18  ;;  %v2330_v59 = vadd.f32 %v3233_v47, %v2298_v49  ;;  %v2346_v25 = vadd.f32 %v3235_v61, %v2314_v35  ;;  %v3237_v33 = vld [vmem:[%s3512_s28 + $0x30] sm:$0xff] }
 0x1ad   : > { %v5992_v42 = vmax.f32 %v2329_v0, 0.0  ;;  %v5995_v48 = vmax.f32 %v2344_v43, 0.0  ;;  %v2001_v58 = vpack.c.bf16 %v1953_v55, %v1952_v32  ;;  %v2299_v55 = vadd.f32 %v5929_v40, %v2220_v12 }
 0x1ae   : > { %v2300_v22 = vadd.f32 %v5929_v40, %v2223_v39  ;;  %v6004_v30 = vmax.f32 %v2345_v7, 0.0  ;;  %v6023_v54 = vmax.f32 %v2330_v59, 0.0  ;;  %v6037_v56 = vmax.f32 %v2346_v25, 0.0 }
 0x1af   : > { %v2412_v46 = vmul.f32 %v5969_v20, %v5995_v48  ;;  %v2397_v38 = vmul.f32 %v5969_v20, %v5992_v42  ;;  %v2260_v41 = vadd.f32 %v5990_v24, %v5988_v28 }
 0x1b0   : > { %v2332_v8 = vadd.f32 %v3232_v2, %v2300_v22  ;;  %v2224_v14 = vpop.f32.mrf.mxu1  ;;  %v2413_v15 = vmul.f32 %v5969_v20, %v6004_v30  ;;  %v2398_v52 = vmul.f32 %v5969_v20, %v6023_v54  ;;  %v2414_v63 = vmul.f32 %v5969_v20, %v6037_v56 }
 0x1b1   : > { %2460 = vadd.xlane.f32.xlu1 %v2412_v46  ;;  %v6008_v9 = vpop.f32.mrf.mxu2  ;;  %v6010_v6 = vpop.f32.mrf.mxu3  ;;  %v3239_v46 = vld [vmem:[%s3512_s28 + $0xb0] sm:$0xff]  ;;  %v2315_v22 = vadd.f32 %v5929_v40, %v2260_v41 }
 0x1b2   : > { %v6012_v51 = vmax.f32 %v2332_v8, 0.0  ;;  %v2263_v53 = vadd.f32 %v6010_v6, %v6008_v9  ;;  %v3242_v9 = vld [vmem:[%s3512_s28 + $0xa0] sm:$0xff] }
 0x1b3   : > { %2149 = vmatmul.bf16.gmra.mxu2 %v2001_v58  ;;  %2430 = vadd.xlane.f32.xlu0 %v2397_v38  ;;  %v2087_v44 = vpop.f32.mrf.mxu0  ;;  %v3238_v58 = vld [vmem:[%s3512_s28 + $0x18] sm:$0xff] }
 0x1b4   : > { %v2225_v45 = vadd.f32 %v2224_v14, %v2087_v44  ;;  %v2400_v10 = vmul.f32 %v5969_v20, %v6012_v51  ;;  %v2331_v11 = vadd.f32 %v3238_v58, %v2299_v55  ;;  %v3240_v44 = vld [vmem:[%s3512_s28 + $0x98] sm:$0xff]  ;;  %v2316_v59 = vadd.f32 %v5929_v40, %v2263_v53 }
 0x1b5   : > { %v2347_v14 = vadd.f32 %v3240_v44, %v2315_v22 }
 0x1b6   : > { %v2301_v57 = vadd.f32 %v5929_v40, %v2225_v45  ;;  %2436 = vadd.xlane.f32.xlu2 %v2400_v10  ;;  %v6059_v24 = vmax.f32 %v2331_v11, 0.0  ;;  %v2348_v6 = vadd.f32 %v3242_v9, %v2316_v59 }
 0x1b7   : > { %v6069_v47 = vmax.f32 %v2347_v14, 0.0  ;;  %v3246_v14 = vld [vmem:[%s3512_s28 + $0x50] sm:$0xff] }
 0x1b8   : > { %v2333_v26 = vadd.f32 %v3234_v37, %v2301_v57  ;;  %v2227_v31 = vpop.f32.mrf.mxu1  ;;  %v2399_v45 = vmul.f32 %v5969_v20, %v6059_v24  ;;  %v3241_v57 = vld [vmem:[%s3512_s28 + $0x40] sm:$0xff] }
 0x1b9   : > { %2462 = vadd.xlane.f32.xlu1 %v2413_v15  ;;  %v2127_v29 = vpop.f32.mrf.mxu2  ;;  %v2264_v17 = vpop.f32.mrf.mxu3 }
 0x1ba   : > { %v6025_v13 = vmax.f32 %v2333_v26, 0.0  ;;  %v2265_v27 = vadd.f32 %v2264_v17, %v2127_v29  ;;  %v2415_v17 = vmul.f32 %v5969_v20, %v6069_v47 }
 0x1bb   : > { %v2090_v36 = vpop.f32.mrf.mxu0 }
 0x1bc   : > { %v2228_v60 = vadd.f32 %v2227_v31, %v2090_v36  ;;  %v2401_v34 = vmul.f32 %v5969_v20, %v6025_v13  ;;  %v2317_v16 = vadd.f32 %v5929_v40, %v2265_v27 }
 0x1be   : > { %v2302_v4 = vadd.f32 %v5929_v40, %v2228_v60  ;;  %v2349_v3 = vadd.f32 %v3236_v19, %v2317_v16  ;;  %2438 = vadd.xlane.f32.xlu2 %v2401_v34  ;;  %v6081_v34 = vmax.f32 %v2348_v6, 0.0  ;;  %v3243_v16 = vld [vmem:[%s3512_s28 + $0x48] sm:$0xff] }
 0x1c0   : > { %v2334_v21 = vadd.f32 %v3237_v33, %v2302_v4  ;;  %v6040_v32 = vmax.f32 %v2349_v3, 0.0  ;;  %v2229_v1 = vpop.f32.mrf.mxu1  ;;  %v2416_v3 = vmul.f32 %v5969_v20, %v6081_v34 }
 0x1c1   : > { %2432 = vadd.xlane.f32.xlu1 %v2398_v52  ;;  %v2130_v62 = vpop.f32.mrf.mxu2  ;;  %v2267_v23 = vpop.f32.mrf.mxu3 }
 0x1c2   : > { %v6043_v5 = vmax.f32 %v2334_v21, 0.0  ;;  %v2268_v0 = vadd.f32 %v2267_v23, %v2130_v62  ;;  %v2417_v18 = vmul.f32 %v5969_v20, %v6040_v32  ;;  %v3244_v21 = vld [vmem:[%s3512_s28 + $0x38] sm:$0xff] }
 0x1c3   : > { %v2092_v43 = vpop.f32.mrf.mxu0 }
 0x1c4   : > { %v2402_v7 = vmul.f32 %v5969_v20, %v6043_v5  ;;  %v2318_v39 = vadd.f32 %v5929_v40, %v2268_v0  ;;  %v2230_v25 = vadd.f32 %v2229_v1, %v2092_v43  ;;  %v3245_v0 = vld [vmem:[%s3512_s28 + $0xb8] sm:$0xff] }
 0x1c6   : > { %2440 = vadd.xlane.f32.xlu0 %v2402_v7  ;;  %v2350_v38 = vadd.f32 %v3239_v46, %v2318_v39  ;;  %2470 = vadd.xlane.f32.xlu2 %v2417_v18  ;;  %v2303_v52 = vadd.f32 %v5929_v40, %v2230_v25 }
 0x1c8   : > { %v6057_v28 = vmax.f32 %v2350_v38, 0.0  ;;  %v2232_v8 = vpop.f32.mrf.mxu1  ;;  %v2335_v55 = vadd.f32 %v3244_v21, %v2303_v52 }
 0x1c9   : > { %2464 = vadd.xlane.f32.xlu1 %v2414_v63  ;;  %v2132_v36 = vpop.f32.mrf.mxu2  ;;  %v2269_v31 = vpop.f32.mrf.mxu3 }
 0x1ca   : > { %v2418_v49 = vmul.f32 %v5969_v20, %v6057_v28  ;;  %v2270_v19 = vadd.f32 %v2269_v31, %v2132_v36  ;;  %v6093_v1 = vmax.f32 %v2335_v55, 0.0 }
 0x1cb   : > { %v2095_v2 = vpop.f32.mrf.mxu0 }
 0x1cc   : > { %v2233_v15 = vadd.f32 %v2232_v8, %v2095_v2  ;;  %v2319_v43 = vadd.f32 %v5929_v40, %v2270_v19  ;;  %v2403_v41 = vmul.f32 %v5969_v20, %v6093_v1  ;;  %v3249_v19 = vld [vmem:[%s3512_s28 + $0xd0] sm:$0xff] }
 0x1ce   : > { %v2304_v10 = vadd.f32 %v5929_v40, %v2233_v15  ;;  %2472 = vadd.xlane.f32.xlu0 %v2418_v49  ;;  %v2351_v18 = vadd.f32 %v3245_v0, %v2319_v43  ;;  %v3247_v15 = vld [vmem:[%s3512_s28 + $0xc0] sm:$0xff] }
 0x1d0   : > { %v2336_v35 = vadd.f32 %v3241_v57, %v2304_v10  ;;  %v2234_v29 = vpop.f32.mrf.mxu1  ;;  %v6098_v63 = vmax.f32 %v2351_v18, 0.0  ;;  %v3248_v10 = vld [vmem:[%s3512_s28 + $0xc8] sm:$0xff] }
 0x1d1   : > { %2434 = vadd.xlane.f32.xlu1 %v2399_v45  ;;  %v2272_v23 = vpop.f32.mrf.mxu3 }
 0x1d2   : > { %v6073_v37 = vmax.f32 %v2336_v35, 0.0  ;;  %v2419_v2 = vmul.f32 %v5969_v20, %v6098_v63 }
 0x1d3   : > { %v2097_v26 = vpop.f32.mrf.mxu0 }
 0x1d4   : > { %v2235_v27 = vadd.f32 %v2234_v29, %v2097_v26  ;;  %v2404_v61 = vmul.f32 %v5969_v20, %v6073_v37 }
 0x1d6   : > { %v2305_v60 = vadd.f32 %v5929_v40, %v2235_v27  ;;  %2444 = vadd.xlane.f32.xlu2 %v2404_v61 }
 0x1d8   : > { %v2337_v12 = vadd.f32 %v3243_v16, %v2305_v60 }
 0x1d9   : > { %2466 = vadd.xlane.f32.xlu1 %v2415_v17  ;;  %v2274_v39 = vpop.f32.mrf.mxu3 }
 0x1da   : > { %v6085_v4 = vmax.f32 %v2337_v12, 0.0 }
 0x1dc   : > { %v2405_v33 = vmul.f32 %v5969_v20, %v6085_v4 }
 0x1dd   : > { %v2237_v11 = vpop.f32.mrf.mxu1 }
 0x1de   : > { %v2135_v62 = vpop.f32.mrf.mxu2  ;;  %2446 = vadd.xlane.f32.xlu0 %v2405_v33 }
 0x1df   : > { %v2273_v58 = vadd.f32 %v2272_v23, %v2135_v62  ;;  %v3250_v62 = vld [vmem:[%s3512_s28 + $0x58] sm:$0xff] }
 0x1e1   : > { %2468 = vadd.xlane.f32.xlu1 %v2416_v3  ;;  %v2320_v8 = vadd.f32 %v5929_v40, %v2273_v58 }
 0x1e3   : > { %v2352_v45 = vadd.f32 %v3247_v15, %v2320_v8 }
 0x1e5   : > { %v6112_v26 = vmax.f32 %v2352_v45, 0.0  ;;  %v2239_v17 = vpop.f32.mrf.mxu1 }
 0x1e6   : > { %v2137_v7 = vpop.f32.mrf.mxu2 }
 0x1e7   : > { %v2275_v46 = vadd.f32 %v2274_v39, %v2137_v7  ;;  %7221 = vst [vmem:[#allocation29_spill] sm:$0xff] %v6112_v26  ;;  %v2420_v6 = vmul.f32 %v5969_v20, %v6112_v26 }
 0x1e9   : > { %2442 = vadd.xlane.f32.xlu1 %v2403_v41  ;;  %v2321_v49 = vadd.f32 %v5929_v40, %v2275_v46  ;;  %2476 = vadd.xlane.f32.xlu2 %v2420_v6 }
 0x1eb   : > { %v2353_v59 = vadd.f32 %v3248_v10, %v2321_v49  ;;  %v3252_v49 = vld [vmem:[%s3512_s28 + $0x60] sm:$0xff] }
 0x1ec   : > { %v2100_v38 = vpop.f32.mrf.mxu0 }
 0x1ed   : > { %v2238_v22 = vadd.f32 %v2237_v11, %v2100_v38  ;;  %v6114_v29 = vmax.f32 %v2353_v59, 0.0  ;;  %v3251_v11 = vld [vmem:[%s3512_s28 + $0xd8] sm:$0xff]  ;;  %v2652_v38 = vadd.f32 %v5992_v42, %v5977_v50 }
 0x1ef   : > { %v2306_v44 = vadd.f32 %v5929_v40, %v2238_v22  ;;  %7222 = vst [vmem:[#allocation85_spill] sm:$0xff] %v6114_v29  ;;  %v2421_v9 = vmul.f32 %v5969_v20, %v6114_v29  ;;  %v2653_v8 = vadd.f32 %v2652_v38, %v6023_v54 }
 0x1f1   : > { %v2338_v53 = vadd.f32 %v3246_v14, %v2306_v44  ;;  %2474 = vadd.xlane.f32.xlu1 %v2419_v2  ;;  %2478 = vadd.xlane.f32.xlu0 %v2421_v9  ;;  %v2654_v45 = vadd.f32 %v2653_v8, %v6059_v24 }
 0x1f3   : > { %v6108_v57 = vmax.f32 %v2338_v53, 0.0  ;;  %v2655_v10 = vadd.f32 %v2654_v45, %v6012_v51 }
 0x1f4   : > { %v2102_v36 = vpop.f32.mrf.mxu0 }
 0x1f5   : > { %v2406_v35 = vmul.f32 %v5969_v20, %v6108_v57  ;;  %v2240_v61 = vadd.f32 %v2239_v17, %v2102_v36  ;;  %v2656_v6 = vadd.f32 %v2655_v10, %v6025_v13  ;;  %v3253_v36 = vld [vmem:[%s3512_s28 + $0x68] sm:$0xff] }
 0x1f7   : > { %v2307_v52 = vadd.f32 %v5929_v40, %v2240_v61  ;;  %v2657_v17 = vadd.f32 %v2656_v6, %v6043_v5 }
 0x1f9   : > { %2448 = vadd.xlane.f32.xlu1 %v2406_v35  ;;  %v2339_v23 = vadd.f32 %v3250_v62, %v2307_v52  ;;  %v3254_v62 = vld [vmem:[%s3512_s28 + $0x70] sm:$0xff] }
 0x1fb   : > { %v2277_v31 = vpop.f32.mrf.mxu3  ;;  %v6129_v39 = vmax.f32 %v2339_v23, 0.0 }
 0x1fd   : > { %v2407_v53 = vmul.f32 %v5969_v20, %v6129_v39 }
 0x203   : > { %v2242_v60 = vpop.f32.mrf.mxu1  ;;  %v2279_v33 = vpop.f32.mrf.mxu3 }
 0x209   : > { %v2105_v12 = vpop.f32.mrf.mxu0 }
 0x20a   : > { %v2243_v43 = vadd.f32 %v2242_v60, %v2105_v12  ;;  %v2658_v60 = vadd.f32 %v2657_v17, %v6093_v1 }
 0x20b   : > { %v2140_v27 = vpop.f32.mrf.mxu2  ;;  %v2244_v41 = vpop.f32.mrf.mxu1 }
 0x20c   : > { %v2278_v25 = vadd.f32 %v2277_v31, %v2140_v27  ;;  %v2308_v58 = vadd.f32 %v5929_v40, %v2243_v43  ;;  %v2659_v52 = vadd.f32 %v2658_v60, %v6073_v37 }
 0x20e   : > { %v2322_v16 = vadd.f32 %v5929_v40, %v2278_v25  ;;  %v2340_v44 = vadd.f32 %v3252_v49, %v2308_v58 }
 0x210   : > { %v2354_v3 = vadd.f32 %v3249_v19, %v2322_v16  ;;  %v6145_v59 = vmax.f32 %v2340_v44, 0.0 }
 0x211   : > { %v2107_v22 = vpop.f32.mrf.mxu0 }
 0x212   : > { %v6123_v21 = vmax.f32 %v2354_v3, 0.0  ;;  %v2245_v14 = vadd.f32 %v2244_v41, %v2107_v22  ;;  %v2408_v25 = vmul.f32 %v5969_v20, %v6145_v59 }
 0x213   : > { %v2142_v55 = vpop.f32.mrf.mxu2 }
 0x214   : > { %7223 = vst [vmem:[#allocation41_spill] sm:$0xff] %v6123_v21  ;;  %v2422_v0 = vmul.f32 %v5969_v20, %v6123_v21  ;;  %v2280_v18 = vadd.f32 %v2279_v33, %v2142_v55  ;;  %v2309_v35 = vadd.f32 %v5929_v40, %v2245_v14  ;;  %v2660_v55 = vadd.f32 %v2659_v52, %v6085_v4 }
 0x215   : > { %v2282_v61 = vpop.f32.mrf.mxu3 }
 0x216   : > { %2480 = vadd.xlane.f32.xlu1 %v2422_v0  ;;  %v2323_v7 = vadd.f32 %v5929_v40, %v2280_v18  ;;  %v2341_v31 = vadd.f32 %v3253_v36, %v2309_v35  ;;  %v2661_v18 = vadd.f32 %v2660_v55, %v6108_v57 }
 0x218   : > { %v2355_v46 = vadd.f32 %v3251_v11, %v2323_v7  ;;  %v6156_v33 = vmax.f32 %v2341_v31, 0.0  ;;  %v3255_v7 = vld [vmem:[%s3512_s28 + $0xe0] sm:$0xff]  ;;  %v2662_v22 = vadd.f32 %v2661_v18, %v6129_v39 }
 0x21a   : > { %v6135_v2 = vmax.f32 %v2355_v46, 0.0  ;;  %v2409_v46 = vmul.f32 %v5969_v20, %v6156_v33 }
 0x21c   : > { %7224 = vst [vmem:[#allocation68_spill] sm:$0xff] %v6135_v2  ;;  %v2423_v15 = vmul.f32 %v5969_v20, %v6135_v2 }
 0x21d   : > { %v2284_v38 = vpop.f32.mrf.mxu3 }
 0x21e   : > { %2450 = vadd.xlane.f32.xlu1 %v2407_v53  ;;  %2482 = vadd.xlane.f32.xlu2 %v2423_v15  ;;  %v2247_v9 = vpop.f32.mrf.mxu1  ;;  %v2663_v53 = vadd.f32 %v2662_v22, %v6145_v59 }
 0x220   : > { %v2664_v35 = vadd.f32 %v2663_v53, %v6156_v33 }
 0x224   : > { %v2110_v27 = vpop.f32.mrf.mxu0 }
 0x225   : > { %v2248_v16 = vadd.f32 %v2247_v9, %v2110_v27  ;;  %v3256_v9 = vld [vmem:[%s3512_s28 + $0x78] sm:$0xff]  ;;  %v3257_v27 = vld [vmem:[%s3512_s28 + $0xe8] sm:$0xff] }
 0x226   : > { %v2145_v12 = vpop.f32.mrf.mxu2  ;;  %2452 = vadd.xlane.f32.xlu1 %v2408_v25  ;;  %v2249_v0 = vpop.f32.mrf.mxu1 }
 0x227   : > { %v2310_v19 = vadd.f32 %v5929_v40, %v2248_v16  ;;  %v2283_v3 = vadd.f32 %v2282_v61, %v2145_v12 }
 0x229   : > { %v2342_v23 = vadd.f32 %v3254_v62, %v2310_v19  ;;  %v2324_v43 = vadd.f32 %v5929_v40, %v2283_v3 }
 0x22b   : > { %v6162_v41 = vmax.f32 %v2342_v23, 0.0  ;;  %v2356_v58 = vadd.f32 %v3255_v7, %v2324_v43  ;;  %v2287_v55 = vpop.f32.mrf.mxu3 }
 0x22c   : > { %v2112_v11 = vpop.f32.mrf.mxu0 }
 0x22d   : > { %v6168_v8 = vmax.f32 %v2356_v58, 0.0  ;;  %v2250_v49 = vadd.f32 %v2249_v0, %v2112_v11  ;;  %v2410_v44 = vmul.f32 %v5969_v20, %v6162_v41  ;;  %v2665_v36 = vadd.f32 %v2664_v35, %v6162_v41  ;;  %v3258_v35 = vld [vmem:[%s3512_s28 + $0xf0] sm:$0xff] }
 0x22e   : > { %2454 = vadd.xlane.f32.xlu1 %v2409_v46  ;;  %v2147_v14 = vpop.f32.mrf.mxu2 }
 0x22f   : > { %7225 = vst [vmem:[#allocation47_spill] sm:$0xff] %v6168_v8  ;;  %v2311_v15 = vadd.f32 %v5929_v40, %v2250_v49  ;;  %v2424_v45 = vmul.f32 %v5969_v20, %v6168_v8  ;;  %2456 = vadd.xlane.f32.xlu2 %v2410_v44  ;;  %v2285_v10 = vadd.f32 %v2284_v38, %v2147_v14  ;;  %v3360_v49 = vmov 256.0  }
 0x230   : > { %3078 = vrcp.f32 %v3360_v49 }
 0x231   : > { %v2343_v6 = vadd.f32 %v3256_v9, %v2311_v15  ;;  %2484 = vadd.xlane.f32.xlu0 %v2424_v45  ;;  %v2325_v17 = vadd.f32 %v5929_v40, %v2285_v10 }
 0x233   : > { %v6180_v31 = vmax.f32 %v2343_v6, 0.0  ;;  %v2357_v61 = vadd.f32 %v3257_v27, %v2325_v17  ;;  %v2289_v58 = vpop.f32.mrf.mxu3  ;;  %v3259_v17 = vld [vmem:[%s3512_s28 + $0xf8] sm:$0xff]  ;;  %s3361_s28 = smov 127  }
 0x235   : > { %v2666_v25 = vadd.f32 %v2665_v36, %v6180_v31  ;;  %v6184_v60 = vmax.f32 %v2357_v61, 0.0  ;;  %v2411_v16 = vmul.f32 %v5969_v20, %v6180_v31 }
 0x236   : > { %v2150_v3 = vpop.f32.mrf.mxu2  ;;  %v3079_v45 = vpop.eup %3078 }
 0x237   : > { %7226 = vst [vmem:[#allocation51_spill] sm:$0xff] %v6184_v60  ;;  %v2667_v12 = vadd.f32 %v2666_v25, %v5995_v48  ;;  %v2425_v52 = vmul.f32 %v5969_v20, %v6184_v60  ;;  %v2288_v46 = vadd.f32 %v2287_v55, %v2150_v3  ;;  %v2690_v27 = vmul.f32 256.0, %v3079_v45 }
 0x238   : > { %vm2694_vm3 = vweird.f32 %v3079_v45 }
 0x239   : > { %v2668_v19 = vadd.f32 %v2667_v12, %v6004_v30  ;;  %2458 = vadd.xlane.f32.xlu0 %v2411_v16  ;;  %2486 = vadd.xlane.f32.xlu1 %v2425_v52  ;;  %v2326_v14 = vadd.f32 %v5929_v40, %v2288_v46  ;;  %v2691_v52 = vsub.f32 1.0, %v2690_v27 }
 0x23b   : > { %v2669_v62 = vadd.f32 %v2668_v19, %v6037_v56  ;;  %v2358_v9 = vadd.f32 %v3258_v35, %v2326_v14  ;;  %v2692_v3 = vmul.f32 %v3079_v45, %v2691_v52 }
 0x23d   : > { %v2670_v23 = vadd.f32 %v2669_v62, %v6069_v47  ;;  %v6208_v25 = vmax.f32 %v2358_v9, 0.0 }
 0x23e   : > { %v2152_v7 = vpop.f32.mrf.mxu2 }
 0x23f   : > { %v2671_v43 = vadd.f32 %v2670_v23, %v6081_v34  ;;  %v2290_v22 = vadd.f32 %v2289_v58, %v2152_v7  ;;  %7227 = vst [vmem:[#allocation36_spill] sm:$0xff] %v6208_v25  ;;  %v2693_v23 = vadd.f32 %v3079_v45, %v2692_v3 }
 0x241   : > { %v2672_v0 = vadd.f32 %v2671_v43, %v6040_v32  ;;  %v2327_v15 = vadd.f32 %v5929_v40, %v2290_v22  ;;  %v2695_v7 = vsel %vm2694_vm3, %v3079_v45, %v2693_v23 }
 0x243   : > { %v2673_v18 = vadd.f32 %v2672_v0, %v6057_v28  ;;  %v2359_v36 = vadd.f32 %v3259_v17, %v2327_v15  ;;  %v2461_v0 = vpop.xlane.xlu1 %2460  ;;  %v2429_v15 = vpop.xlane.xlu0 %2428 }
 0x245   : > { %v2674_v11 = vadd.f32 %v2673_v18, %v6098_v63  ;;  %v6211_v12 = vmax.f32 %v2359_v36, 0.0 }
 0x247   : > { %v2675_v38 = vadd.f32 %v2674_v11, %v6112_v26  ;;  %7228 = vst [vmem:[#allocation57_spill] sm:$0xff] %v6211_v12  ;;  %v2427_v14 = vmul.f32 %v5969_v20, %v6211_v12 }
 0x249   : > { %v2676_v44 = vadd.f32 %v2675_v38, %v6114_v29 }
 0x24b   : > { %v2677_v53 = vadd.f32 %v2676_v44, %v6123_v21  ;;  %v2463_v46 = vpop.xlane.xlu1 %2462  ;;  %v2426_v44 = vmul.f32 %v5969_v20, %v6208_v25  ;;  %v2431_v35 = vpop.xlane.xlu0 %2430 }
 0x24d   : > { %v2678_v10 = vadd.f32 %v2677_v53, %v6135_v2  ;;  %v2437_v53 = vpop.xlane.xlu2 %2436 }
 0x24f   : > { %v2679_v6 = vadd.f32 %v2678_v10, %v6168_v8 }
 0x251   : > { %v2680_v61 = vadd.f32 %v2679_v6, %v6184_v60 }
 0x253   : > { %v2681_v16 = vadd.f32 %v2680_v61, %v6208_v25  ;;  %v2433_v38 = vpop.xlane.xlu1 %2432  ;;  %v2441_v17 = vpop.xlane.xlu0 %2440 }
 0x255   : > { %v2682_v40 = vadd.f32 %v2681_v16, %v6211_v12  ;;  %v2439_v10 = vpop.xlane.xlu2 %2438 }
 0x257   : > { %v2683_v19 = vrot.slane %v2682_v40, 4 }
 0x259   : > { %v2684_v55 = vadd.f32 %v2683_v19, %v2682_v40  ;;  %v2492_v40 = vsub.f32 0.0, %v2429_v15  ;;  %v2493_v19 = vsub.f32 0.0, %v2431_v35 }
 0x25b   : > { %v2685_v62 = vrot.slane %v2684_v55, 2  ;;  %v2465_v22 = vpop.xlane.xlu1 %2464  ;;  %v2473_v27 = vpop.xlane.xlu0 %2472 }
 0x25d   : > { %v2686_v43 = vadd.f32 %v2685_v62, %v2684_v55  ;;  %v2471_v6 = vpop.xlane.xlu2 %2470  ;;  %v2524_v55 = vmul.f32 1.442695, %v2492_v40  ;;  %v2526_v62 = vmul.f32 1.442695, %v2493_v19  ;;  %v2510_v19 = vsub.f32 0.0, %v2465_v22 }
 0x25e   : > { %v2514_v22 = vsub.f32 0.0, %v2473_v27 }
 0x25f   : > { %v2687_v18 = vrot.slane %v2686_v43, 1  ;;  %3080 = vpow2.f32 %v2524_v55 }
 0x260   : > { %3082 = vpow2.f32 %v2526_v62  ;;  %v2560_v62 = vmul.f32 1.442695, %v2510_v19  ;;  %v2568_v19 = vmul.f32 1.442695, %v2514_v22 }
 0x261   : > { %v2688_v58 = vadd.f32 %v2687_v18, %v2686_v43  ;;  %v2508_v18 = vsub.f32 0.0, %v2461_v0  ;;  %v2498_v0 = vsub.f32 0.0, %v2441_v17 }
 0x263   : > { %v6214_v11 = vmul.f32 %v2695_v7, %v2688_v58  ;;  %v2435_v49 = vpop.xlane.xlu1 %2434  ;;  %v6234_v52 = vpop.xlane.xlu0 %2446  ;;  %v2509_v7 = vsub.f32 0.0, %v2463_v46  ;;  %v2494_v58 = vsub.f32 0.0, %v2433_v38  ;;  %v2497_v46 = vsub.f32 0.0, %v2439_v10 }
 0x264   : > { %v2536_v29 = vmul.f32 1.442695, %v2498_v0 }
 0x265   : > { %2709 = vrot.lane.b32.xlu0 %v6214_v11, %s3361_s28  ;;  %2699 = vrot.lane.b32.xlu2 %v6214_v11, %s3362_s24  ;;  %v6228_v61 = vpop.xlane.xlu2 %2444  ;;  %v2558_v25 = vmul.f32 1.442695, %v2509_v7  ;;  %v3081_v35 = vpop.eup %3080  ;;  %v2528_v60 = vmul.f32 1.442695, %v2494_v58  ;;  %v7229_v7 = vlaneseq  ;;  %s2819_s28 = scalar_lea.sflag [#allocation4], %s3506_s18  ;;  %s3304_s24 = sshra.s32 %s2834_s21, 4  ;;  %s3305_s24 = int_to_ptr.hbm [resolvable:$true] %s3304_s24 }
 0x266   : > { %v3083_v40 = vpop.eup %3082  ;;  %v2588_v55 = vadd.f32 1.0, %v3081_v35  ;;  %v2500_v0 = vsub.f32 0.0, %v6228_v61  ;;  %s3306_s29 = scalar_lea.hbm %s3305_s24, 256  ;;  %p3311_p0 = scmp.lt.s32.totalorder %s3305_s24, %s6490_s10 }
 0x267   : > { %v2589_v38 = vadd.f32 1.0, %v3083_v40  ;;  %v2698_v21 = vand.u32 127, %v7229_v7  ;;  %p3307_p6 = scmp.ne.s32.totalorder %s3305_s24, %s3306_s29  ;;  %p3312_p1 = scmp.lt.s32.totalorder %s3310_s11, %s3306_s29 }
 0x268   : > { %v2540_v22 = vmul.f32 1.442695, %v2500_v0 }
 0x269   : > { %vm2701_vm4 = vcmp.lt.s32.totalorder %v2698_v21, 1  ;;  %vm2711_vm5 = vcmp.ge.s32.totalorder %v2698_v21, 127  ;;  %p3308_p9 = pnand %p3307_p6, %p3470_p11  ;;  %p3313_p3 = por %p3312_p1, %p3311_p0 }
 0x26b   : > { %v6222_v45 = vpop.xlane.xlu1 %2466  ;;  %v6238_v23 = vpop.xlane.xlu0 %2478  ;;  %p3309_p13 = pneg %p3308_p9 }
 0x26c   : > { %v2511_v40 = vsub.f32 0.0, %v6222_v45 }
 0x26d   : > { %v6232_v20 = vpop.xlane.xlu2 %2476  ;;  %p3314_p4 = pnand %p3313_p3, %p3309_p13 }
 0x26e   : > { %v2562_v7 = vmul.f32 1.442695, %v2511_v40 }
 0x273   : > { %v6224_v9 = vpop.xlane.xlu1 %2468 }
 0x27b   : > { %v6226_v36 = vpop.xlane.xlu1 %2442 }
 0x27c   : > { %v2499_v26 = vsub.f32 0.0, %v6226_v36 }
 0x27e   : > { %v2538_v36 = vmul.f32 1.442695, %v2499_v26 }
 0x283   : > { %v6230_v16 = vpop.xlane.xlu1 %2474 }
 0x28b   : > { %v6236_v3 = vpop.xlane.xlu1 %2448 }
 0x28e   : > { %2488 = vadd.xlane.f32.xlu2 %v2426_v44  ;;  %v2556_v44 = vmul.f32 1.442695, %v2508_v18  ;;  %v2513_v18 = vsub.f32 0.0, %v2471_v6 }
 0x28f   : > { %2490 = vadd.xlane.f32.xlu0 %v2427_v14  ;;  %v2496_v14 = vsub.f32 0.0, %v2437_v53  ;;  %v2495_v53 = vsub.f32 0.0, %v2435_v49 }
 0x290   : > { %3084 = vpow2.f32 %v2556_v44  ;;  %v2534_v44 = vmul.f32 1.442695, %v2497_v46 }
 0x291   : > { %v6240_v43 = vpop.xlane.xlu2 %2482  ;;  %v2532_v8 = vmul.f32 1.442695, %v2496_v14  ;;  %3086 = vpow2.f32 %v2558_v25  ;;  %v2530_v17 = vmul.f32 1.442695, %v2495_v53  ;;  %v2566_v25 = vmul.f32 1.442695, %v2513_v18 }
 0x292   : > { %3088 = vpow2.f32 %v2528_v60  ;;  %v2706_v18 = vld [vmem:[%s6489_s9 + $0x1] sm:$0x1] }
 0x293   : > { %v6242_v12 = vpop.xlane.xlu1 %2480  ;;  %3090 = vpow2.f32 %v2532_v8 }
 0x294   : > { %3092 = vrcp.f32 %v2588_v55  ;;  %v2703_v55 = vld [vmem:[%s6489_s9] sm:$0x1] }
 0x295   : > { %3094 = vrcp.f32 %v2589_v38 }
 0x296   : > { %v3085_v58 = vpop.eup %3084  ;;  %3096 = vpow2.f32 %v2560_v62 }
 0x297   : > { %v3087_v35 = vpop.eup %3086  ;;  %v2604_v49 = vadd.f32 1.0, %v3085_v58  ;;  %3098 = vpow2.f32 %v2536_v29  ;;  %v2501_v29 = vsub.f32 0.0, %v6234_v52  ;;  %v2713_v52 = vld [vmem:[%s6489_s9 + $0x2] sm:$0x1] }
 0x298   : > { %v3089_v8 = vpop.eup %3088  ;;  %3100 = vpow2.f32 %v2534_v44  ;;  %v2605_v27 = vadd.f32 1.0, %v3087_v35 }
 0x299   : > { %v3091_v6 = vpop.eup %3090  ;;  %3102 = vpow2.f32 %v2530_v17  ;;  %v2590_v53 = vadd.f32 1.0, %v3089_v8  ;;  %v2542_v35 = vmul.f32 1.442695, %v2501_v29 }
 0x29a   : > { %v6258_v38 = vpop.eup %3092  ;;  %3104 = vpow2.f32 %v2566_v25  ;;  %v2592_v45 = vadd.f32 1.0, %v3091_v6 }
 0x29b   : > { %v6249_v14 = vpop.xlane.xlu1 %2450  ;;  %v6261_v62 = vpop.eup %3094  ;;  %3106 = vrcp.f32 %v2604_v49 }
 0x29c   : > { %v3097_v61 = vpop.eup %3096  ;;  %3108 = vpow2.f32 %v2568_v19 }
 0x29d   : > { %v3099_v44 = vpop.eup %3098  ;;  %3110 = vrcp.f32 %v2605_v27  ;;  %v2606_v6 = vadd.f32 1.0, %v3097_v61 }
 0x29e   : > { %v3101_v17 = vpop.eup %3100  ;;  %3112 = vrcp.f32 %v2590_v53  ;;  %v2594_v19 = vadd.f32 1.0, %v3099_v44 }
 0x29f   : > { %v3103_v49 = vpop.eup %3102  ;;  %3114 = vrcp.f32 %v2592_v45  ;;  %v2512_v45 = vsub.f32 0.0, %v6224_v9 }
 0x2a0   : > { %v3105_v21 = vpop.eup %3104  ;;  %3116 = vpow2.f32 %v2562_v7  ;;  %v2591_v29 = vadd.f32 1.0, %v3103_v49 }
 0x2a1   : > { %3118 = vpow2.f32 %v2540_v22  ;;  %v2609_v61 = vadd.f32 1.0, %v3105_v21 }
 0x2a2   : > { %v6246_v2 = vpop.xlane.xlu2 %2456  ;;  %3120 = vpow2.f32 %v2542_v35 }
 0x2a3   : > { %v6269_v25 = vpop.xlane.xlu1 %2452  ;;  %3122 = vrcp.f32 %v2606_v6  ;;  %v2503_v6 = vsub.f32 0.0, %v6249_v14 }
 0x2a4   : > { %v6244_v15 = vpop.xlane.xlu0 %2484  ;;  %3124 = vrcp.f32 %v2594_v19  ;;  %v2504_v26 = vsub.f32 0.0, %v6269_v25 }
 0x2a5   : > { %v2546_v14 = vmul.f32 1.442695, %v2503_v6 }
 0x2ac   : > { %v6251_v10 = vpop.xlane.xlu0 %2458 }
 0x2ad   : > { %v2507_v25 = vsub.f32 0.0, %v6251_v10 }
 0x2af   : > { %v2554_v6 = vmul.f32 1.442695, %v2507_v25 }
 0x2bf   : > { %v2700_v60 = vpop.permute.xlu2 %2699 }
 0x2c0   : > { %v2702_v46 = vsel %vm2701_vm4, 0.0, %v2700_v60  ;;  %v2707_v60 = vmul.f32 %v2706_v18, %v6214_v11 }
 0x2c1   : > { %v2704_v58 = vmul.f32 %v2703_v55, %v2702_v46  ;;  %v6272_v55 = vpop.eup %3106  ;;  %v2593_v46 = vadd.f32 1.0, %v3101_v17 }
 0x2c2   : > { %v3109_v53 = vpop.eup %3108 }
 0x2c3   : > { %v2708_v27 = vadd.f32 %v2707_v60, %v2704_v58  ;;  %v6275_v18 = vpop.eup %3110  ;;  %v2502_v58 = vsub.f32 0.0, %v6236_v3  ;;  %3126 = vrcp.f32 %v2593_v46  ;;  %v2610_v22 = vadd.f32 1.0, %v3109_v53 }
 0x2c4   : > { %v6278_v7 = vpop.eup %3112  ;;  %3128 = vrcp.f32 %v2591_v29 }
 0x2c5   : > { %3130 = vrcp.f32 %v2609_v61  ;;  %v2544_v9 = vmul.f32 1.442695, %v2502_v58  ;;  %v2515_v61 = vsub.f32 0.0, %v6230_v16 }
 0x2d7   : > { %v2710_v8 = vpop.permute.xlu0 %2709 }
 0x2d8   : > { %v2712_v40 = vsel %vm2711_vm5, 0.0, %v2710_v8  ;;  %v2564_v8 = vmul.f32 1.442695, %v2512_v45 }
 0x2d9   : > { %v2714_v0 = vmul.f32 %v2713_v52, %v2712_v40  ;;  %v6281_v52 = vpop.eup %3114  ;;  %v2455_v40 = vpop.xlane.xlu1 %2454 }
 0x2da   : > { %v3117_v17 = vpop.eup %3116  ;;  %v2505_v53 = vsub.f32 0.0, %v2455_v40 }
 0x2db   : > { %v2715_v11 = vadd.f32 %v2714_v0, %v2708_v27  ;;  %v3119_v60 = vpop.eup %3118  ;;  %v2607_v3 = vadd.f32 1.0, %v3117_v17 }
 0x2dc   : > { %v3121_v49 = vpop.eup %3120  ;;  %v2596_v27 = vadd.f32 1.0, %v3119_v60  ;;  %v2550_v17 = vmul.f32 1.442695, %v2505_v53  ;;  %v2517_v60 = vsub.f32 0.0, %v6238_v23  ;;  %v2519_v23 = vsub.f32 0.0, %v6240_v43 }
 0x2dd   : > { %v2716_v44 = vsub.f32 0.0, %v2715_v11  ;;  %v6284_v21 = vpop.eup %3122  ;;  %v2597_v46 = vadd.f32 1.0, %v3121_v49  ;;  %v2506_v11 = vsub.f32 0.0, %v6246_v2  ;;  %v2570_v49 = vmul.f32 1.442695, %v2515_v61 }
 0x2de   : > { %v6286_v19 = vpop.eup %3124 }
 0x2df   : > { %v2717_v35 = vmul.f32 1.442695, %v2716_v44  ;;  %v6289_v0 = vpop.eup %3126  ;;  %v2548_v44 = vmul.f32 1.442695, %v2504_v26  ;;  %v2552_v2 = vmul.f32 1.442695, %v2506_v11 }
 0x2e0   : > { %v6291_v29 = vpop.eup %3128  ;;  %v2574_v26 = vmul.f32 1.442695, %v2517_v60 }
 0x2e1   : > { %3132 = vpow2.f32 %v2717_v35  ;;  %v6294_v45 = vpop.eup %3130 }
 0x2e2   : > { %3134 = vrcp.f32 %v2610_v22 }
 0x2e3   : > { %3136 = vpow2.f32 %v2538_v36 }
 0x2e4   : > { %3138 = vpow2.f32 %v2564_v8 }
 0x2e5   : > { %3140 = vpow2.f32 %v2544_v9  ;;  %v2516_v9 = vsub.f32 0.0, %v6232_v20 }
 0x2e6   : > { %3142 = vrcp.f32 %v2607_v3  ;;  %v2518_v3 = vsub.f32 0.0, %v6242_v12  ;;  %v2578_v12 = vmul.f32 1.442695, %v2519_v23 }
 0x2e7   : > { %v3133_v58 = vpop.eup %3132  ;;  %3144 = vrcp.f32 %v2596_v27  ;;  %v2572_v11 = vmul.f32 1.442695, %v2516_v9 }
 0x2e8   : > { %v6298_v22 = vpop.eup %3134  ;;  %3146 = vrcp.f32 %v2597_v46  ;;  %v2719_v36 = vadd.f32 1.0, %v3133_v58  ;;  %v2576_v61 = vmul.f32 1.442695, %v2518_v3 }
 0x2e9   : > { %v3137_v35 = vpop.eup %3136  ;;  %3148 = vpow2.f32 %v2546_v14 }
 0x2ea   : > { %v6301_v8 = vpop.eup %3138  ;;  %3150 = vrcp.f32 %v2719_v36  ;;  %v2595_v40 = vadd.f32 1.0, %v3137_v35  ;;  %v2487_v36 = vpop.xlane.xlu1 %2486 }
 0x2eb   : > { %v3141_v16 = vpop.eup %3140  ;;  %3152 = vpow2.f32 %v2548_v44  ;;  %v2520_v44 = vsub.f32 0.0, %v6244_v15  ;;  %v2521_v3 = vsub.f32 0.0, %v2487_v36 }
 0x2ec   : > { %v3143_v10 = vpop.eup %3142  ;;  %3154 = vpow2.f32 %v2550_v17  ;;  %v2598_v53 = vadd.f32 1.0, %v3141_v16 }
 0x2ed   : > { %v6305_v27 = vpop.eup %3144  ;;  %3156 = vpow2.f32 %v2552_v2 }
 0x2ee   : > { %v6308_v46 = vpop.eup %3146  ;;  %3158 = vpow2.f32 %v2570_v49 }
 0x2ef   : > { %v3149_v14 = vpop.eup %3148  ;;  %3160 = vpow2.f32 %v2554_v6 }
 0x2f0   : > { %v3151_v20 = vpop.eup %3150  ;;  %3162 = vrcp.f32 %v2595_v40  ;;  %v2599_v43 = vadd.f32 1.0, %v3149_v14  ;;  %v2580_v40 = vmul.f32 1.442695, %v2520_v44 }
 0x2f1   : > { %v3153_v58 = vpop.eup %3152  ;;  %3164 = vpow2.f32 %v2574_v26  ;;  %v6311_v25 = vperm.slane %v3151_v20, 0 }
 0x2f2   : > { %v3155_v17 = vpop.eup %3154  ;;  %3166 = vrcp.f32 %v2598_v53  ;;  %v2600_v15 = vadd.f32 1.0, %v3153_v58  ;;  %v2582_v58 = vmul.f32 1.442695, %v2521_v3 }
 0x2f3   : > { %v3157_v35 = vpop.eup %3156  ;;  %3168 = vpow2.f32 %v2572_v11  ;;  %v2722_v60 = vadd.f32 %v6258_v38, %v6311_v25  ;;  %v2723_v2 = vadd.f32 %v6261_v62, %v6311_v25  ;;  %v2724_v49 = vadd.f32 %v6278_v7, %v6311_v25 }
 0x2f4   : > { %v3159_v16 = vpop.eup %3158  ;;  %3170 = vpow2.f32 %v2576_v61  ;;  %v2726_v9 = vadd.f32 %v6281_v52, %v6311_v25  ;;  %v2602_v23 = vadd.f32 1.0, %v3157_v35  ;;  %v2601_v38 = vadd.f32 1.0, %v3155_v17 }
 0x2f5   : > { %v3161_v6 = vpop.eup %3160  ;;  %3172 = vpow2.f32 %v2578_v12  ;;  %v2725_v62 = vadd.f32 %v6291_v29, %v6311_v25  ;;  %v6325_v7 = vadd.f32 %v6272_v55, %v6311_v25  ;;  %v6329_v14 = vadd.f32 %v6275_v18, %v6311_v25 }
 0x2f6   : > { %v3163_v26 = vpop.eup %3162  ;;  %3174 = vrcp.f32 %v2599_v43  ;;  %v6333_v52 = vadd.f32 %v6284_v21, %v6311_v25  ;;  %v6336_v11 = vadd.f32 %v3143_v10, %v6311_v25  ;;  %v2603_v61 = vadd.f32 1.0, %v3161_v6 }
 0x2f7   : > { %v3165_v53 = vpop.eup %3164  ;;  %3176 = vrcp.f32 %v2600_v15  ;;  %v6340_v29 = vadd.f32 %v6294_v45, %v6311_v25  ;;  %v6344_v55 = vadd.f32 %v6298_v22, %v6311_v25  ;;  %v2727_v21 = vadd.f32 %v6289_v0, %v6311_v25 }
 0x2f8   : > { %v3167_v20 = vpop.eup %3166  ;;  %3178 = vpow2.f32 %v2580_v40  ;;  %v2728_v12 = vadd.f32 %v6286_v19, %v6311_v25  ;;  %v2754_v44 = vmul.f32 %v2722_v60, %v5977_v50  ;;  %v2755_v45 = vmul.f32 %v2723_v2, %v5992_v42 }
 0x2f9   : > { %v3169_v18 = vpop.eup %3168  ;;  %3180 = vrcp.f32 %v2601_v38  ;;  %v2729_v22 = vadd.f32 %v3163_v26, %v6311_v25  ;;  %v2756_v43 = vmul.f32 %v2724_v49, %v6023_v54  ;;  %v2757_v36 = vmul.f32 %v2725_v62, %v6059_v24 }
 0x2fa   : > { %v3171_v10 = vpop.eup %3170  ;;  %3182 = vrcp.f32 %v2602_v23  ;;  %v2730_v0 = vadd.f32 %v6305_v27, %v6311_v25  ;;  %v2758_v15 = vmul.f32 %v2726_v9, %v6012_v51  ;;  %2786 = vst [vmem:[%s6360_s26] sm:$0xff] %v2754_v44  ;;  %v2608_v50 = vadd.f32 1.0, %v6301_v8 }
 0x2fb   : > { %v3173_v17 = vpop.eup %3172  ;;  %3184 = vrcp.f32 %v2603_v61  ;;  %v2731_v42 = vadd.f32 %v6308_v46, %v6311_v25  ;;  %v2759_v54 = vmul.f32 %v2727_v21, %v6025_v13  ;;  %2787 = vst [vmem:[%s6360_s26 + $0x8] sm:$0xff] %v2755_v45  ;;  %v2611_v51 = vadd.f32 1.0, %v3159_v16 }
 0x2fc   : > { %v3175_v35 = vpop.eup %3174  ;;  %3186 = vpow2.f32 %v2582_v58  ;;  %v2732_v19 = vadd.f32 %v3167_v20, %v6311_v25  ;;  %v2760_v27 = vmul.f32 %v2728_v12, %v6043_v5  ;;  %2788 = vst [vmem:[%s6360_s26 + $0x10] sm:$0xff] %v2756_v43  ;;  %v2613_v2 = vadd.f32 1.0, %v3165_v53 }
 0x2fd   : > { %v3177_v24 = vpop.eup %3176  ;;  %v2733_v8 = vadd.f32 %v3175_v35, %v6311_v25  ;;  %v2761_v49 = vmul.f32 %v2729_v22, %v6093_v1  ;;  %2789 = vst [vmem:[%s6360_s26 + $0x18] sm:$0xff] %v2757_v36  ;;  %v2612_v9 = vadd.f32 1.0, %v3169_v18  ;;  %v2762_v16 = vmul.f32 %v2730_v0, %v6073_v37 }
 0x2fe   : > { %v3179_v60 = vpop.eup %3178  ;;  %v2734_v13 = vadd.f32 %v3177_v24, %v6311_v25  ;;  %2790 = vst [vmem:[%s6360_s26 + $0x20] sm:$0xff] %v2758_v15  ;;  %3188 = vrcp.f32 %v2608_v50  ;;  %v2614_v5 = vadd.f32 1.0, %v3171_v10  ;;  %v2763_v26 = vmul.f32 %v2731_v42, %v6085_v4 }
 0x2ff   : > { %v3181_v46 = vpop.eup %3180  ;;  %2791 = vst [vmem:[%s6360_s26 + $0x28] sm:$0xff] %v2759_v54  ;;  %3190 = vrcp.f32 %v2611_v51  ;;  %v2764_v62 = vmul.f32 %v2732_v19, %v6108_v57  ;;  %v2765_v61 = vmul.f32 %v2733_v8, %v6129_v39  ;;  %v2615_v18 = vadd.f32 1.0, %v3173_v17  ;;  %v7230_v19 = vld [vmem:[#allocation29_spill] sm:$0xff]  ;;  %v7233_v8 = vld [vmem:[#allocation68_spill] sm:$0xff] }
 0x300   : > { %v3183_v6 = vpop.eup %3182  ;;  %v2735_v40 = vadd.f32 %v3181_v46, %v6311_v25  ;;  %2792 = vst [vmem:[%s6360_s26 + $0x30] sm:$0xff] %v2760_v27  ;;  %3192 = vrcp.f32 %v2613_v2  ;;  %v2766_v21 = vmul.f32 %v2734_v13, %v6145_v59  ;;  %v2616_v57 = vadd.f32 1.0, %v3179_v60  ;;  %v7231_v27 = vld [vmem:[#allocation85_spill] sm:$0xff]  ;;  %v7234_v46 = vld [vmem:[#allocation47_spill] sm:$0xff] }
 0x301   : > { %v2489_v3 = vpop.xlane.xlu2 %2488  ;;  %v3185_v1 = vpop.eup %3184  ;;  %v2736_v23 = vadd.f32 %v3183_v6, %v6311_v25  ;;  %2793 = vst [vmem:[%s6360_s26 + $0x38] sm:$0xff] %v2761_v49  ;;  %3194 = vrcp.f32 %v2612_v9  ;;  %v2775_v50 = vmul.f32 %v6340_v29, %v6040_v32  ;;  %v7232_v2 = vld [vmem:[#allocation41_spill] sm:$0xff] }
 0x302   : > { %v2522_v38 = vsub.f32 0.0, %v2489_v3  ;;  %v2491_v37 = vpop.xlane.xlu0 %2490  ;;  %v3187_v53 = vpop.eup %3186  ;;  %v2737_v20 = vadd.f32 %v3185_v1, %v6311_v25  ;;  %2794 = vst [vmem:[%s6360_s26 + $0x40] sm:$0xff] %v2762_v16  ;;  %3196 = vrcp.f32 %v2614_v5  ;;  %v2767_v10 = vmul.f32 %v2735_v40, %v6156_v33  ;;  %v7235_v16 = vld [vmem:[#allocation51_spill] sm:$0xff] }
 0x303   : > { %v2523_v4 = vsub.f32 0.0, %v2491_v37  ;;  %2795 = vst [vmem:[%s6360_s26 + $0x48] sm:$0xff] %v2763_v26  ;;  %v2617_v44 = vadd.f32 1.0, %v3187_v53  ;;  %v2768_v39 = vmul.f32 %v2736_v23, %v6162_v41  ;;  %v2770_v33 = vmul.f32 %v6325_v7, %v5995_v48  ;;  %v7236_v26 = vld [vmem:[#allocation36_spill] sm:$0xff]  ;;  %v7237_v23 = vld [vmem:[#allocation57_spill] sm:$0xff] }
 0x304   : > { %v2584_v58 = vmul.f32 1.442695, %v2522_v38  ;;  %2796 = vst [vmem:[%s6360_s26 + $0x50] sm:$0xff] %v2764_v62  ;;  %v3189_v45 = vpop.eup %3188  ;;  %v2769_v17 = vmul.f32 %v2737_v20, %v6180_v31  ;;  %v2771_v41 = vmul.f32 %v6329_v14, %v6004_v30  ;;  %v2772_v31 = vmul.f32 %v6333_v52, %v6037_v56 }
 0x305   : > { %v2586_v12 = vmul.f32 1.442695, %v2523_v4  ;;  %2797 = vst [vmem:[%s6360_s26 + $0x58] sm:$0xff] %v2765_v61  ;;  %v3191_v59 = vpop.eup %3190  ;;  %v2742_v22 = vadd.f32 %v3189_v45, %v6311_v25  ;;  %v2773_v48 = vmul.f32 %v6336_v11, %v6069_v47  ;;  %v2776_v11 = vmul.f32 %v6344_v55, %v6057_v28 }
 0x306   : > { %3198 = vpow2.f32 %v2584_v58  ;;  %2798 = vst [vmem:[%s6360_s26 + $0x60] sm:$0xff] %v2766_v21  ;;  %v3193_v43 = vpop.eup %3192  ;;  %v2745_v0 = vadd.f32 %v3191_v59, %v6311_v25 }
 0x307   : > { %3200 = vpow2.f32 %v2586_v12  ;;  %2799 = vst [vmem:[%s6360_s26 + $0x68] sm:$0xff] %v2767_v10  ;;  %v3195_v36 = vpop.eup %3194  ;;  %v2774_v30 = vmul.f32 %v2742_v22, %v6081_v34  ;;  %v2747_v56 = vadd.f32 %v3193_v43, %v6311_v25 }
 0x308   : > { %3202 = vrcp.f32 %v2615_v18  ;;  %2800 = vst [vmem:[%s6360_s26 + $0x70] sm:$0xff] %v2768_v39  ;;  %v3197_v35 = vpop.eup %3196  ;;  %v2746_v15 = vadd.f32 %v3195_v36, %v6311_v25  ;;  %v2777_v51 = vmul.f32 %v2745_v0, %v6098_v63 }
 0x309   : > { %3204 = vrcp.f32 %v2616_v57  ;;  %2801 = vst [vmem:[%s6360_s26 + $0x78] sm:$0xff] %v2769_v17  ;;  %v2748_v47 = vadd.f32 %v3197_v35, %v6311_v25  ;;  %v2779_v60 = vmul.f32 %v2747_v56, %v7231_v27 }
 0x30a   : > { %3206 = vrcp.f32 %v2617_v44  ;;  %2802 = vst [vmem:[%s6360_s26 + $0x80] sm:$0xff] %v2770_v33  ;;  %v2778_v28 = vmul.f32 %v2746_v15, %v7230_v19 }
 0x30b   : > { %2803 = vst [vmem:[%s6360_s26 + $0x88] sm:$0xff] %v2771_v41  ;;  %v2780_v63 = vmul.f32 %v2748_v47, %v7232_v2 }
 0x30c   : > { %v3199_v7 = vpop.eup %3198  ;;  %2804 = vst [vmem:[%s6360_s26 + $0x90] sm:$0xff] %v2772_v31 }
 0x30d   : > { %v3201_v14 = vpop.eup %3200  ;;  %v2618_v52 = vadd.f32 1.0, %v3199_v7  ;;  %2805 = vst [vmem:[%s6360_s26 + $0x98] sm:$0xff] %v2773_v48 }
 0x30e   : > { %v3203_v42 = vpop.eup %3202  ;;  %v2619_v34 = vadd.f32 1.0, %v3201_v14  ;;  %2806 = vst [vmem:[%s6360_s26 + $0xa0] sm:$0xff] %v2774_v30 }
 0x30f   : > { %v3205_v54 = vpop.eup %3204  ;;  %v2749_v24 = vadd.f32 %v3203_v42, %v6311_v25  ;;  %3208 = vrcp.f32 %v2618_v52  ;;  %2807 = vst [vmem:[%s6360_s26 + $0xa8] sm:$0xff] %v2775_v50 }
 0x310   : > { %v3207_v32 = vpop.eup %3206  ;;  %v2750_v29 = vadd.f32 %v3205_v54, %v6311_v25  ;;  %3210 = vrcp.f32 %v2619_v34  ;;  %2808 = vst [vmem:[%s6360_s26 + $0xb0] sm:$0xff] %v2776_v11 }
 0x311   : > { %v2751_v55 = vadd.f32 %v3207_v32, %v6311_v25  ;;  %v2781_v49 = vmul.f32 %v2749_v24, %v7233_v8  ;;  %2809 = vst [vmem:[%s6360_s26 + $0xb8] sm:$0xff] %v2777_v51 }
 0x312   : > { %v2782_v9 = vmul.f32 %v2750_v29, %v7234_v46  ;;  %2810 = vst [vmem:[%s6360_s26 + $0xc0] sm:$0xff] %v2778_v28 }
 0x313   : > { %v2783_v6 = vmul.f32 %v2751_v55, %v7235_v16  ;;  %2811 = vst [vmem:[%s6360_s26 + $0xc8] sm:$0xff] %v2779_v60 }
 0x314   : > { %2812 = vst [vmem:[%s6360_s26 + $0xd0] sm:$0xff] %v2780_v63 }
 0x315   : > { %v3209_v13 = vpop.eup %3208  ;;  %2813 = vst [vmem:[%s6360_s26 + $0xd8] sm:$0xff] %v2781_v49 }
 0x316   : > { %v3211_v5 = vpop.eup %3210  ;;  %v2752_v40 = vadd.f32 %v3209_v13, %v6311_v25  ;;  %2814 = vst [vmem:[%s6360_s26 + $0xe0] sm:$0xff] %v2782_v9 }
 0x317   : > { %v2753_v3 = vadd.f32 %v3211_v5, %v6311_v25  ;;  %2815 = vst [vmem:[%s6360_s26 + $0xe8] sm:$0xff] %v2783_v6 }
 0x318   : > { %v2784_v1 = vmul.f32 %v2752_v40, %v7236_v26 }
 0x319   : > { %v2785_v38 = vmul.f32 %v2753_v3, %v7237_v23 }
 0x31a   : > { %2816 = vst [vmem:[%s6360_s26 + $0xf0] sm:$0xff] %v2784_v1 }
 0x31b   : > { %2817 = vst [vmem:[%s6360_s26 + $0xf8] sm:$0xff] %v2785_v38 }
 0x31c   : > { %3317 = shalt.err (!%p3314_p4)
}
 0x31d   : > { %s3363_s18 = smov 128   ;;  %s3364_s26 = smov 8  }
 0x31e   : > { %3021 = dma.vmem_to_hbm [thread:$0]  (%p3470_p11), %s2832_s20, 4096, %s2834_s21, %s2819_s28, %s3363_s18, %s3363_s18, %s3364_s26  }
 0x31f PF: > { %s2848_s17 = sand.u32 1, %s3344_s13   ;;  %p7239_p7 = scmp.ge.s32.totalorder %s3356_s16, 2 }
 0x320   : > { %s2849_s15 = scalar_lea.sflag [#allocation4], %s2848_s17 }
 0x321   : > { %p3028_p5 = pnand %p7239_p7, %p3474_p12 }
 0x323   : > { %p3029_p8 = pneg %p3028_p5 }
 0x325   : > { %3339 = dma.done.wait (%p3029_p8), %s2849_s15, 4096  }
 0x326   : > { %3341 = vsyncadd (%p3029_p8), %s2849_s15, 4294963200  ;;  %s7240_s16 = sld [smem:[#allocation9_spill]]  ;;  %s7243_s13 = smov %s3348_s14 }
 0x327   : > { %s7241_s22 = sld [smem:[#allocation8_spill]] }
 0x328   : > { %s7242_s15 = sld [smem:[#allocation10_spill]] }
 0x32c   : > { %p23_p10 = scmp.ge.s32.totalorder %s7240_s16, 4  }
 0x32d   : > { %s7244_s14 = smov %s7241_s22 }
 0x32e   :  { %25 = sbr.rel (!%p23_p10) target bundleno = 5 (0x5), region = 105 }
 0x333   :  { %2855 = vsyncpa [#allocation3], 1 }
 0x334   :  { %2857 = vsyncpa [#allocation3 + $0x1], 1 }
 0x335   :  { %2858 = vsyncpa [#allocation4], 1 }
 0x336   :  { %2860 = vsyncpa [#allocation4 + $0x1], 1 }

</bundles_post_ra>
